<compile_context>
chip_gen: v7x
topology: tpu7x:2x2x1
jax: 0.10.0
libtpu: 0.0.40
codegen_flags: <defaults>
</compile_context>

<pallas_src>
import functools

import jax
import jax.numpy as jnp
from jax.experimental import pallas as pl
from jax.experimental.pallas import tpu as pltpu


# ----------------------------------------------------------------------------
# Fused kernel: layer0 LSTM + layer1 LSTM (interleaved) -> Linear(H,1)+sigmoid.
# Gate order inside packed weights: [i, f, o, g]; each gate block is padded to
# HP lanes so every slice lands on a 128-lane boundary.
# ----------------------------------------------------------------------------
def _fight_lstm_kernel(x_ref, wih0_ref, whh0_ref, b0_ref,
                       w1_hbm, b1_ref, wfc_ref, bfc_ref,
                       out_ref,
                       gx_buf, w1_buf, w1_sem,
                       *, T, BP, HP):
    f32 = jnp.float32
    bf16 = jnp.bfloat16

    # ---- kick off the layer-1 fused-weight DMA; hide it behind the hoisted
    #      layer-0 input projection instead of serializing it at kernel entry.
    w1_copy = pltpu.make_async_copy(w1_hbm, w1_buf, w1_sem)
    w1_copy.start()

    # ---- layer 0: input projection for ALL timesteps in one bf16 MXU call --
    gx_buf[...] = (
        jnp.dot(x_ref[...], wih0_ref[...], preferred_element_type=f32)
        + b0_ref[...]
    )                                                        # (T*BP, 4*HP) f32

    # Hoisted broadcast (JAX does not CSE broadcast_in_dim inside the loop).
    b1 = jnp.broadcast_to(b1_ref[...], (BP, 4 * HP))

    w1_copy.wait()                                           # first use: step 0

    def lstm_cell(gates, c):
        # gate order [i, f, o, g]: one sigmoid over the contiguous first 3*HP
        # lanes, one tanh over the last HP block.
        sig = jax.nn.sigmoid(gates[:, :3 * HP])
        i_g = sig[:, 0 * HP:1 * HP]
        f_g = sig[:, 1 * HP:2 * HP]
        o_g = sig[:, 2 * HP:3 * HP]
        g_g = jnp.tanh(gates[:, 3 * HP:4 * HP])
        c_new = f_g * c + i_g * g_g
        h_new = o_g * jnp.tanh(c_new)
        return h_new, c_new

    h0 = jnp.zeros((BP, HP), f32)
    c0 = jnp.zeros((BP, HP), f32)
    h1 = jnp.zeros((BP, HP), f32)
    c1 = jnp.zeros((BP, HP), f32)

    # Interleaved recurrence, fully unrolled (T is small) so the scheduler
    # sees both dependency chains: layer-0 step t+1 only needs h0_t, so its
    # MXU work overlaps layer-1 step t's EUP/VPU work.
    for t in range(T):
        # layer 0: hoisted x-projection tile + h0 @ W_hh0 (bf16 operands)
        g0 = gx_buf[t * BP:(t + 1) * BP, :] + jnp.dot(
            h0.astype(bf16), whh0_ref[...], preferred_element_type=f32)
        h0, c0 = lstm_cell(g0, c0)

        # layer 1: single fused K=2*HP matmul  [h0_t | h1_{t-1}] @ [Wih1; Whh1]
        lhs1 = jnp.concatenate([h0, h1], axis=-1).astype(bf16)   # (BP, 2*HP)
        g1 = jnp.dot(lhs1, w1_buf[...], preferred_element_type=f32) + b1
        h1, c1 = lstm_cell(g1, c1)

    # ---- head: Linear(H,1) + sigmoid as VPU multiply + lane reduce (f32) ----
    logits = jnp.sum(h1 * wfc_ref[...], axis=-1, keepdims=True) + bfc_ref[...]
    prob = jax.nn.sigmoid(logits)                            # (BP, 1)
    # lane-dense output tile (one unmasked vst); wrapper reads column 0.
    out_ref[...] = jnp.broadcast_to(prob, (BP, 128)).astype(out_ref.dtype)


def _round_up(x, m):
    return ((x + m - 1) // m) * m


@jax.jit
def fight_lstm_forward(params, x_bti):
    """x_bti: (B, T, I) -> (B,) probabilities (matches PyTorch out.squeeze())."""
    x_bti = x_bti.astype(jnp.float32)
    B, T, I = x_bti.shape
    HP = params["whh0"].shape[0]            # lane-padded hidden size (128)
    BP = _round_up(max(B, 8), 8)            # pad batch to f32 sublane granularity

    # NOTE: this pad/transpose is a tiny op fused by XLA under jit; the (T,B,I)
    # tensor is ~1 KiB here so it is not worth an allow_input_fusion contract.
    x_pad = jnp.pad(x_bti, ((0, BP - B), (0, 0), (0, 0)))
    # Time-major, flattened: rows [t*BP, (t+1)*BP) are timestep t -> every time
    # slice inside the kernel is a whole aligned sublane group.
    x_tb = jnp.transpose(x_pad, (1, 0, 2)).reshape(T * BP, I).astype(jnp.bfloat16)

    kernel = functools.partial(_fight_lstm_kernel, T=T, BP=BP, HP=HP)
    out = pl.pallas_call(
        kernel,
        out_shape=jax.ShapeDtypeStruct((BP, 128), jnp.float32),
        in_specs=[
            pl.BlockSpec((T * BP, I), lambda: (0, 0)),       # x (time-major, bf16)
            pl.BlockSpec((I, 4 * HP), lambda: (0, 0)),       # W_ih layer0 (bf16)
            pl.BlockSpec((HP, 4 * HP), lambda: (0, 0)),      # W_hh layer0 (bf16)
            pl.BlockSpec((1, 4 * HP), lambda: (0, 0)),       # bias layer0 (f32)
            pl.BlockSpec(memory_space=pl.ANY),               # [Wih1;Whh1] in HBM; DMA'd in-kernel
            pl.BlockSpec((1, 4 * HP), lambda: (0, 0)),       # bias layer1 (f32)
            pl.BlockSpec((1, HP), lambda: (0, 0)),           # fc weight row (f32)
            pl.BlockSpec((1, 1), lambda: (0, 0)),            # fc bias (f32)
        ],
        out_specs=pl.BlockSpec((BP, 128), lambda: (0, 0)),
        scratch_shapes=[
            pltpu.VMEM((T * BP, 4 * HP), jnp.float32),       # hoisted layer-0 gate pre-acts
            pltpu.VMEM((2 * HP, 4 * HP), jnp.bfloat16),      # layer-1 fused weight landing buf
            pltpu.SemaphoreType.DMA,                         # its DMA semaphore
        ],
    )(
        x_tb,
        params["wih0"], params["whh0"], params["b0"],
        params["w1"], params["b1"],
        params["wfc"], params["bfc"],
    )
    return out[:B, 0]


# ----------------------------------------------------------------------------
# Parameter construction (PyTorch layouts) + packing into padded kernel layout.
# ----------------------------------------------------------------------------
def init_params(key, input_size=16, hidden_size=64, num_layers=2):
    """Raw PyTorch-style params: uniform(+-1/sqrt(H)), gate order [i,f,g,o]."""
    H = hidden_size
    k = 1.0 / (H ** 0.5)
    layers = []
    for layer in range(num_layers):
        in_dim = input_size if layer == 0 else H
        key, k1, k2, k3, k4 = jax.random.split(key, 5)
        layers.append({
            "w_ih": jax.random.uniform(k1, (4 * H, in_dim), jnp.float32, -k, k),
            "w_hh": jax.random.uniform(k2, (4 * H, H), jnp.float32, -k, k),
            "b_ih": jax.random.uniform(k3, (4 * H,), jnp.float32, -k, k),
            "b_hh": jax.random.uniform(k4, (4 * H,), jnp.float32, -k, k),
        })
    key, k5, k6 = jax.random.split(key, 3)
    w_fc = jax.random.uniform(k5, (1, H), jnp.float32, -k, k)
    b_fc = jax.random.uniform(k6, (1,), jnp.float32, -k, k)
    return {"layers": layers, "w_fc": w_fc, "b_fc": b_fc}


# PyTorch gate order [i, f, g, o] -> kernel gate order [i, f, o, g]
_GATE_PERM = jnp.array([0, 1, 3, 2], dtype=jnp.int32)


def pack_params(raw, hp=128):
    """Pack raw params into the lane-padded bf16 layout the fused kernel expects.

    Correctness of the lane padding relies on: padded gate columns have zero
    weight AND zero bias, and the initial h/c states are zero, so padded lanes
    produce i=f=o=0.5, g=0 and stay exactly 0 through the recurrence.  Do not
    introduce nonzero initial states or nonzero bias padding.
    """
    layers = raw["layers"]
    assert len(layers) == 2, "fused kernel implements exactly num_layers=2"
    H = layers[0]["w_hh"].shape[1]
    assert hp >= H and hp % 128 == 0

    def pack_w(w, in_pad=None):
        # w: (4H, in_dim) PyTorch layout -> (in_pad_or_in_dim, 4*hp) bf16, each
        # gate block reordered to [i,f,o,g] and zero-padded from H to hp cols.
        four_h, in_dim = w.shape
        h = four_h // 4
        wt = jnp.transpose(w).reshape(in_dim, 4, h)
        wt = jnp.take(wt, _GATE_PERM, axis=1)
        wt = jnp.pad(wt, ((0, 0), (0, 0), (0, hp - h))).reshape(in_dim, 4 * hp)
        if in_pad is not None and in_pad > in_dim:
            wt = jnp.pad(wt, ((0, in_pad - in_dim), (0, 0)))
        return wt.astype(jnp.bfloat16)

    def pack_b(b_ih, b_hh):
        b = (b_ih + b_hh).reshape(4, -1)
        b = jnp.take(b, _GATE_PERM, axis=0)
        return jnp.pad(b, ((0, 0), (0, hp - b.shape[1]))).reshape(1, 4 * hp)

    l0, l1 = layers
    # Layer-1 fused weight: rows [0,hp) = W_ih1 (over h0), rows [hp,2hp) = W_hh1.
    w1 = jnp.concatenate(
        [pack_w(l1["w_ih"], in_pad=hp), pack_w(l1["w_hh"], in_pad=hp)], axis=0)
    return {
        "wih0": pack_w(l0["w_ih"]),                    # (I, 4*HP)    bf16
        "whh0": pack_w(l0["w_hh"], in_pad=hp),         # (HP, 4*HP)   bf16
        "b0": pack_b(l0["b_ih"], l0["b_hh"]),          # (1, 4*HP)    f32
        "w1": w1,                                      # (2*HP, 4*HP) bf16
        "b1": pack_b(l1["b_ih"], l1["b_hh"]),          # (1, 4*HP)    f32
        "wfc": jnp.pad(raw["w_fc"], ((0, 0), (0, hp - H))),   # (1, HP) f32
        "bfc": raw["b_fc"].reshape(1, 1),                     # (1, 1)  f32
    }


# ----------------------------------------------------------------------------
# Pure-JAX f32 reference (raw PyTorch-layout params) for a sanity check.
# ----------------------------------------------------------------------------
def _reference_forward(raw, x_bti):
    x = jnp.transpose(x_bti.astype(jnp.float32), (1, 0, 2))    # (T, B, I)
    T, B, _ = x.shape
    seq = x
    for lp in raw["layers"]:
        H = lp["w_hh"].shape[1]
        w_ih_t, w_hh_t = lp["w_ih"].T, lp["w_hh"].T
        b = lp["b_ih"] + lp["b_hh"]
        h = jnp.zeros((B, H), jnp.float32)
        c = jnp.zeros((B, H), jnp.float32)
        outs = []
        for t in range(T):
            gates = seq[t] @ w_ih_t + h @ w_hh_t + b
            i = jax.nn.sigmoid(gates[:, 0 * H:1 * H])
            f = jax.nn.sigmoid(gates[:, 1 * H:2 * H])
            g = jnp.tanh(gates[:, 2 * H:3 * H])
            o = jax.nn.sigmoid(gates[:, 3 * H:4 * H])
            c = f * c + i * g
            h = o * jnp.tanh(c)
            outs.append(h)
        seq = jnp.stack(outs, axis=0)
    h_last = seq[-1]                                           # (B, H)
    logits = jnp.sum(h_last * raw["w_fc"], axis=-1) + raw["b_fc"][0]
    return jax.nn.sigmoid(logits)                              # (B,)


if __name__ == "__main__":
    B, T, I, H = 2, 8, 16, 64
    key = jax.random.PRNGKey(0)
    key_p, key_x = jax.random.split(key)

    raw_params = init_params(key_p, input_size=I, hidden_size=H, num_layers=2)
    packed_params = pack_params(raw_params, hp=128)
    x = jax.random.normal(key_x, (B, T, I), jnp.float32)

    out = jax.block_until_ready(fight_lstm_forward(packed_params, x))
    ref = _reference_forward(raw_params, x)

    assert out.shape == (B,), out.shape
    # bf16 matmul operands vs f32 reference: loosened tolerance per review.
    assert jnp.allclose(out, ref, atol=2e-2, rtol=2e-2), (out, ref)
    print("KERNEL_OK")
</pallas_src>

<mosaic_0001>
module attributes {stable_mosaic.version = 11 : i64} {
  func.func @_fight_lstm_kernel(%arg0: memref<64x16xbf16, #tpu.memory_space<vmem>>, %arg1: memref<16x512xbf16, #tpu.memory_space<vmem>>, %arg2: memref<128x512xbf16, #tpu.memory_space<vmem>>, %arg3: memref<1x512xf32, #tpu.memory_space<vmem>>, %arg4: memref<256x512xbf16, #tpu.memory_space<any>>, %arg5: memref<1x512xf32, #tpu.memory_space<vmem>>, %arg6: memref<1x128xf32, #tpu.memory_space<vmem>>, %arg7: memref<1x1xf32, #tpu.memory_space<vmem>>, %arg8: memref<8x128xf32, #tpu.memory_space<vmem>>, %arg9: memref<64x512xf32, #tpu.memory_space<vmem>>, %arg10: memref<256x512xbf16, #tpu.memory_space<vmem>>, %arg11: memref<!tpu.dma_semaphore, #tpu.memory_space<semaphore_mem>>) attributes {dimension_semantics = [], scalar_prefetch = 0 : i64, scratch_operands = 3 : i64, tpu.core_type = #tpu.core_type<tc>} {
    tpu.enqueue_dma source(%arg4 : memref<256x512xbf16, #tpu.memory_space<any>>) target(%arg10 : memref<256x512xbf16, #tpu.memory_space<vmem>>) target_semaphore(%arg11 : memref<!tpu.dma_semaphore, #tpu.memory_space<semaphore_mem>>)
    %c0 = arith.constant 0 : index
    %c0_0 = arith.constant 0 : index
    %0 = vector.load %arg0[%c0, %c0_0] : memref<64x16xbf16, #tpu.memory_space<vmem>>, vector<64x16xbf16>
    %c0_1 = arith.constant 0 : index
    %c0_2 = arith.constant 0 : index
    %1 = vector.load %arg1[%c0_1, %c0_2] : memref<16x512xbf16, #tpu.memory_space<vmem>>, vector<16x512xbf16>
    %cst = arith.constant dense<0.000000e+00> : vector<64x512xf32>
    %2 = tpu.matmul %0, %1, %cst {dimension_numbers = #tpu.dot_dimension_numbers<[1], [0], [0], [1], [0, 0, 1, 1], [], []>} : vector<64x16xbf16>, vector<16x512xbf16>, vector<64x512xf32> -> vector<64x512xf32>
    %c0_3 = arith.constant 0 : index
    %c0_4 = arith.constant 0 : index
    %3 = vector.load %arg3[%c0_3, %c0_4] : memref<1x512xf32, #tpu.memory_space<vmem>>, vector<1x512xf32>
    %4 = vector.broadcast %3 : vector<1x512xf32> to vector<64x512xf32>
    %5 = arith.addf %2, %4 : vector<64x512xf32>
    %c0_5 = arith.constant 0 : index
    %c0_6 = arith.constant 0 : index
    %6 = vector.load %arg9[%c0_5, %c0_6] : memref<64x512xf32, #tpu.memory_space<vmem>>, vector<64x512xf32>
    tpu.vector_store %arg9[%c0_5, %c0_6], %5 {strides = array<i32>} : memref<64x512xf32, #tpu.memory_space<vmem>>, vector<64x512xf32>,
    %c0_7 = arith.constant 0 : index
    %c0_8 = arith.constant 0 : index
    %7 = vector.load %arg5[%c0_7, %c0_8] : memref<1x512xf32, #tpu.memory_space<vmem>>, vector<1x512xf32>
    %8 = vector.shape_cast %7 : vector<1x512xf32> to vector<1x512xf32>
    %9 = vector.broadcast %8 : vector<1x512xf32> to vector<8x512xf32>
    tpu.wait_dma2 semaphore(%arg11 : memref<!tpu.dma_semaphore, #tpu.memory_space<semaphore_mem>>) src(%arg4 : memref<256x512xbf16, #tpu.memory_space<any>>) dst(%arg10 : memref<256x512xbf16, #tpu.memory_space<vmem>>)
    %cst_9 = arith.constant 0.000000e+00 : f32
    %10 = vector.broadcast %cst_9 : f32 to vector<8x128xf32>
    %cst_10 = arith.constant 0.000000e+00 : f32
    %11 = vector.broadcast %cst_10 : f32 to vector<8x128xf32>
    %cst_11 = arith.constant 0.000000e+00 : f32
    %12 = vector.broadcast %cst_11 : f32 to vector<8x128xf32>
    %cst_12 = arith.constant 0.000000e+00 : f32
    %13 = vector.broadcast %cst_12 : f32 to vector<8x128xf32>
    %c0_13 = arith.constant 0 : index
    %c0_14 = arith.constant 0 : index
    %14 = vector.load %arg9[%c0_13, %c0_14] : memref<64x512xf32, #tpu.memory_space<vmem>>, vector<8x512xf32>
    %15 = arith.truncf %10 : vector<8x128xf32> to vector<8x128xbf16>
    %c0_15 = arith.constant 0 : index
    %c0_16 = arith.constant 0 : index
    %16 = vector.load %arg2[%c0_15, %c0_16] : memref<128x512xbf16, #tpu.memory_space<vmem>>, vector<128x512xbf16>
    %cst_17 = arith.constant dense<0.000000e+00> : vector<8x512xf32>
    %17 = tpu.matmul %15, %16, %cst_17 {dimension_numbers = #tpu.dot_dimension_numbers<[1], [0], [0], [1], [0, 0, 1, 1], [], []>} : vector<8x128xbf16>, vector<128x512xbf16>, vector<8x512xf32> -> vector<8x512xf32>
    %18 = arith.addf %14, %17 : vector<8x512xf32>
    %19 = vector.extract_strided_slice %18 {offsets = [0, 0], sizes = [8, 384], strides = [1, 1]} : vector<8x512xf32> to vector<8x384xf32>
    %20 = arith.negf %19 : vector<8x384xf32>
    %21 = math.exp %20 : vector<8x384xf32>
    %cst_18 = arith.constant 1.000000e+00 : f32
    %22 = vector.broadcast %cst_18 : f32 to vector<8x384xf32>
    %23 = arith.addf %22, %21 : vector<8x384xf32>
    %24 = arith.divf %22, %23 : vector<8x384xf32>
    %25 = vector.extract_strided_slice %24 {offsets = [0, 0], sizes = [8, 128], strides = [1, 1]} : vector<8x384xf32> to vector<8x128xf32>
    %26 = vector.extract_strided_slice %24 {offsets = [0, 128], sizes = [8, 128], strides = [1, 1]} : vector<8x384xf32> to vector<8x128xf32>
    %27 = vector.extract_strided_slice %24 {offsets = [0, 256], sizes = [8, 128], strides = [1, 1]} : vector<8x384xf32> to vector<8x128xf32>
    %28 = vector.extract_strided_slice %18 {offsets = [0, 384], sizes = [8, 128], strides = [1, 1]} : vector<8x512xf32> to vector<8x128xf32>
    %29 = math.tanh %28 : vector<8x128xf32>
    %30 = arith.mulf %26, %11 : vector<8x128xf32>
    %31 = arith.mulf %25, %29 : vector<8x128xf32>
    %32 = arith.addf %30, %31 : vector<8x128xf32>
    %33 = math.tanh %32 : vector<8x128xf32>
    %34 = arith.mulf %27, %33 : vector<8x128xf32>
    %35 = tpu.concatenate %34, %12 in 1 : vector<8x128xf32>, vector<8x128xf32> -> vector<8x256xf32>
    %36 = arith.truncf %35 : vector<8x256xf32> to vector<8x256xbf16>
    %c0_19 = arith.constant 0 : index
    %c0_20 = arith.constant 0 : index
    %37 = vector.load %arg10[%c0_19, %c0_20] : memref<256x512xbf16, #tpu.memory_space<vmem>>, vector<256x512xbf16>
    %cst_21 = arith.constant dense<0.000000e+00> : vector<8x512xf32>
    %38 = tpu.matmul %36, %37, %cst_21 {dimension_numbers = #tpu.dot_dimension_numbers<[1], [0], [0], [1], [0, 0, 1, 1], [], []>} : vector<8x256xbf16>, vector<256x512xbf16>, vector<8x512xf32> -> vector<8x512xf32>
    %39 = arith.addf %38, %9 : vector<8x512xf32>
    %40 = vector.extract_strided_slice %39 {offsets = [0, 0], sizes = [8, 384], strides = [1, 1]} : vector<8x512xf32> to vector<8x384xf32>
    %41 = arith.negf %40 : vector<8x384xf32>
    %42 = math.exp %41 : vector<8x384xf32>
    %cst_22 = arith.constant 1.000000e+00 : f32
    %43 = vector.broadcast %cst_22 : f32 to vector<8x384xf32>
    %44 = arith.addf %43, %42 : vector<8x384xf32>
    %45 = arith.divf %43, %44 : vector<8x384xf32>
    %46 = vector.extract_strided_slice %45 {offsets = [0, 0], sizes = [8, 128], strides = [1, 1]} : vector<8x384xf32> to vector<8x128xf32>
    %47 = vector.extract_strided_slice %45 {offsets = [0, 128], sizes = [8, 128], strides = [1, 1]} : vector<8x384xf32> to vector<8x128xf32>
    %48 = vector.extract_strided_slice %45 {offsets = [0, 256], sizes = [8, 128], strides = [1, 1]} : vector<8x384xf32> to vector<8x128xf32>
    %49 = vector.extract_strided_slice %39 {offsets = [0, 384], sizes = [8, 128], strides = [1, 1]} : vector<8x512xf32> to vector<8x128xf32>
    %50 = math.tanh %49 : vector<8x128xf32>
    %51 = arith.mulf %47, %13 : vector<8x128xf32>
    %52 = arith.mulf %46, %50 : vector<8x128xf32>
    %53 = arith.addf %51, %52 : vector<8x128xf32>
    %54 = math.tanh %53 : vector<8x128xf32>
    %55 = arith.mulf %48, %54 : vector<8x128xf32>
    %c8 = arith.constant 8 : index
    %c0_23 = arith.constant 0 : index
    %56 = vector.load %arg9[%c8, %c0_23] : memref<64x512xf32, #tpu.memory_space<vmem>>, vector<8x512xf32>
    %57 = arith.truncf %34 : vector<8x128xf32> to vector<8x128xbf16>
    %c0_24 = arith.constant 0 : index
    %c0_25 = arith.constant 0 : index
    %58 = vector.load %arg2[%c0_24, %c0_25] : memref<128x512xbf16, #tpu.memory_space<vmem>>, vector<128x512xbf16>
    %cst_26 = arith.constant dense<0.000000e+00> : vector<8x512xf32>
    %59 = tpu.matmul %57, %58, %cst_26 {dimension_numbers = #tpu.dot_dimension_numbers<[1], [0], [0], [1], [0, 0, 1, 1], [], []>} : vector<8x128xbf16>, vector<128x512xbf16>, vector<8x512xf32> -> vector<8x512xf32>
    %60 = arith.addf %56, %59 : vector<8x512xf32>
    %61 = vector.extract_strided_slice %60 {offsets = [0, 0], sizes = [8, 384], strides = [1, 1]} : vector<8x512xf32> to vector<8x384xf32>
    %62 = arith.negf %61 : vector<8x384xf32>
    %63 = math.exp %62 : vector<8x384xf32>
    %cst_27 = arith.constant 1.000000e+00 : f32
    %64 = vector.broadcast %cst_27 : f32 to vector<8x384xf32>
    %65 = arith.addf %64, %63 : vector<8x384xf32>
    %66 = arith.divf %64, %65 : vector<8x384xf32>
    %67 = vector.extract_strided_slice %66 {offsets = [0, 0], sizes = [8, 128], strides = [1, 1]} : vector<8x384xf32> to vector<8x128xf32>
    %68 = vector.extract_strided_slice %66 {offsets = [0, 128], sizes = [8, 128], strides = [1, 1]} : vector<8x384xf32> to vector<8x128xf32>
    %69 = vector.extract_strided_slice %66 {offsets = [0, 256], sizes = [8, 128], strides = [1, 1]} : vector<8x384xf32> to vector<8x128xf32>
    %70 = vector.extract_strided_slice %60 {offsets = [0, 384], sizes = [8, 128], strides = [1, 1]} : vector<8x512xf32> to vector<8x128xf32>
    %71 = math.tanh %70 : vector<8x128xf32>
    %72 = arith.mulf %68, %32 : vector<8x128xf32>
    %73 = arith.mulf %67, %71 : vector<8x128xf32>
    %74 = arith.addf %72, %73 : vector<8x128xf32>
    %75 = math.tanh %74 : vector<8x128xf32>
    %76 = arith.mulf %69, %75 : vector<8x128xf32>
    %77 = tpu.concatenate %76, %55 in 1 : vector<8x128xf32>, vector<8x128xf32> -> vector<8x256xf32>
    %78 = arith.truncf %77 : vector<8x256xf32> to vector<8x256xbf16>
    %c0_28 = arith.constant 0 : index
    %c0_29 = arith.constant 0 : index
    %79 = vector.load %arg10[%c0_28, %c0_29] : memref<256x512xbf16, #tpu.memory_space<vmem>>, vector<256x512xbf16>
    %cst_30 = arith.constant dense<0.000000e+00> : vector<8x512xf32>
    %80 = tpu.matmul %78, %79, %cst_30 {dimension_numbers = #tpu.dot_dimension_numbers<[1], [0], [0], [1], [0, 0, 1, 1], [], []>} : vector<8x256xbf16>, vector<256x512xbf16>, vector<8x512xf32> -> vector<8x512xf32>
    %81 = arith.addf %80, %9 : vector<8x512xf32>
    %82 = vector.extract_strided_slice %81 {offsets = [0, 0], sizes = [8, 384], strides = [1, 1]} : vector<8x512xf32> to vector<8x384xf32>
    %83 = arith.negf %82 : vector<8x384xf32>
    %84 = math.exp %83 : vector<8x384xf32>
    %cst_31 = arith.constant 1.000000e+00 : f32
    %85 = vector.broadcast %cst_31 : f32 to vector<8x384xf32>
    %86 = arith.addf %85, %84 : vector<8x384xf32>
    %87 = arith.divf %85, %86 : vector<8x384xf32>
    %88 = vector.extract_strided_slice %87 {offsets = [0, 0], sizes = [8, 128], strides = [1, 1]} : vector<8x384xf32> to vector<8x128xf32>
    %89 = vector.extract_strided_slice %87 {offsets = [0, 128], sizes = [8, 128], strides = [1, 1]} : vector<8x384xf32> to vector<8x128xf32>
    %90 = vector.extract_strided_slice %87 {offsets = [0, 256], sizes = [8, 128], strides = [1, 1]} : vector<8x384xf32> to vector<8x128xf32>
    %91 = vector.extract_strided_slice %81 {offsets = [0, 384], sizes = [8, 128], strides = [1, 1]} : vector<8x512xf32> to vector<8x128xf32>
    %92 = math.tanh %91 : vector<8x128xf32>
    %93 = arith.mulf %89, %53 : vector<8x128xf32>
    %94 = arith.mulf %88, %92 : vector<8x128xf32>
    %95 = arith.addf %93, %94 : vector<8x128xf32>
    %96 = math.tanh %95 : vector<8x128xf32>
    %97 = arith.mulf %90, %96 : vector<8x128xf32>
    %c16 = arith.constant 16 : index
    %c0_32 = arith.constant 0 : index
    %98 = vector.load %arg9[%c16, %c0_32] : memref<64x512xf32, #tpu.memory_space<vmem>>, vector<8x512xf32>
    %99 = arith.truncf %76 : vector<8x128xf32> to vector<8x128xbf16>
    %c0_33 = arith.constant 0 : index
    %c0_34 = arith.constant 0 : index
    %100 = vector.load %arg2[%c0_33, %c0_34] : memref<128x512xbf16, #tpu.memory_space<vmem>>, vector<128x512xbf16>
    %cst_35 = arith.constant dense<0.000000e+00> : vector<8x512xf32>
    %101 = tpu.matmul %99, %100, %cst_35 {dimension_numbers = #tpu.dot_dimension_numbers<[1], [0], [0], [1], [0, 0, 1, 1], [], []>} : vector<8x128xbf16>, vector<128x512xbf16>, vector<8x512xf32> -> vector<8x512xf32>
    %102 = arith.addf %98, %101 : vector<8x512xf32>
    %103 = vector.extract_strided_slice %102 {offsets = [0, 0], sizes = [8, 384], strides = [1, 1]} : vector<8x512xf32> to vector<8x384xf32>
    %104 = arith.negf %103 : vector<8x384xf32>
    %105 = math.exp %104 : vector<8x384xf32>
    %cst_36 = arith.constant 1.000000e+00 : f32
    %106 = vector.broadcast %cst_36 : f32 to vector<8x384xf32>
    %107 = arith.addf %106, %105 : vector<8x384xf32>
    %108 = arith.divf %106, %107 : vector<8x384xf32>
    %109 = vector.extract_strided_slice %108 {offsets = [0, 0], sizes = [8, 128], strides = [1, 1]} : vector<8x384xf32> to vector<8x128xf32>
    %110 = vector.extract_strided_slice %108 {offsets = [0, 128], sizes = [8, 128], strides = [1, 1]} : vector<8x384xf32> to vector<8x128xf32>
    %111 = vector.extract_strided_slice %108 {offsets = [0, 256], sizes = [8, 128], strides = [1, 1]} : vector<8x384xf32> to vector<8x128xf32>
    %112 = vector.extract_strided_slice %102 {offsets = [0, 384], sizes = [8, 128], strides = [1, 1]} : vector<8x512xf32> to vector<8x128xf32>
    %113 = math.tanh %112 : vector<8x128xf32>
    %114 = arith.mulf %110, %74 : vector<8x128xf32>
    %115 = arith.mulf %109, %113 : vector<8x128xf32>
    %116 = arith.addf %114, %115 : vector<8x128xf32>
    %117 = math.tanh %116 : vector<8x128xf32>
    %118 = arith.mulf %111, %117 : vector<8x128xf32>
    %119 = tpu.concatenate %118, %97 in 1 : vector<8x128xf32>, vector<8x128xf32> -> vector<8x256xf32>
    %120 = arith.truncf %119 : vector<8x256xf32> to vector<8x256xbf16>
    %c0_37 = arith.constant 0 : index
    %c0_38 = arith.constant 0 : index
    %121 = vector.load %arg10[%c0_37, %c0_38] : memref<256x512xbf16, #tpu.memory_space<vmem>>, vector<256x512xbf16>
    %cst_39 = arith.constant dense<0.000000e+00> : vector<8x512xf32>
    %122 = tpu.matmul %120, %121, %cst_39 {dimension_numbers = #tpu.dot_dimension_numbers<[1], [0], [0], [1], [0, 0, 1, 1], [], []>} : vector<8x256xbf16>, vector<256x512xbf16>, vector<8x512xf32> -> vector<8x512xf32>
    %123 = arith.addf %122, %9 : vector<8x512xf32>
    %124 = vector.extract_strided_slice %123 {offsets = [0, 0], sizes = [8, 384], strides = [1, 1]} : vector<8x512xf32> to vector<8x384xf32>
    %125 = arith.negf %124 : vector<8x384xf32>
    %126 = math.exp %125 : vector<8x384xf32>
    %cst_40 = arith.constant 1.000000e+00 : f32
    %127 = vector.broadcast %cst_40 : f32 to vector<8x384xf32>
    %128 = arith.addf %127, %126 : vector<8x384xf32>
    %129 = arith.divf %127, %128 : vector<8x384xf32>
    %130 = vector.extract_strided_slice %129 {offsets = [0, 0], sizes = [8, 128], strides = [1, 1]} : vector<8x384xf32> to vector<8x128xf32>
    %131 = vector.extract_strided_slice %129 {offsets = [0, 128], sizes = [8, 128], strides = [1, 1]} : vector<8x384xf32> to vector<8x128xf32>
    %132 = vector.extract_strided_slice %129 {offsets = [0, 256], sizes = [8, 128], strides = [1, 1]} : vector<8x384xf32> to vector<8x128xf32>
    %133 = vector.extract_strided_slice %123 {offsets = [0, 384], sizes = [8, 128], strides = [1, 1]} : vector<8x512xf32> to vector<8x128xf32>
    %134 = math.tanh %133 : vector<8x128xf32>
    %135 = arith.mulf %131, %95 : vector<8x128xf32>
    %136 = arith.mulf %130, %134 : vector<8x128xf32>
    %137 = arith.addf %135, %136 : vector<8x128xf32>
    %138 = math.tanh %137 : vector<8x128xf32>
    %139 = arith.mulf %132, %138 : vector<8x128xf32>
    %c24 = arith.constant 24 : index
    %c0_41 = arith.constant 0 : index
    %140 = vector.load %arg9[%c24, %c0_41] : memref<64x512xf32, #tpu.memory_space<vmem>>, vector<8x512xf32>
    %141 = arith.truncf %118 : vector<8x128xf32> to vector<8x128xbf16>
    %c0_42 = arith.constant 0 : index
    %c0_43 = arith.constant 0 : index
    %142 = vector.load %arg2[%c0_42, %c0_43] : memref<128x512xbf16, #tpu.memory_space<vmem>>, vector<128x512xbf16>
    %cst_44 = arith.constant dense<0.000000e+00> : vector<8x512xf32>
    %143 = tpu.matmul %141, %142, %cst_44 {dimension_numbers = #tpu.dot_dimension_numbers<[1], [0], [0], [1], [0, 0, 1, 1], [], []>} : vector<8x128xbf16>, vector<128x512xbf16>, vector<8x512xf32> -> vector<8x512xf32>
    %144 = arith.addf %140, %143 : vector<8x512xf32>
    %145 = vector.extract_strided_slice %144 {offsets = [0, 0], sizes = [8, 384], strides = [1, 1]} : vector<8x512xf32> to vector<8x384xf32>
    %146 = arith.negf %145 : vector<8x384xf32>
    %147 = math.exp %146 : vector<8x384xf32>
    %cst_45 = arith.constant 1.000000e+00 : f32
    %148 = vector.broadcast %cst_45 : f32 to vector<8x384xf32>
    %149 = arith.addf %148, %147 : vector<8x384xf32>
    %150 = arith.divf %148, %149 : vector<8x384xf32>
    %151 = vector.extract_strided_slice %150 {offsets = [0, 0], sizes = [8, 128], strides = [1, 1]} : vector<8x384xf32> to vector<8x128xf32>
    %152 = vector.extract_strided_slice %150 {offsets = [0, 128], sizes = [8, 128], strides = [1, 1]} : vector<8x384xf32> to vector<8x128xf32>
    %153 = vector.extract_strided_slice %150 {offsets = [0, 256], sizes = [8, 128], strides = [1, 1]} : vector<8x384xf32> to vector<8x128xf32>
    %154 = vector.extract_strided_slice %144 {offsets = [0, 384], sizes = [8, 128], strides = [1, 1]} : vector<8x512xf32> to vector<8x128xf32>
    %155 = math.tanh %154 : vector<8x128xf32>
    %156 = arith.mulf %152, %116 : vector<8x128xf32>
    %157 = arith.mulf %151, %155 : vector<8x128xf32>
    %158 = arith.addf %156, %157 : vector<8x128xf32>
    %159 = math.tanh %158 : vector<8x128xf32>
    %160 = arith.mulf %153, %159 : vector<8x128xf32>
    %161 = tpu.concatenate %160, %139 in 1 : vector<8x128xf32>, vector<8x128xf32> -> vector<8x256xf32>
    %162 = arith.truncf %161 : vector<8x256xf32> to vector<8x256xbf16>
    %c0_46 = arith.constant 0 : index
    %c0_47 = arith.constant 0 : index
    %163 = vector.load %arg10[%c0_46, %c0_47] : memref<256x512xbf16, #tpu.memory_space<vmem>>, vector<256x512xbf16>
    %cst_48 = arith.constant dense<0.000000e+00> : vector<8x512xf32>
    %164 = tpu.matmul %162, %163, %cst_48 {dimension_numbers = #tpu.dot_dimension_numbers<[1], [0], [0], [1], [0, 0, 1, 1], [], []>} : vector<8x256xbf16>, vector<256x512xbf16>, vector<8x512xf32> -> vector<8x512xf32>
    %165 = arith.addf %164, %9 : vector<8x512xf32>
    %166 = vector.extract_strided_slice %165 {offsets = [0, 0], sizes = [8, 384], strides = [1, 1]} : vector<8x512xf32> to vector<8x384xf32>
    %167 = arith.negf %166 : vector<8x384xf32>
    %168 = math.exp %167 : vector<8x384xf32>
    %cst_49 = arith.constant 1.000000e+00 : f32
    %169 = vector.broadcast %cst_49 : f32 to vector<8x384xf32>
    %170 = arith.addf %169, %168 : vector<8x384xf32>
    %171 = arith.divf %169, %170 : vector<8x384xf32>
    %172 = vector.extract_strided_slice %171 {offsets = [0, 0], sizes = [8, 128], strides = [1, 1]} : vector<8x384xf32> to vector<8x128xf32>
    %173 = vector.extract_strided_slice %171 {offsets = [0, 128], sizes = [8, 128], strides = [1, 1]} : vector<8x384xf32> to vector<8x128xf32>
    %174 = vector.extract_strided_slice %171 {offsets = [0, 256], sizes = [8, 128], strides = [1, 1]} : vector<8x384xf32> to vector<8x128xf32>
    %175 = vector.extract_strided_slice %165 {offsets = [0, 384], sizes = [8, 128], strides = [1, 1]} : vector<8x512xf32> to vector<8x128xf32>
    %176 = math.tanh %175 : vector<8x128xf32>
    %177 = arith.mulf %173, %137 : vector<8x128xf32>
    %178 = arith.mulf %172, %176 : vector<8x128xf32>
    %179 = arith.addf %177, %178 : vector<8x128xf32>
    %180 = math.tanh %179 : vector<8x128xf32>
    %181 = arith.mulf %174, %180 : vector<8x128xf32>
    %c32 = arith.constant 32 : index
    %c0_50 = arith.constant 0 : index
    %182 = vector.load %arg9[%c32, %c0_50] : memref<64x512xf32, #tpu.memory_space<vmem>>, vector<8x512xf32>
    %183 = arith.truncf %160 : vector<8x128xf32> to vector<8x128xbf16>
    %c0_51 = arith.constant 0 : index
    %c0_52 = arith.constant 0 : index
    %184 = vector.load %arg2[%c0_51, %c0_52] : memref<128x512xbf16, #tpu.memory_space<vmem>>, vector<128x512xbf16>
    %cst_53 = arith.constant dense<0.000000e+00> : vector<8x512xf32>
    %185 = tpu.matmul %183, %184, %cst_53 {dimension_numbers = #tpu.dot_dimension_numbers<[1], [0], [0], [1], [0, 0, 1, 1], [], []>} : vector<8x128xbf16>, vector<128x512xbf16>, vector<8x512xf32> -> vector<8x512xf32>
    %186 = arith.addf %182, %185 : vector<8x512xf32>
    %187 = vector.extract_strided_slice %186 {offsets = [0, 0], sizes = [8, 384], strides = [1, 1]} : vector<8x512xf32> to vector<8x384xf32>
    %188 = arith.negf %187 : vector<8x384xf32>
    %189 = math.exp %188 : vector<8x384xf32>
    %cst_54 = arith.constant 1.000000e+00 : f32
    %190 = vector.broadcast %cst_54 : f32 to vector<8x384xf32>
    %191 = arith.addf %190, %189 : vector<8x384xf32>
    %192 = arith.divf %190, %191 : vector<8x384xf32>
    %193 = vector.extract_strided_slice %192 {offsets = [0, 0], sizes = [8, 128], strides = [1, 1]} : vector<8x384xf32> to vector<8x128xf32>
    %194 = vector.extract_strided_slice %192 {offsets = [0, 128], sizes = [8, 128], strides = [1, 1]} : vector<8x384xf32> to vector<8x128xf32>
    %195 = vector.extract_strided_slice %192 {offsets = [0, 256], sizes = [8, 128], strides = [1, 1]} : vector<8x384xf32> to vector<8x128xf32>
    %196 = vector.extract_strided_slice %186 {offsets = [0, 384], sizes = [8, 128], strides = [1, 1]} : vector<8x512xf32> to vector<8x128xf32>
    %197 = math.tanh %196 : vector<8x128xf32>
    %198 = arith.mulf %194, %158 : vector<8x128xf32>
    %199 = arith.mulf %193, %197 : vector<8x128xf32>
    %200 = arith.addf %198, %199 : vector<8x128xf32>
    %201 = math.tanh %200 : vector<8x128xf32>
    %202 = arith.mulf %195, %201 : vector<8x128xf32>
    %203 = tpu.concatenate %202, %181 in 1 : vector<8x128xf32>, vector<8x128xf32> -> vector<8x256xf32>
    %204 = arith.truncf %203 : vector<8x256xf32> to vector<8x256xbf16>
    %c0_55 = arith.constant 0 : index
    %c0_56 = arith.constant 0 : index
    %205 = vector.load %arg10[%c0_55, %c0_56] : memref<256x512xbf16, #tpu.memory_space<vmem>>, vector<256x512xbf16>
    %cst_57 = arith.constant dense<0.000000e+00> : vector<8x512xf32>
    %206 = tpu.matmul %204, %205, %cst_57 {dimension_numbers = #tpu.dot_dimension_numbers<[1], [0], [0], [1], [0, 0, 1, 1], [], []>} : vector<8x256xbf16>, vector<256x512xbf16>, vector<8x512xf32> -> vector<8x512xf32>
    %207 = arith.addf %206, %9 : vector<8x512xf32>
    %208 = vector.extract_strided_slice %207 {offsets = [0, 0], sizes = [8, 384], strides = [1, 1]} : vector<8x512xf32> to vector<8x384xf32>
    %209 = arith.negf %208 : vector<8x384xf32>
    %210 = math.exp %209 : vector<8x384xf32>
    %cst_58 = arith.constant 1.000000e+00 : f32
    %211 = vector.broadcast %cst_58 : f32 to vector<8x384xf32>
    %212 = arith.addf %211, %210 : vector<8x384xf32>
    %213 = arith.divf %211, %212 : vector<8x384xf32>
    %214 = vector.extract_strided_slice %213 {offsets = [0, 0], sizes = [8, 128], strides = [1, 1]} : vector<8x384xf32> to vector<8x128xf32>
    %215 = vector.extract_strided_slice %213 {offsets = [0, 128], sizes = [8, 128], strides = [1, 1]} : vector<8x384xf32> to vector<8x128xf32>
    %216 = vector.extract_strided_slice %213 {offsets = [0, 256], sizes = [8, 128], strides = [1, 1]} : vector<8x384xf32> to vector<8x128xf32>
    %217 = vector.extract_strided_slice %207 {offsets = [0, 384], sizes = [8, 128], strides = [1, 1]} : vector<8x512xf32> to vector<8x128xf32>
    %218 = math.tanh %217 : vector<8x128xf32>
    %219 = arith.mulf %215, %179 : vector<8x128xf32>
    %220 = arith.mulf %214, %218 : vector<8x128xf32>
    %221 = arith.addf %219, %220 : vector<8x128xf32>
    %222 = math.tanh %221 : vector<8x128xf32>
    %223 = arith.mulf %216, %222 : vector<8x128xf32>
    %c40 = arith.constant 40 : index
    %c0_59 = arith.constant 0 : index
    %224 = vector.load %arg9[%c40, %c0_59] : memref<64x512xf32, #tpu.memory_space<vmem>>, vector<8x512xf32>
    %225 = arith.truncf %202 : vector<8x128xf32> to vector<8x128xbf16>
    %c0_60 = arith.constant 0 : index
    %c0_61 = arith.constant 0 : index
    %226 = vector.load %arg2[%c0_60, %c0_61] : memref<128x512xbf16, #tpu.memory_space<vmem>>, vector<128x512xbf16>
    %cst_62 = arith.constant dense<0.000000e+00> : vector<8x512xf32>
    %227 = tpu.matmul %225, %226, %cst_62 {dimension_numbers = #tpu.dot_dimension_numbers<[1], [0], [0], [1], [0, 0, 1, 1], [], []>} : vector<8x128xbf16>, vector<128x512xbf16>, vector<8x512xf32> -> vector<8x512xf32>
    %228 = arith.addf %224, %227 : vector<8x512xf32>
    %229 = vector.extract_strided_slice %228 {offsets = [0, 0], sizes = [8, 384], strides = [1, 1]} : vector<8x512xf32> to vector<8x384xf32>
    %230 = arith.negf %229 : vector<8x384xf32>
    %231 = math.exp %230 : vector<8x384xf32>
    %cst_63 = arith.constant 1.000000e+00 : f32
    %232 = vector.broadcast %cst_63 : f32 to vector<8x384xf32>
    %233 = arith.addf %232, %231 : vector<8x384xf32>
    %234 = arith.divf %232, %233 : vector<8x384xf32>
    %235 = vector.extract_strided_slice %234 {offsets = [0, 0], sizes = [8, 128], strides = [1, 1]} : vector<8x384xf32> to vector<8x128xf32>
    %236 = vector.extract_strided_slice %234 {offsets = [0, 128], sizes = [8, 128], strides = [1, 1]} : vector<8x384xf32> to vector<8x128xf32>
    %237 = vector.extract_strided_slice %234 {offsets = [0, 256], sizes = [8, 128], strides = [1, 1]} : vector<8x384xf32> to vector<8x128xf32>
    %238 = vector.extract_strided_slice %228 {offsets = [0, 384], sizes = [8, 128], strides = [1, 1]} : vector<8x512xf32> to vector<8x128xf32>
    %239 = math.tanh %238 : vector<8x128xf32>
    %240 = arith.mulf %236, %200 : vector<8x128xf32>
    %241 = arith.mulf %235, %239 : vector<8x128xf32>
    %242 = arith.addf %240, %241 : vector<8x128xf32>
    %243 = math.tanh %242 : vector<8x128xf32>
    %244 = arith.mulf %237, %243 : vector<8x128xf32>
    %245 = tpu.concatenate %244, %223 in 1 : vector<8x128xf32>, vector<8x128xf32> -> vector<8x256xf32>
    %246 = arith.truncf %245 : vector<8x256xf32> to vector<8x256xbf16>
    %c0_64 = arith.constant 0 : index
    %c0_65 = arith.constant 0 : index
    %247 = vector.load %arg10[%c0_64, %c0_65] : memref<256x512xbf16, #tpu.memory_space<vmem>>, vector<256x512xbf16>
    %cst_66 = arith.constant dense<0.000000e+00> : vector<8x512xf32>
    %248 = tpu.matmul %246, %247, %cst_66 {dimension_numbers = #tpu.dot_dimension_numbers<[1], [0], [0], [1], [0, 0, 1, 1], [], []>} : vector<8x256xbf16>, vector<256x512xbf16>, vector<8x512xf32> -> vector<8x512xf32>
    %249 = arith.addf %248, %9 : vector<8x512xf32>
    %250 = vector.extract_strided_slice %249 {offsets = [0, 0], sizes = [8, 384], strides = [1, 1]} : vector<8x512xf32> to vector<8x384xf32>
    %251 = arith.negf %250 : vector<8x384xf32>
    %252 = math.exp %251 : vector<8x384xf32>
    %cst_67 = arith.constant 1.000000e+00 : f32
    %253 = vector.broadcast %cst_67 : f32 to vector<8x384xf32>
    %254 = arith.addf %253, %252 : vector<8x384xf32>
    %255 = arith.divf %253, %254 : vector<8x384xf32>
    %256 = vector.extract_strided_slice %255 {offsets = [0, 0], sizes = [8, 128], strides = [1, 1]} : vector<8x384xf32> to vector<8x128xf32>
    %257 = vector.extract_strided_slice %255 {offsets = [0, 128], sizes = [8, 128], strides = [1, 1]} : vector<8x384xf32> to vector<8x128xf32>
    %258 = vector.extract_strided_slice %255 {offsets = [0, 256], sizes = [8, 128], strides = [1, 1]} : vector<8x384xf32> to vector<8x128xf32>
    %259 = vector.extract_strided_slice %249 {offsets = [0, 384], sizes = [8, 128], strides = [1, 1]} : vector<8x512xf32> to vector<8x128xf32>
    %260 = math.tanh %259 : vector<8x128xf32>
    %261 = arith.mulf %257, %221 : vector<8x128xf32>
    %262 = arith.mulf %256, %260 : vector<8x128xf32>
    %263 = arith.addf %261, %262 : vector<8x128xf32>
    %264 = math.tanh %263 : vector<8x128xf32>
    %265 = arith.mulf %258, %264 : vector<8x128xf32>
    %c48 = arith.constant 48 : index
    %c0_68 = arith.constant 0 : index
    %266 = vector.load %arg9[%c48, %c0_68] : memref<64x512xf32, #tpu.memory_space<vmem>>, vector<8x512xf32>
    %267 = arith.truncf %244 : vector<8x128xf32> to vector<8x128xbf16>
    %c0_69 = arith.constant 0 : index
    %c0_70 = arith.constant 0 : index
    %268 = vector.load %arg2[%c0_69, %c0_70] : memref<128x512xbf16, #tpu.memory_space<vmem>>, vector<128x512xbf16>
    %cst_71 = arith.constant dense<0.000000e+00> : vector<8x512xf32>
    %269 = tpu.matmul %267, %268, %cst_71 {dimension_numbers = #tpu.dot_dimension_numbers<[1], [0], [0], [1], [0, 0, 1, 1], [], []>} : vector<8x128xbf16>, vector<128x512xbf16>, vector<8x512xf32> -> vector<8x512xf32>
    %270 = arith.addf %266, %269 : vector<8x512xf32>
    %271 = vector.extract_strided_slice %270 {offsets = [0, 0], sizes = [8, 384], strides = [1, 1]} : vector<8x512xf32> to vector<8x384xf32>
    %272 = arith.negf %271 : vector<8x384xf32>
    %273 = math.exp %272 : vector<8x384xf32>
    %cst_72 = arith.constant 1.000000e+00 : f32
    %274 = vector.broadcast %cst_72 : f32 to vector<8x384xf32>
    %275 = arith.addf %274, %273 : vector<8x384xf32>
    %276 = arith.divf %274, %275 : vector<8x384xf32>
    %277 = vector.extract_strided_slice %276 {offsets = [0, 0], sizes = [8, 128], strides = [1, 1]} : vector<8x384xf32> to vector<8x128xf32>
    %278 = vector.extract_strided_slice %276 {offsets = [0, 128], sizes = [8, 128], strides = [1, 1]} : vector<8x384xf32> to vector<8x128xf32>
    %279 = vector.extract_strided_slice %276 {offsets = [0, 256], sizes = [8, 128], strides = [1, 1]} : vector<8x384xf32> to vector<8x128xf32>
    %280 = vector.extract_strided_slice %270 {offsets = [0, 384], sizes = [8, 128], strides = [1, 1]} : vector<8x512xf32> to vector<8x128xf32>
    %281 = math.tanh %280 : vector<8x128xf32>
    %282 = arith.mulf %278, %242 : vector<8x128xf32>
    %283 = arith.mulf %277, %281 : vector<8x128xf32>
    %284 = arith.addf %282, %283 : vector<8x128xf32>
    %285 = math.tanh %284 : vector<8x128xf32>
    %286 = arith.mulf %279, %285 : vector<8x128xf32>
    %287 = tpu.concatenate %286, %265 in 1 : vector<8x128xf32>, vector<8x128xf32> -> vector<8x256xf32>
    %288 = arith.truncf %287 : vector<8x256xf32> to vector<8x256xbf16>
    %c0_73 = arith.constant 0 : index
    %c0_74 = arith.constant 0 : index
    %289 = vector.load %arg10[%c0_73, %c0_74] : memref<256x512xbf16, #tpu.memory_space<vmem>>, vector<256x512xbf16>
    %cst_75 = arith.constant dense<0.000000e+00> : vector<8x512xf32>
    %290 = tpu.matmul %288, %289, %cst_75 {dimension_numbers = #tpu.dot_dimension_numbers<[1], [0], [0], [1], [0, 0, 1, 1], [], []>} : vector<8x256xbf16>, vector<256x512xbf16>, vector<8x512xf32> -> vector<8x512xf32>
    %291 = arith.addf %290, %9 : vector<8x512xf32>
    %292 = vector.extract_strided_slice %291 {offsets = [0, 0], sizes = [8, 384], strides = [1, 1]} : vector<8x512xf32> to vector<8x384xf32>
    %293 = arith.negf %292 : vector<8x384xf32>
    %294 = math.exp %293 : vector<8x384xf32>
    %cst_76 = arith.constant 1.000000e+00 : f32
    %295 = vector.broadcast %cst_76 : f32 to vector<8x384xf32>
    %296 = arith.addf %295, %294 : vector<8x384xf32>
    %297 = arith.divf %295, %296 : vector<8x384xf32>
    %298 = vector.extract_strided_slice %297 {offsets = [0, 0], sizes = [8, 128], strides = [1, 1]} : vector<8x384xf32> to vector<8x128xf32>
    %299 = vector.extract_strided_slice %297 {offsets = [0, 128], sizes = [8, 128], strides = [1, 1]} : vector<8x384xf32> to vector<8x128xf32>
    %300 = vector.extract_strided_slice %297 {offsets = [0, 256], sizes = [8, 128], strides = [1, 1]} : vector<8x384xf32> to vector<8x128xf32>
    %301 = vector.extract_strided_slice %291 {offsets = [0, 384], sizes = [8, 128], strides = [1, 1]} : vector<8x512xf32> to vector<8x128xf32>
    %302 = math.tanh %301 : vector<8x128xf32>
    %303 = arith.mulf %299, %263 : vector<8x128xf32>
    %304 = arith.mulf %298, %302 : vector<8x128xf32>
    %305 = arith.addf %303, %304 : vector<8x128xf32>
    %306 = math.tanh %305 : vector<8x128xf32>
    %307 = arith.mulf %300, %306 : vector<8x128xf32>
    %c56 = arith.constant 56 : index
    %c0_77 = arith.constant 0 : index
    %308 = vector.load %arg9[%c56, %c0_77] : memref<64x512xf32, #tpu.memory_space<vmem>>, vector<8x512xf32>
    %309 = arith.truncf %286 : vector<8x128xf32> to vector<8x128xbf16>
    %c0_78 = arith.constant 0 : index
    %c0_79 = arith.constant 0 : index
    %310 = vector.load %arg2[%c0_78, %c0_79] : memref<128x512xbf16, #tpu.memory_space<vmem>>, vector<128x512xbf16>
    %cst_80 = arith.constant dense<0.000000e+00> : vector<8x512xf32>
    %311 = tpu.matmul %309, %310, %cst_80 {dimension_numbers = #tpu.dot_dimension_numbers<[1], [0], [0], [1], [0, 0, 1, 1], [], []>} : vector<8x128xbf16>, vector<128x512xbf16>, vector<8x512xf32> -> vector<8x512xf32>
    %312 = arith.addf %308, %311 : vector<8x512xf32>
    %313 = vector.extract_strided_slice %312 {offsets = [0, 0], sizes = [8, 384], strides = [1, 1]} : vector<8x512xf32> to vector<8x384xf32>
    %314 = arith.negf %313 : vector<8x384xf32>
    %315 = math.exp %314 : vector<8x384xf32>
    %cst_81 = arith.constant 1.000000e+00 : f32
    %316 = vector.broadcast %cst_81 : f32 to vector<8x384xf32>
    %317 = arith.addf %316, %315 : vector<8x384xf32>
    %318 = arith.divf %316, %317 : vector<8x384xf32>
    %319 = vector.extract_strided_slice %318 {offsets = [0, 0], sizes = [8, 128], strides = [1, 1]} : vector<8x384xf32> to vector<8x128xf32>
    %320 = vector.extract_strided_slice %318 {offsets = [0, 128], sizes = [8, 128], strides = [1, 1]} : vector<8x384xf32> to vector<8x128xf32>
    %321 = vector.extract_strided_slice %318 {offsets = [0, 256], sizes = [8, 128], strides = [1, 1]} : vector<8x384xf32> to vector<8x128xf32>
    %322 = vector.extract_strided_slice %312 {offsets = [0, 384], sizes = [8, 128], strides = [1, 1]} : vector<8x512xf32> to vector<8x128xf32>
    %323 = math.tanh %322 : vector<8x128xf32>
    %324 = arith.mulf %320, %284 : vector<8x128xf32>
    %325 = arith.mulf %319, %323 : vector<8x128xf32>
    %326 = arith.addf %324, %325 : vector<8x128xf32>
    %327 = math.tanh %326 : vector<8x128xf32>
    %328 = arith.mulf %321, %327 : vector<8x128xf32>
    %329 = tpu.concatenate %328, %307 in 1 : vector<8x128xf32>, vector<8x128xf32> -> vector<8x256xf32>
    %330 = arith.truncf %329 : vector<8x256xf32> to vector<8x256xbf16>
    %c0_82 = arith.constant 0 : index
    %c0_83 = arith.constant 0 : index
    %331 = vector.load %arg10[%c0_82, %c0_83] : memref<256x512xbf16, #tpu.memory_space<vmem>>, vector<256x512xbf16>
    %cst_84 = arith.constant dense<0.000000e+00> : vector<8x512xf32>
    %332 = tpu.matmul %330, %331, %cst_84 {dimension_numbers = #tpu.dot_dimension_numbers<[1], [0], [0], [1], [0, 0, 1, 1], [], []>} : vector<8x256xbf16>, vector<256x512xbf16>, vector<8x512xf32> -> vector<8x512xf32>
    %333 = arith.addf %332, %9 : vector<8x512xf32>
    %334 = vector.extract_strided_slice %333 {offsets = [0, 0], sizes = [8, 384], strides = [1, 1]} : vector<8x512xf32> to vector<8x384xf32>
    %335 = arith.negf %334 : vector<8x384xf32>
    %336 = math.exp %335 : vector<8x384xf32>
    %cst_85 = arith.constant 1.000000e+00 : f32
    %337 = vector.broadcast %cst_85 : f32 to vector<8x384xf32>
    %338 = arith.addf %337, %336 : vector<8x384xf32>
    %339 = arith.divf %337, %338 : vector<8x384xf32>
    %340 = vector.extract_strided_slice %339 {offsets = [0, 0], sizes = [8, 128], strides = [1, 1]} : vector<8x384xf32> to vector<8x128xf32>
    %341 = vector.extract_strided_slice %339 {offsets = [0, 128], sizes = [8, 128], strides = [1, 1]} : vector<8x384xf32> to vector<8x128xf32>
    %342 = vector.extract_strided_slice %339 {offsets = [0, 256], sizes = [8, 128], strides = [1, 1]} : vector<8x384xf32> to vector<8x128xf32>
    %343 = vector.extract_strided_slice %333 {offsets = [0, 384], sizes = [8, 128], strides = [1, 1]} : vector<8x512xf32> to vector<8x128xf32>
    %344 = math.tanh %343 : vector<8x128xf32>
    %345 = arith.mulf %341, %305 : vector<8x128xf32>
    %346 = arith.mulf %340, %344 : vector<8x128xf32>
    %347 = arith.addf %345, %346 : vector<8x128xf32>
    %348 = math.tanh %347 : vector<8x128xf32>
    %349 = arith.mulf %342, %348 : vector<8x128xf32>
    %c0_86 = arith.constant 0 : index
    %c0_87 = arith.constant 0 : index
    %350 = vector.load %arg6[%c0_86, %c0_87] : memref<1x128xf32, #tpu.memory_space<vmem>>, vector<1x128xf32>
    %351 = vector.broadcast %350 : vector<1x128xf32> to vector<8x128xf32>
    %352 = arith.mulf %349, %351 : vector<8x128xf32>
    %cst_88 = arith.constant dense<0.000000e+00> : vector<8xf32>
    %353 = vector.multi_reduction <add>, %352, %cst_88 [1] : vector<8x128xf32> to vector<8xf32>
    %354 = vector.shape_cast %353 : vector<8xf32> to vector<8x1xf32>
    %c0_89 = arith.constant 0 : index
    %c0_90 = arith.constant 0 : index
    %355 = vector.load %arg7[%c0_89, %c0_90] : memref<1x1xf32, #tpu.memory_space<vmem>>, vector<1x1xf32>
    %356 = vector.broadcast %355 : vector<1x1xf32> to vector<8x1xf32>
    %357 = arith.addf %354, %356 : vector<8x1xf32>
    %358 = arith.negf %357 : vector<8x1xf32>
    %359 = math.exp %358 : vector<8x1xf32>
    %cst_91 = arith.constant 1.000000e+00 : f32
    %360 = vector.broadcast %cst_91 : f32 to vector<8x1xf32>
    %361 = arith.addf %360, %359 : vector<8x1xf32>
    %362 = arith.divf %360, %361 : vector<8x1xf32>
    %363 = vector.shape_cast %362 : vector<8x1xf32> to vector<8x1xf32>
    %364 = vector.broadcast %363 : vector<8x1xf32> to vector<8x128xf32>
    %c0_92 = arith.constant 0 : index
    %c0_93 = arith.constant 0 : index
    %365 = vector.load %arg8[%c0_92, %c0_93] : memref<8x128xf32, #tpu.memory_space<vmem>>, vector<8x128xf32>
    tpu.vector_store %arg8[%c0_92, %c0_93], %364 {strides = array<i32>} : memref<8x128xf32, #tpu.memory_space<vmem>>, vector<8x128xf32>,
    return
  }
}

</mosaic_0001>

<bundles_post_ra>
// kernel: fight_lstm_forward.1
= control target key start
LH: loop header
LB: loop body
LE: loop exit
PB: predicated region body
PF: predicated region fallthrough
CT: control target
= control target key end

     0   :  { %s4792_s0 = inlined_call_operand.vmem [shape: bf16[64,16], index: 0, kind: input, shape index: {}]   ;;  %s4793_s1 = inlined_call_operand.vmem [shape: bf16[16,512], index: 1, kind: input, shape index: {}]   ;;  %s4794_s2 = inlined_call_operand.hbm [shape: bf16[128,512], index: 2, kind: input, shape index: {}]   ;;  %s4795_s3 = inlined_call_operand.vmem [shape: f32[1,512], index: 3, kind: input, shape index: {}]   ;;  %s4796_s4 = inlined_call_operand.hbm [shape: bf16[256,512], index: 4, kind: input, shape index: {}]   ;;  %s4797_s5 = inlined_call_operand.vmem [shape: f32[1,512], index: 5, kind: input, shape index: {}]   ;;  %s4798_s6 = inlined_call_operand.vmem [shape: f32[1,128], index: 6, kind: input, shape index: {}]   ;;  %s4799_s7 = inlined_call_operand.<no memory space> [shape: f32[1,1], index: 7, kind: input, shape index: {}]   ;;  %s4800_s8 = inlined_call_operand.vmem [shape: f32[8,128], index: 8, kind: output, shape index: {}]  }
   0x1   :  { %v13_v0 = vstv %s4799_s7 }
   0x2   :  { %14 = vst [vmem:[#allocation5] sm:$0x1] %v13_v0 }
   0x3   :  { %15 = vsyncpa [#allocation7], 0  ;;  %s3095_s29 = smov [#allocation6]   ;;  %s3069_s11 = scalar_lea.hbm %s4794_s2, 4096 }
   0x4   :  { %s25_s30 = sshll.u32 %s3095_s29, 4  ;;  %p3070_p0 = scmp.ne.s32.totalorder %s4794_s2, %s3069_s11  ;;  %s26_s30 = int_to_ptr.vmem [resolvable:$true] %s25_s30 }
   0x5   :  { %p3073_p1 = scmp.lt.u32.totalorder %s3069_s11, %s4794_s2 }
   0x7   :  { %p3075_p2 = pnand %p3073_p1, %p3070_p0 }
   0x9   :  { %3078 = shalt.err (!%p3075_p2)
}
   0xa   :  { %s3079_s7 = scalar_lea.vmem %s26_s30, 4096  ;;  %p3084_p4 = scmp.lt.s32.totalorder %s26_s30, %s26_s30 }
   0xb   :  { %p3080_p3 = scmp.ne.s32.totalorder %s26_s30, %s3079_s7  ;;  %p3085_p5 = scmp.lt.s32.totalorder %s3079_s7, %s3079_s7 }
   0xd   :  { %p3086_p6 = por %p3085_p5, %p3084_p4 }
   0xf   :  { %p3087_p7 = pnand %p3086_p6, %p3080_p3 }
  0x11   :  { %3090 = shalt.err (!%p3087_p7)
}
  0x12   :  { %s3096_s16 = smov 256   ;;  %s3097_s17 = smov 16  }
  0x13   :  { %31 = dma.hbm_to_vmem [thread:$0]  %s4794_s2, 4096, %s26_s30, [#allocation7], %s3096_s16, %s3096_s16, %s3097_s17  }
  0x14   :  { %3091 = dma.done.wait [#allocation7], 4096  }
  0x15   :  { %3092 = vsyncadd [#allocation7], 4294963200  ;;  %s48_s20 = sld [smem:[#allocation0]]   ;;  %s3098_s21 = smov 512   ;;  %v4801_v1 = vmov 0   ;;  %vm153_vm0 = vcmask 130048   ;;  %v93_v10 = vlaneseq }
  0x16   :  { %60 = sst [smem:[#allocation9]] %s3098_s21  ;;  %198 = vmatprep.mubr.bf16.mxu0 %v4801_v1  ;;  %271 = vmatprep.mubr.bf16.mxu1 %v4801_v1  ;;  %s3100_s22 = smov 4  }
  0x17   :  { %62 = sst [smem:[#allocation9 + $0x1]] %s3098_s21  ;;  %s3101_s23 = smov 64   ;;  %v94_v11 = vshrl.u32 %v93_v10, 7 }
  0x18   :  { %64 = sst [smem:[#allocation9 + $0x2]] %s3100_s22  ;;  %s3102_s24 = smov 128  }
  0x19   :  { %66 = sst [smem:[#allocation9 + $0x3]] %s3101_s23  ;;  %s3103_s25 = smov 2   ;;  %v95_v12 = vsub.s32 0, %v94_v11  ;;  %v103_v13 = vsub.s32 2, %v94_v11  ;;  %v99_v14 = vsub.s32 1, %v94_v11  ;;  %v107_v15 = vsub.s32 3, %v94_v11 }
  0x1a   :  { %68 = sst [smem:[#allocation9 + $0x4]] %s3102_s24  ;;  %s3104_s2 = smov [#allocation3]  }
  0x1b   :  { %70 = sst [smem:[#allocation9 + $0x5]] %s3103_s25  ;;  %s56_s26 = sshll.u32 %s3104_s2, 4  ;;  %s57_s26 = int_to_ptr.vmem [resolvable:$true] %s56_s26 }
  0x1c   :  { %s2443_s27 = sshll.u32 %s48_s20, 26  ;;  %72 = sst [smem:[#allocation9 + $0x6]] %s3096_s16 }
  0x1d   :  { %s2444_s28 = sadd.s32 134217728, %s2443_s27  ;;  %74 = sst [smem:[#allocation9 + $0x7]] %s3101_s23 }
  0x1e   :  { %76 = sst [smem:[#allocation9 + $0x8]] %s3100_s22  ;;  %s3105_s29 = smov [#allocation4]  }
  0x1f   :  { %s3106_s30 = smov [#allocation8]  }
  0x20   :  { %78 = dma.general %s4796_s4, 8192, %s57_s26, %s3105_s29, %s3106_s30, [#allocation9], %s2444_s28, 0  }
  0x21   :  { %v2558_v2 = vld [vmem:[%s4793_s1 + $0x4] ss:$16 sps:$4 sm:$0xff]   ;;  %v2560_v3 = vld [vmem:[%s4793_s1 + $0xc] ss:$16 sps:$4 sm:$0xff]   ;;  %v2562_v4 = vld [vmem:[%s4793_s1] ss:$16 sps:$4 sm:$0xff]  }
  0x22   :  { %166 = vmatprep.subr.bf16.mxu0 %v2558_v2  ;;  %v2563_v5 = vld [vmem:[%s4793_s1 + $0x8] ss:$16 sps:$4 sm:$0xff]   ;;  %239 = vmatprep.subr.bf16.mxu1 %v2560_v3  ;;  %v2564_v6 = vld [vmem:[%s4792_s0] sm:$0xff]   ;;  %v2566_v8 = vld [vmem:[%s4792_s0 + $0x10] sm:$0xff]  }
  0x23   :  { %167 = vmatpush1.bf16.msra.mxu0 %v2562_v4  ;;  %240 = vmatpush1.bf16.msra.mxu1 %v2563_v5  ;;  %v2565_v7 = vld [vmem:[%s4792_s0 + $0x8] sm:$0xff]   ;;  %v2567_v9 = vld [vmem:[%s4792_s0 + $0x18] sm:$0xff]   ;;  %v344_v16 = vld [vmem:[%s4797_s5] sm:$0xf] }
  0x24   :  { %v3214_v17 = vrot.slane %v344_v16, %v95_v12  ;;  %v3216_v18 = vrot.slane %v344_v16, %v103_v13  ;;  %v3218_v19 = vrot.slane %v344_v16, %v99_v14  ;;  %v3220_v20 = vrot.slane %v344_v16, %v107_v15  ;;  %v91_v21 = vld [vmem:[%s4795_s3] sm:$0xf] }
  0x25   :  { %v96_v22 = vrot.slane %v91_v21, %v95_v12  ;;  %v104_v23 = vrot.slane %v91_v21, %v103_v13  ;;  %v3225_v24 = vrot.slane %v91_v21, %v99_v14  ;;  %v3227_v25 = vrot.slane %v91_v21, %v107_v15 }
  0x26   :  { %2453 = vmatmul.mubr.msk.bf16.vlgmr.msra.gmra.mrb[0].mxu0 %vm153_vm0, %v2564_v6  ;;  %2457 = vmatmul.mubr.msk.bf16.vlgmr.msra.gmra.mrb[0].mxu1 %vm153_vm0, %v2564_v6  ;;  %5080 = vst [vmem:[#allocation12_spill] sm:$0xff] %v3214_v17  ;;  %5081 = vst [vmem:[#allocation13_spill] sm:$0xff] %v3216_v18 }
  0x27   :  { %208 = vmatprep.mubr.bf16.mxu0 %v4801_v1  ;;  %281 = vmatprep.mubr.bf16.mxu1 %v4801_v1  ;;  %5082 = vst [vmem:[#allocation14_spill] sm:$0xff] %v3218_v19  ;;  %5083 = vst [vmem:[#allocation15_spill] sm:$0xff] %v3220_v20 }
  0x2e   :  { %2454 = vmatmul.mubr.msk.bf16.gmra.mrb[4].mxu0 %vm153_vm0, %v2565_v7  ;;  %2458 = vmatmul.mubr.msk.bf16.gmra.mrb[4].mxu1 %vm153_vm0, %v2565_v7 }
  0x2f   :  { %218 = vmatprep.mubr.bf16.mxu0 %v4801_v1  ;;  %291 = vmatprep.mubr.bf16.mxu1 %v4801_v1 }
  0x36   :  { %2455 = vmatmul.mubr.msk.bf16.gmra.mrb[8].mxu0 %vm153_vm0, %v2566_v8  ;;  %2459 = vmatmul.mubr.msk.bf16.gmra.mrb[8].mxu1 %vm153_vm0, %v2566_v8 }
  0x37   :  { %228 = vmatprep.mubr.bf16.mxu0 %v4801_v1  ;;  %301 = vmatprep.mubr.bf16.mxu1 %v4801_v1 }
  0x3e   :  { %2456 = vmatmul.mubr.msk.bf16.gmra.mrb[12].mxu0 %vm153_vm0, %v2567_v9  ;;  %2460 = vmatmul.mubr.msk.bf16.gmra.mrb[12].mxu1 %vm153_vm0, %v2567_v9 }
  0xf9   :  { %v200_v26 = vpop.f32.mrb[0].mxu0  ;;  %v273_v27 = vpop.f32.mrb[0].mxu1 }
  0xfa   :  { %v3229_v28 = vadd.f32 %v200_v26, %v96_v22  ;;  %v3231_v29 = vadd.f32 %v273_v27, %v104_v23  ;;  %v202_v30 = vpop.f32.mrb[1].mxu0  ;;  %v275_v31 = vpop.f32.mrb[1].mxu1 }
  0xfb   :  { %v3234_v32 = vadd.f32 %v202_v30, %v3225_v24  ;;  %v3237_v33 = vadd.f32 %v275_v31, %v3227_v25  ;;  %v204_v34 = vpop.f32.mrb[2].mxu0  ;;  %v277_v35 = vpop.f32.mrb[2].mxu1 }
  0xfc   :  { %v3239_v36 = vadd.f32 %v204_v34, %v96_v22  ;;  %v3241_v37 = vadd.f32 %v277_v35, %v104_v23  ;;  %v206_v38 = vpop.f32.mrb[3].mxu0  ;;  %v279_v39 = vpop.f32.mrb[3].mxu1 }
  0xfd   :  { %v3244_v40 = vadd.f32 %v206_v38, %v3225_v24  ;;  %v3247_v41 = vadd.f32 %v279_v39, %v3227_v25 }
  0xfe   :  { %5084 = vst [vmem:[#allocation16_spill] sm:$0xff] %v3239_v36  ;;  %5085 = vst [vmem:[#allocation17_spill] sm:$0xff] %v3241_v37 }
  0xff   :  { %5086 = vst [vmem:[#allocation18_spill] sm:$0xff] %v3244_v40  ;;  %5087 = vst [vmem:[#allocation19_spill] sm:$0xff] %v3247_v41 }
 0x101   :  { %v210_v42 = vpop.f32.mrb[4].mxu0  ;;  %v283_v43 = vpop.f32.mrb[4].mxu1 }
 0x102   :  { %v3249_v44 = vadd.f32 %v210_v42, %v96_v22  ;;  %v3251_v45 = vadd.f32 %v283_v43, %v104_v23  ;;  %v212_v46 = vpop.f32.mrb[5].mxu0  ;;  %v285_v47 = vpop.f32.mrb[5].mxu1 }
 0x103   :  { %v3254_v48 = vadd.f32 %v212_v46, %v3225_v24  ;;  %v3257_v49 = vadd.f32 %v285_v47, %v3227_v25  ;;  %v214_v50 = vpop.f32.mrb[6].mxu0  ;;  %v287_v51 = vpop.f32.mrb[6].mxu1 }
 0x104   :  { %5088 = vst [vmem:[#allocation20_spill] sm:$0xff] %v3249_v44  ;;  %5089 = vst [vmem:[#allocation21_spill] sm:$0xff] %v3251_v45  ;;  %v3259_v52 = vadd.f32 %v214_v50, %v96_v22  ;;  %v3261_v53 = vadd.f32 %v287_v51, %v104_v23  ;;  %v216_v54 = vpop.f32.mrb[7].mxu0  ;;  %v289_v55 = vpop.f32.mrb[7].mxu1 }
 0x105   :  { %5090 = vst [vmem:[#allocation22_spill] sm:$0xff] %v3254_v48  ;;  %5091 = vst [vmem:[#allocation23_spill] sm:$0xff] %v3257_v49  ;;  %v3264_v56 = vadd.f32 %v216_v54, %v3225_v24  ;;  %v3267_v57 = vadd.f32 %v289_v55, %v3227_v25 }
 0x106   :  { %5092 = vst [vmem:[#allocation24_spill] sm:$0xff] %v3259_v52  ;;  %5093 = vst [vmem:[#allocation25_spill] sm:$0xff] %v3261_v53 }
 0x107   :  { %5094 = vst [vmem:[#allocation26_spill] sm:$0xff] %v3264_v56  ;;  %5095 = vst [vmem:[#allocation27_spill] sm:$0xff] %v3267_v57 }
 0x109   :  { %v220_v58 = vpop.f32.mrb[8].mxu0  ;;  %v293_v59 = vpop.f32.mrb[8].mxu1 }
 0x10a   :  { %v3269_v60 = vadd.f32 %v220_v58, %v96_v22  ;;  %v3271_v61 = vadd.f32 %v293_v59, %v104_v23  ;;  %v222_v62 = vpop.f32.mrb[9].mxu0  ;;  %v295_v63 = vpop.f32.mrb[9].mxu1 }
 0x10b   :  { %v3274_v0 = vadd.f32 %v222_v62, %v3225_v24  ;;  %v3277_v2 = vadd.f32 %v295_v63, %v3227_v25  ;;  %v224_v3 = vpop.f32.mrb[10].mxu0  ;;  %v297_v4 = vpop.f32.mrb[10].mxu1 }
 0x10c   :  { %5096 = vst [vmem:[#allocation28_spill] sm:$0xff] %v3269_v60  ;;  %5097 = vst [vmem:[#allocation29_spill] sm:$0xff] %v3271_v61  ;;  %v3279_v5 = vadd.f32 %v224_v3, %v96_v22  ;;  %v3281_v6 = vadd.f32 %v297_v4, %v104_v23  ;;  %v226_v7 = vpop.f32.mrb[11].mxu0  ;;  %v299_v8 = vpop.f32.mrb[11].mxu1 }
 0x10d   :  { %5098 = vst [vmem:[#allocation30_spill] sm:$0xff] %v3274_v0  ;;  %5099 = vst [vmem:[#allocation31_spill] sm:$0xff] %v3277_v2  ;;  %v3284_v9 = vadd.f32 %v226_v7, %v3225_v24  ;;  %v3287_v10 = vadd.f32 %v299_v8, %v3227_v25 }
 0x10e   :  { %5100 = vst [vmem:[#allocation32_spill] sm:$0xff] %v3279_v5  ;;  %5101 = vst [vmem:[#allocation33_spill] sm:$0xff] %v3281_v6 }
 0x10f   :  { %5102 = vst [vmem:[#allocation34_spill] sm:$0xff] %v3284_v9  ;;  %5103 = vst [vmem:[#allocation35_spill] sm:$0xff] %v3287_v10 }
 0x111   :  { %v230_v11 = vpop.f32.mrb[12].mxu0  ;;  %v303_v12 = vpop.f32.mrb[12].mxu1 }
 0x112   :  { %v3289_v13 = vadd.f32 %v230_v11, %v96_v22  ;;  %v3291_v14 = vadd.f32 %v303_v12, %v104_v23  ;;  %v232_v15 = vpop.f32.mrb[13].mxu0  ;;  %v305_v16 = vpop.f32.mrb[13].mxu1 }
 0x113   :  { %v3294_v21 = vadd.f32 %v232_v15, %v3225_v24  ;;  %v3297_v26 = vadd.f32 %v305_v16, %v3227_v25  ;;  %v234_v27 = vpop.f32.mrb[14].mxu0  ;;  %v307_v30 = vpop.f32.mrb[14].mxu1 }
 0x114   :  { %5104 = vst [vmem:[#allocation36_spill] sm:$0xff] %v3289_v13  ;;  %5105 = vst [vmem:[#allocation37_spill] sm:$0xff] %v3291_v14  ;;  %v3299_v31 = vadd.f32 %v234_v27, %v96_v22  ;;  %v3301_v34 = vadd.f32 %v307_v30, %v104_v23  ;;  %v236_v35 = vpop.f32.mrb[15].mxu0  ;;  %v309_v38 = vpop.f32.mrb[15].mxu1 }
 0x115   :  { %5106 = vst [vmem:[#allocation38_spill] sm:$0xff] %v3294_v21  ;;  %5107 = vst [vmem:[#allocation39_spill] sm:$0xff] %v3297_v26  ;;  %v3304_v39 = vadd.f32 %v236_v35, %v3225_v24  ;;  %v3307_v42 = vadd.f32 %v309_v38, %v3227_v25 }
 0x116   :  { %5108 = vst [vmem:[#allocation40_spill] sm:$0xff] %v3299_v31  ;;  %5109 = vst [vmem:[#allocation41_spill] sm:$0xff] %v3301_v34 }
 0x117   :  { %5110 = vst [vmem:[#allocation42_spill] sm:$0xff] %v3304_v39  ;;  %5111 = vst [vmem:[#allocation43_spill] sm:$0xff] %v3307_v42 }
 0x118   :  { %3093 = dma.done.wait [#allocation4], 8192 }
 0x119   :  { %3094 = vsyncadd [#allocation4], 4294959104  ;;  %598 = vmatprep.mubr.bf16.mxu0 %v4801_v1  ;;  %639 = vmatprep.mubr.bf16.mxu1 %v4801_v1  ;;  %v3312_v22 = vld [vmem:[#allocation6 + $0x4] ss:$16 sps:$4 sm:$0xff]   ;;  %v3314_v23 = vld [vmem:[#allocation6] ss:$16 sps:$4 sm:$0xff]  }
 0x11a   :  { %2568 = vset.pattern.permute.xlu0 %v4801_v1  ;;  %5112 = vst [vmem:[#allocation44_spill] sm:$0xff] %v3312_v22  ;;  %566 = vmatprep.subr.bf16.mxu0 %v3312_v22  ;;  %v3317_v43 = vld [vmem:[#allocation6 + $0x24] ss:$16 sps:$4 sm:$0xff]   ;;  %v3320_v24 = vld [vmem:[#allocation6 + $0x20] ss:$16 sps:$4 sm:$0xff]   ;;  %v5114_v13 = vmov 0  }
 0x11b   :  { %567 = vmatpush1.bf16.msra.mxu0 %v3314_v23  ;;  %v3323_v25 = vld [vmem:[#allocation6 + $0x44] ss:$16 sps:$4 sm:$0xff]   ;;  %v3325_v46 = vld [vmem:[#allocation6 + $0xc] ss:$16 sps:$4 sm:$0xff]   ;;  %v3327_v47 = vld [vmem:[#allocation6 + $0x8] ss:$16 sps:$4 sm:$0xff]  }
 0x11c   :  { %568 = vmatprep.subr.bf16.mxu0 %v3317_v43  ;;  %5113 = vst [vmem:[#allocation45_spill] sm:$0xff] %v3325_v46  ;;  %v3330_v50 = vld [vmem:[#allocation6 + $0x40] ss:$16 sps:$4 sm:$0xff]   ;;  %607 = vmatprep.subr.bf16.mxu1 %v3325_v46  ;;  %v3334_v51 = vld [vmem:[#allocation6 + $0x64] ss:$16 sps:$4 sm:$0xff]  }
 0x11d   :  { %608 = vmatpush1.bf16.msra.mxu1 %v3327_v47  ;;  %v3337_v54 = vld [vmem:[#allocation6 + $0x2c] ss:$16 sps:$4 sm:$0xff]   ;;  %v3339_v55 = vld [vmem:[#allocation6 + $0x28] ss:$16 sps:$4 sm:$0xff]   ;;  %v3343_v58 = vld [vmem:[#allocation6 + $0x60] ss:$16 sps:$4 sm:$0xff]  }
 0x11e   :  { %609 = vmatprep.subr.bf16.mxu1 %v3337_v54  ;;  %v3345_v59 = vld [vmem:[#allocation6 + $0x84] ss:$16 sps:$4 sm:$0xff]   ;;  %v3347_v62 = vld [vmem:[#allocation6 + $0x4c] ss:$16 sps:$4 sm:$0xff]   ;;  %v3351_v63 = vld [vmem:[#allocation6 + $0x48] ss:$16 sps:$4 sm:$0xff]  }
 0x11f   :  { %569 = vmatpush1.bf16.msra.mxu0 %v3320_v24  ;;  %v3354_v3 = vld [vmem:[#allocation6 + $0x6c] ss:$16 sps:$4 sm:$0xff]   ;;  %v3357_v4 = vld [vmem:[#allocation6 + $0x80] ss:$16 sps:$4 sm:$0xff]   ;;  %v3360_v7 = vld [vmem:[#allocation6 + $0xa4] ss:$16 sps:$4 sm:$0xff]  }
 0x120   :  { %570 = vmatprep.subr.bf16.mxu0 %v3323_v25  ;;  %v3363_v8 = vld [vmem:[#allocation6 + $0x68] ss:$16 sps:$4 sm:$0xff]   ;;  %v3366_v11 = vld [vmem:[#allocation6 + $0x8c] ss:$16 sps:$4 sm:$0xff]   ;;  %v3369_v12 = vld [vmem:[#allocation6 + $0xa0] ss:$16 sps:$4 sm:$0xff]  }
 0x121   :  { %610 = vmatpush1.bf16.msra.mxu1 %v3339_v55  ;;  %v3371_v15 = vld [vmem:[#allocation6 + $0xc4] ss:$16 sps:$4 sm:$0xff]   ;;  %v3375_v16 = vld [vmem:[#allocation6 + $0x88] ss:$16 sps:$4 sm:$0xff]   ;;  %v3378_v27 = vld [vmem:[#allocation6 + $0xac] ss:$16 sps:$4 sm:$0xff]  }
 0x122   :  { %611 = vmatprep.subr.bf16.mxu1 %v3347_v62  ;;  %v3381_v30 = vld [vmem:[#allocation6 + $0xc0] ss:$16 sps:$4 sm:$0xff]   ;;  %v3384_v35 = vld [vmem:[#allocation6 + $0xe4] ss:$16 sps:$4 sm:$0xff]   ;;  %v3387_v38 = vld [vmem:[#allocation6 + $0xa8] ss:$16 sps:$4 sm:$0xff]  }
 0x123   :  { %571 = vmatpush1.bf16.msra.mxu0 %v3330_v50  ;;  %v3390_v1 = vld [vmem:[#allocation6 + $0xcc] ss:$16 sps:$4 sm:$0xff]   ;;  %v3393_v42 = vld [vmem:[#allocation6 + $0xe0] ss:$16 sps:$4 sm:$0xff]   ;;  %v3397_v34 = vld [vmem:[#allocation6 + $0xc8] ss:$16 sps:$4 sm:$0xff]  }
 0x124   :  { %572 = vmatprep.subr.bf16.mxu0 %v3334_v51  ;;  %v3400_v39 = vld [vmem:[#allocation6 + $0xec] ss:$16 sps:$4 sm:$0xff]   ;;  %v3406_v26 = vld [vmem:[#allocation6 + $0xe8] ss:$16 sps:$4 sm:$0xff]  }
 0x125   :  { %612 = vmatpush1.bf16.msra.mxu1 %v3351_v63  ;;  %v3402_v31 = vld [vmem:[#allocation3 + $0x8] sm:$0xff]  ;;  %v3409_v14 = vld [vmem:[#allocation3] sm:$0xff]  ;;  %v3415_v10 = vld [vmem:[#allocation3 + $0x18] sm:$0xff] }
 0x126   :  { %613 = vmatprep.subr.bf16.mxu1 %v3354_v3  ;;  %v3412_v21 = vld [vmem:[#allocation3 + $0x28] sm:$0xff]  ;;  %v3420_v6 = vld [vmem:[#allocation3 + $0x20] sm:$0xff]  ;;  %v3423_v9 = vld [vmem:[#allocation3 + $0x10] sm:$0xff] }
 0x127   :  { %573 = vmatpush1.bf16.msra.mxu0 %v3343_v58  ;;  %v3425_v5 = vld [vmem:[#allocation3 + $0x48] sm:$0xff]  ;;  %v3427_v2 = vld [vmem:[#allocation3 + $0x38] sm:$0xff]  ;;  %v3433_v61 = vld [vmem:[#allocation3 + $0x40] sm:$0xff] }
 0x128   :  { %574 = vmatprep.subr.bf16.mxu0 %v3345_v59  ;;  %5115 = vst [vmem:[#allocation46_spill] sm:$0xff] %v3433_v61  ;;  %v3436_v0 = vld [vmem:[#allocation3 + $0x30] sm:$0xff]  ;;  %v3438_v60 = vld [vmem:[#allocation3 + $0x68] sm:$0xff]  ;;  %v3440_v57 = vld [vmem:[#allocation3 + $0x58] sm:$0xff] }
 0x129   :  { %614 = vmatpush1.bf16.msra.mxu1 %v3363_v8  ;;  %5116 = vst [vmem:[#allocation47_spill] sm:$0xff] %v3438_v60  ;;  %v3445_v53 = vld [vmem:[#allocation3 + $0x60] sm:$0xff]  ;;  %v3448_v56 = vld [vmem:[#allocation3 + $0x50] sm:$0xff]  ;;  %v3450_v52 = vld [vmem:[#allocation3 + $0x78] sm:$0xff] }
 0x12a   :  { %615 = vmatprep.subr.bf16.mxu1 %v3366_v11  ;;  %5117 = vst [vmem:[#allocation48_spill] sm:$0xff] %v3445_v53  ;;  %5118 = vst [vmem:[#allocation49_spill] sm:$0xff] %v3448_v56  ;;  %v3455_v49 = vld [vmem:[#allocation3 + $0x70] sm:$0xff]  ;;  %v3458_v45 = vld [vmem:[#allocation3 + $0x88] sm:$0xff] }
 0x12b   :  { %575 = vmatpush1.bf16.msra.mxu0 %v3357_v4  ;;  %5119 = vst [vmem:[#allocation50_spill] sm:$0xff] %v3450_v52  ;;  %5120 = vst [vmem:[#allocation51_spill] sm:$0xff] %v3455_v49  ;;  %v3460_v48 = vld [vmem:[#allocation3 + $0x98] sm:$0xff]  ;;  %v3464_v44 = vld [vmem:[#allocation3 + $0x80] sm:$0xff] }
 0x12c   :  { %576 = vmatprep.subr.bf16.mxu0 %v3360_v7  ;;  %5121 = vst [vmem:[#allocation52_spill] sm:$0xff] %v3458_v45  ;;  %5122 = vst [vmem:[#allocation53_spill] sm:$0xff] %v3460_v48  ;;  %v3466_v41 = vld [vmem:[#allocation3 + $0x90] sm:$0xff]  ;;  %v3470_v37 = vld [vmem:[#allocation3 + $0xa8] sm:$0xff] }
 0x12d   :  { %616 = vmatpush1.bf16.msra.mxu1 %v3375_v16  ;;  %5123 = vst [vmem:[#allocation54_spill] sm:$0xff] %v3464_v44  ;;  %5124 = vst [vmem:[#allocation55_spill] sm:$0xff] %v3466_v41  ;;  %v3472_v40 = vld [vmem:[#allocation3 + $0xb8] sm:$0xff]  ;;  %v3476_v36 = vld [vmem:[#allocation3 + $0xa0] sm:$0xff] }
 0x12e   :  { %617 = vmatprep.subr.bf16.mxu1 %v3378_v27  ;;  %5125 = vst [vmem:[#allocation56_spill] sm:$0xff] %v3470_v37  ;;  %5126 = vst [vmem:[#allocation57_spill] sm:$0xff] %v3472_v40  ;;  %v3478_v20 = vld [vmem:[#allocation3 + $0xb0] sm:$0xff]  ;;  %v3482_v18 = vld [vmem:[#allocation3 + $0xc8] sm:$0xff] }
 0x12f   :  { %577 = vmatpush1.bf16.msra.mxu0 %v3369_v12  ;;  %5127 = vst [vmem:[#allocation58_spill] sm:$0xff] %v3476_v36  ;;  %5128 = vst [vmem:[#allocation59_spill] sm:$0xff] %v3478_v20  ;;  %v3484_v19 = vld [vmem:[#allocation3 + $0xd8] sm:$0xff]  ;;  %v3488_v17 = vld [vmem:[#allocation3 + $0xc0] sm:$0xff] }
 0x130   :  { %578 = vmatprep.subr.bf16.mxu0 %v3371_v15  ;;  %5129 = vst [vmem:[#allocation60_spill] sm:$0xff] %v3482_v18  ;;  %5130 = vst [vmem:[#allocation61_spill] sm:$0xff] %v3484_v19 }
 0x131   :  { %618 = vmatpush1.bf16.msra.mxu1 %v3387_v38  ;;  %5131 = vst [vmem:[#allocation62_spill] sm:$0xff] %v3488_v17 }
 0x132   :  { %619 = vmatprep.subr.bf16.mxu1 %v3390_v1 }
 0x133   :  { %579 = vmatpush1.bf16.msra.mxu0 %v3381_v30 }
 0x134   :  { %580 = vmatprep.subr.bf16.mxu0 %v3384_v35 }
 0x135   :  { %620 = vmatpush1.bf16.msra.mxu1 %v3397_v34 }
 0x136   :  { %621 = vmatprep.subr.bf16.mxu1 %v3400_v39 }
 0x137   :  { %581 = vmatpush1.bf16.msra.mxu0 %v3393_v42 }
 0x138   :  { %742 = vmatprep.subr.bf16.mxu0 %v3402_v31 }
 0x139   :  { %622 = vmatpush1.bf16.msra.mxu1 %v3406_v26 }
 0x13a   :  { %599 = vmatmul.mubr.bf16.vlgmr.msra.gmra.mrb[16].mxu0 %v5114_v13  ;;  %783 = vmatprep.subr.bf16.mxu1 %v3415_v10 }
 0x13b   :  { %743 = vmatpush1.bf16.msra.mxu0 %v3409_v14 }
 0x13c   :  { %744 = vmatprep.subr.bf16.mxu0 %v3412_v21  ;;  %640 = vmatmul.mubr.bf16.vlgmr.msra.gmra.mrb[16].mxu1 %v5114_v13 }
 0x13d   :  { %784 = vmatpush1.bf16.msra.mxu1 %v3423_v9 }
 0x13e   :  { %785 = vmatprep.subr.bf16.mxu1 %v3427_v2 }
 0x13f   :  { %745 = vmatpush1.bf16.msra.mxu0 %v3420_v6 }
 0x140   :  { %746 = vmatprep.subr.bf16.mxu0 %v3425_v5 }
 0x141   :  { %786 = vmatpush1.bf16.msra.mxu1 %v3436_v0 }
 0x142   :  { %787 = vmatprep.subr.bf16.mxu1 %v3440_v57 }
 0x143   :  { %747 = vmatpush1.bf16.msra.mxu0 %v3433_v61 }
 0x144   :  { %748 = vmatprep.subr.bf16.mxu0 %v3438_v60 }
 0x145   :  { %788 = vmatpush1.bf16.msra.mxu1 %v3448_v56 }
 0x146   :  { %789 = vmatprep.subr.bf16.mxu1 %v3450_v52 }
 0x147   :  { %749 = vmatpush1.bf16.msra.mxu0 %v3445_v53 }
 0x148   :  { %750 = vmatprep.subr.bf16.mxu0 %v3458_v45 }
 0x149   :  { %790 = vmatpush1.bf16.msra.mxu1 %v3455_v49 }
 0x14a   :  { %791 = vmatprep.subr.bf16.mxu1 %v3460_v48 }
 0x14b   :  { %751 = vmatpush1.bf16.msra.mxu0 %v3464_v44  ;;  %v3107_v44 = vmov 0.0|0.0  }
 0x14c   :  { %752 = vmatprep.subr.bf16.mxu0 %v3470_v37  ;;  %v3490_v37 = vld [vmem:[#allocation3 + $0xd0] sm:$0xff]  ;;  %774 = vmatprep.mubr.bf16.mxu0 %v3107_v44 }
 0x14d   :  { %792 = vmatpush1.bf16.msra.mxu1 %v3466_v41  ;;  %5132 = vst [vmem:[#allocation63_spill] sm:$0xff] %v3490_v37  ;;  %v3578_v41 = vld [vmem:[#allocation3 + $0x1d8] sm:$0xff]  ;;  %815 = vmatprep.mubr.bf16.mxu1 %v3107_v44  ;;  %v3596_v44 = vld [vmem:[#allocation3 + $0x1e0] sm:$0xff] }
 0x14e   :  { %793 = vmatprep.subr.bf16.mxu1 %v3472_v40  ;;  %v3494_v40 = vld [vmem:[#allocation3 + $0xe8] sm:$0xff]  ;;  %5162 = vst [vmem:[#allocation93_spill] sm:$0xff] %v3578_v41  ;;  %5167 = vst [vmem:[#allocation98_spill] sm:$0xff] %v3596_v44 }
 0x14f   :  { %753 = vmatpush1.bf16.msra.mxu0 %v3476_v36  ;;  %5133 = vst [vmem:[#allocation64_spill] sm:$0xff] %v3494_v40  ;;  %v3496_v36 = vld [vmem:[#allocation3 + $0xf8] sm:$0xff] }
 0x150   :  { %754 = vmatprep.subr.bf16.mxu0 %v3482_v18  ;;  %5134 = vst [vmem:[#allocation65_spill] sm:$0xff] %v3496_v36  ;;  %v3502_v18 = vld [vmem:[#allocation3 + $0xf0] sm:$0xff] }
 0x151   :  { %794 = vmatpush1.bf16.msra.mxu1 %v3478_v20  ;;  %v3500_v20 = vld [vmem:[#allocation3 + $0xe0] sm:$0xff]  ;;  %5136 = vst [vmem:[#allocation67_spill] sm:$0xff] %v3502_v18 }
 0x152   :  { %795 = vmatprep.subr.bf16.mxu1 %v3484_v19  ;;  %5135 = vst [vmem:[#allocation66_spill] sm:$0xff] %v3500_v20  ;;  %v3506_v19 = vld [vmem:[#allocation3 + $0x108] sm:$0xff] }
 0x153   :  { %755 = vmatpush1.bf16.msra.mxu0 %v3488_v17  ;;  %5137 = vst [vmem:[#allocation68_spill] sm:$0xff] %v3506_v19  ;;  %v3508_v17 = vld [vmem:[#allocation3 + $0x118] sm:$0xff] }
 0x154   :  { %756 = vmatprep.subr.bf16.mxu0 %v3494_v40  ;;  %5138 = vst [vmem:[#allocation69_spill] sm:$0xff] %v3508_v17  ;;  %v3514_v40 = vld [vmem:[#allocation3 + $0x110] sm:$0xff] }
 0x155   :  { %796 = vmatpush1.bf16.msra.mxu1 %v3490_v37  ;;  %v3512_v37 = vld [vmem:[#allocation3 + $0x100] sm:$0xff]  ;;  %5140 = vst [vmem:[#allocation71_spill] sm:$0xff] %v3514_v40 }
 0x156   :  { %797 = vmatprep.subr.bf16.mxu1 %v3496_v36  ;;  %5139 = vst [vmem:[#allocation70_spill] sm:$0xff] %v3512_v37  ;;  %v3518_v36 = vld [vmem:[#allocation3 + $0x128] sm:$0xff] }
 0x157   :  { %757 = vmatpush1.bf16.msra.mxu0 %v3500_v20  ;;  %5141 = vst [vmem:[#allocation72_spill] sm:$0xff] %v3518_v36  ;;  %v3520_v20 = vld [vmem:[#allocation3 + $0x138] sm:$0xff] }
 0x158   :  { %758 = vmatprep.subr.bf16.mxu0 %v3506_v19  ;;  %5142 = vst [vmem:[#allocation73_spill] sm:$0xff] %v3520_v20  ;;  %v3526_v19 = vld [vmem:[#allocation3 + $0x130] sm:$0xff] }
 0x159   :  { %798 = vmatpush1.bf16.msra.mxu1 %v3502_v18  ;;  %v3524_v18 = vld [vmem:[#allocation3 + $0x120] sm:$0xff]  ;;  %5144 = vst [vmem:[#allocation75_spill] sm:$0xff] %v3526_v19 }
 0x15a   :  { %799 = vmatprep.subr.bf16.mxu1 %v3508_v17  ;;  %5143 = vst [vmem:[#allocation74_spill] sm:$0xff] %v3524_v18  ;;  %v3530_v17 = vld [vmem:[#allocation3 + $0x148] sm:$0xff] }
 0x15b   :  { %759 = vmatpush1.bf16.msra.mxu0 %v3512_v37  ;;  %5145 = vst [vmem:[#allocation76_spill] sm:$0xff] %v3530_v17  ;;  %v3532_v37 = vld [vmem:[#allocation3 + $0x158] sm:$0xff] }
 0x15c   :  { %760 = vmatprep.subr.bf16.mxu0 %v3518_v36  ;;  %5146 = vst [vmem:[#allocation77_spill] sm:$0xff] %v3532_v37  ;;  %v3538_v36 = vld [vmem:[#allocation3 + $0x150] sm:$0xff] }
 0x15d   :  { %800 = vmatpush1.bf16.msra.mxu1 %v3514_v40  ;;  %v3536_v40 = vld [vmem:[#allocation3 + $0x140] sm:$0xff]  ;;  %5148 = vst [vmem:[#allocation79_spill] sm:$0xff] %v3538_v36 }
 0x15e   :  { %801 = vmatprep.subr.bf16.mxu1 %v3520_v20  ;;  %5147 = vst [vmem:[#allocation78_spill] sm:$0xff] %v3536_v40  ;;  %v3542_v20 = vld [vmem:[#allocation3 + $0x168] sm:$0xff] }
 0x15f   :  { %761 = vmatpush1.bf16.msra.mxu0 %v3524_v18  ;;  %5149 = vst [vmem:[#allocation80_spill] sm:$0xff] %v3542_v20  ;;  %v3544_v18 = vld [vmem:[#allocation3 + $0x178] sm:$0xff] }
 0x160   :  { %762 = vmatprep.subr.bf16.mxu0 %v3530_v17  ;;  %5150 = vst [vmem:[#allocation81_spill] sm:$0xff] %v3544_v18  ;;  %v3550_v17 = vld [vmem:[#allocation3 + $0x170] sm:$0xff] }
 0x161   :  { %802 = vmatpush1.bf16.msra.mxu1 %v3526_v19  ;;  %v3548_v19 = vld [vmem:[#allocation3 + $0x160] sm:$0xff]  ;;  %5152 = vst [vmem:[#allocation83_spill] sm:$0xff] %v3550_v17 }
 0x162   :  { %803 = vmatprep.subr.bf16.mxu1 %v3532_v37  ;;  %5151 = vst [vmem:[#allocation82_spill] sm:$0xff] %v3548_v19  ;;  %v3554_v37 = vld [vmem:[#allocation3 + $0x188] sm:$0xff] }
 0x163   :  { %763 = vmatpush1.bf16.msra.mxu0 %v3536_v40  ;;  %5153 = vst [vmem:[#allocation84_spill] sm:$0xff] %v3554_v37  ;;  %v3556_v40 = vld [vmem:[#allocation3 + $0x198] sm:$0xff] }
 0x164   :  { %764 = vmatprep.subr.bf16.mxu0 %v3542_v20  ;;  %5154 = vst [vmem:[#allocation85_spill] sm:$0xff] %v3556_v40  ;;  %v3562_v20 = vld [vmem:[#allocation3 + $0x190] sm:$0xff] }
 0x165   :  { %804 = vmatpush1.bf16.msra.mxu1 %v3538_v36  ;;  %v3560_v36 = vld [vmem:[#allocation3 + $0x180] sm:$0xff]  ;;  %5156 = vst [vmem:[#allocation87_spill] sm:$0xff] %v3562_v20 }
 0x166   :  { %805 = vmatprep.subr.bf16.mxu1 %v3544_v18  ;;  %5155 = vst [vmem:[#allocation86_spill] sm:$0xff] %v3560_v36  ;;  %v3566_v18 = vld [vmem:[#allocation3 + $0x1a8] sm:$0xff] }
 0x167   :  { %765 = vmatpush1.bf16.msra.mxu0 %v3548_v19  ;;  %5157 = vst [vmem:[#allocation88_spill] sm:$0xff] %v3566_v18  ;;  %v3568_v19 = vld [vmem:[#allocation3 + $0x1b8] sm:$0xff] }
 0x168   :  { %766 = vmatprep.subr.bf16.mxu0 %v3554_v37  ;;  %5158 = vst [vmem:[#allocation89_spill] sm:$0xff] %v3568_v19  ;;  %v3574_v37 = vld [vmem:[#allocation3 + $0x1b0] sm:$0xff] }
 0x169   :  { %806 = vmatpush1.bf16.msra.mxu1 %v3550_v17  ;;  %v3570_v17 = vld [vmem:[#allocation3 + $0x1a0] sm:$0xff]  ;;  %5160 = vst [vmem:[#allocation91_spill] sm:$0xff] %v3574_v37 }
 0x16a   :  { %807 = vmatprep.subr.bf16.mxu1 %v3556_v40  ;;  %5159 = vst [vmem:[#allocation90_spill] sm:$0xff] %v3570_v17  ;;  %v3576_v40 = vld [vmem:[#allocation3 + $0x1c8] sm:$0xff] }
 0x16b   :  { %767 = vmatpush1.bf16.msra.mxu0 %v3560_v36  ;;  %5161 = vst [vmem:[#allocation92_spill] sm:$0xff] %v3576_v40  ;;  %v3590_v36 = vld [vmem:[#allocation3 + $0x1f8] sm:$0xff] }
 0x16c   :  { %768 = vmatprep.subr.bf16.mxu0 %v3566_v18  ;;  %v3584_v18 = vld [vmem:[#allocation3 + $0x1c0] sm:$0xff]  ;;  %5166 = vst [vmem:[#allocation97_spill] sm:$0xff] %v3590_v36 }
 0x16d   :  { %808 = vmatpush1.bf16.msra.mxu1 %v3562_v20  ;;  %5163 = vst [vmem:[#allocation94_spill] sm:$0xff] %v3584_v18  ;;  %v3588_v20 = vld [vmem:[#allocation3 + $0x1e8] sm:$0xff] }
 0x16e   :  { %809 = vmatprep.subr.bf16.mxu1 %v3568_v19  ;;  %v3586_v19 = vld [vmem:[#allocation3 + $0x1d0] sm:$0xff]  ;;  %5165 = vst [vmem:[#allocation96_spill] sm:$0xff] %v3588_v20 }
 0x16f   :  { %769 = vmatpush1.bf16.msra.mxu0 %v3570_v17  ;;  %5164 = vst [vmem:[#allocation95_spill] sm:$0xff] %v3586_v19 }
 0x170   :  { %770 = vmatprep.subr.bf16.mxu0 %v3576_v40  ;;  %v3598_v40 = vld [vmem:[#allocation3 + $0x1f0] sm:$0xff] }
 0x171   :  { %810 = vmatpush1.bf16.msra.mxu1 %v3574_v37  ;;  %5168 = vst [vmem:[#allocation99_spill] sm:$0xff] %v3598_v40 }
 0x172   :  { %811 = vmatprep.subr.bf16.mxu1 %v3578_v41 }
 0x173   :  { %771 = vmatpush1.bf16.msra.mxu0 %v3584_v18 }
 0x174   :  { %772 = vmatprep.subr.bf16.mxu0 %v3588_v20 }
 0x175   :  { %812 = vmatpush1.bf16.msra.mxu1 %v3586_v19 }
 0x176   :  { %813 = vmatprep.subr.bf16.mxu1 %v3590_v36 }
 0x177   :  { %773 = vmatpush1.bf16.msra.mxu0 %v3596_v44 }
 0x178   :  { %852 = vmatprep.subr.bf16.mxu0 %v3312_v22 }
 0x179   :  { %814 = vmatpush1.bf16.msra.mxu1 %v3598_v40 }
 0x17a   :  { %893 = vmatprep.subr.bf16.mxu1 %v3325_v46 }
 0x20d   :  { %v600_v41 = vpop.f32.mrb[16].mxu0 }
 0x20e   :  { %v648_v18 = vadd.f32 %v600_v41, %v3229_v28  ;;  %v602_v19 = vpop.f32.mrb[17].mxu0 }
 0x20f   :  { %v649_v20 = vadd.f32 %v602_v19, %v3234_v32  ;;  %v604_v37 = vpop.f32.mrb[18].mxu0  ;;  %v641_v45 = vpop.f32.mrb[16].mxu1 }
 0x210   :  { %v2493_v36 = vmul.f32 -1.442695, %v648_v18  ;;  %v605_v17 = vpop.f32.mrb[19].mxu0  ;;  %v643_v44 = vpop.f32.mrb[17].mxu1  ;;  %v650_v40 = vadd.f32 %v641_v45, %v3231_v29 }
 0x211   :  { %v2494_v48 = vmul.f32 -1.442695, %v649_v20  ;;  %v645_v49 = vpop.f32.mrb[18].mxu1  ;;  %v651_v46 = vadd.f32 %v643_v44, %v3237_v33  ;;  %v5173_v44 = vld [vmem:[#allocation53_spill] sm:$0xff] }
 0x212   :  { %2617 = vpow2.f32 %v2493_v36  ;;  %v646_v22 = vpop.f32.mrb[19].mxu1  ;;  %v2495_v53 = vmul.f32 -1.442695, %v650_v40 }
 0x213   :  { %2619 = vpow2.f32 %v2494_v48  ;;  %v5171_v22 = vld [vmem:[#allocation51_spill] sm:$0xff] }
 0x214   :  { %2621 = vpow2.f32 %v2495_v53  ;;  %v5170_v53 = vld [vmem:[#allocation48_spill] sm:$0xff] }
 0x215   :  { %2623 = vtanh.f32 %v651_v46  ;;  %v5172_v46 = vld [vmem:[#allocation52_spill] sm:$0xff] }
 0x21c   :  { %v2618_v52 = vpop.eup %2617 }
 0x21d   :  { %v2620_v28 = vpop.eup %2619  ;;  %v661_v41 = vadd.f32 1.0, %v2618_v52  ;;  %v5169_v52 = vld [vmem:[#allocation50_spill] sm:$0xff] }
 0x21e   :  { %v662_v19 = vadd.f32 1.0, %v2620_v28  ;;  %v2622_v17 = vpop.eup %2621  ;;  %v5174_v28 = vld [vmem:[#allocation54_spill] sm:$0xff] }
 0x21f   :  { %2625 = vrcp.f32 %v661_v41  ;;  %v2624_v18 = vpop.eup %2623  ;;  %v663_v32 = vadd.f32 1.0, %v2622_v17  ;;  %v5175_v41 = vld [vmem:[#allocation55_spill] sm:$0xff]  ;;  %v5177_v17 = vld [vmem:[#allocation57_spill] sm:$0xff] }
 0x220   :  { %2627 = vrcp.f32 %v662_v19  ;;  %v5176_v19 = vld [vmem:[#allocation56_spill] sm:$0xff] }
 0x221   :  { %2629 = vrcp.f32 %v663_v32  ;;  %v5180_v32 = vld [vmem:[#allocation60_spill] sm:$0xff] }
 0x229   :  { %v2626_v20 = vpop.eup %2625 }
 0x22a   :  { %v2628_v36 = vpop.eup %2627  ;;  %v672_v37 = vmul.f32 %v2626_v20, %v2624_v18  ;;  %v5178_v18 = vld [vmem:[#allocation58_spill] sm:$0xff]  ;;  %v5179_v20 = vld [vmem:[#allocation59_spill] sm:$0xff] }
 0x22b   :  { %v671_v29 = vmul.f32 0.0, %v2628_v36  ;;  %v2630_v33 = vpop.eup %2629  ;;  %v5181_v36 = vld [vmem:[#allocation61_spill] sm:$0xff] }
 0x22d   :  { %v3608_v45 = vadd.f32 %v672_v37, %v671_v29  ;;  %v5182_v37 = vld [vmem:[#allocation62_spill] sm:$0xff]  ;;  %v5183_v29 = vld [vmem:[#allocation63_spill] sm:$0xff] }
 0x22f   :  { %2631 = vtanh.f32 %v3608_v45 }
 0x239   :  { %v2632_v40 = vpop.eup %2631 }
 0x23a   :  { %v675_v48 = vmul.f32 %v2632_v40, %v2630_v33  ;;  %v5184_v33 = vld [vmem:[#allocation64_spill] sm:$0xff]  ;;  %v5185_v40 = vld [vmem:[#allocation65_spill] sm:$0xff] }
 0x23c   :  { %v676_v49 = vpack.c.bf16 %v675_v48, %v675_v48  ;;  %v5186_v48 = vld [vmem:[#allocation66_spill] sm:$0xff] }
 0x23e   :  { %775 = vmatmul.mubr.bf16.vlgmr.msra.gmra.mrb[20].mxu0 %v676_v49  ;;  %816 = vmatmul.mubr.bf16.vlgmr.msra.gmra.mrb[20].mxu1 %v676_v49 }
 0x23f   :  { %853 = vmatpush1.bf16.msra.mxu0 %v3314_v23  ;;  %894 = vmatpush1.bf16.msra.mxu1 %v3327_v47 }
 0x240   :  { %854 = vmatprep.subr.bf16.mxu0 %v3317_v43  ;;  %895 = vmatprep.subr.bf16.mxu1 %v3337_v54 }
 0x241   :  { %884 = vmatprep.mubr.bf16.mxu0 %v5114_v13  ;;  %925 = vmatprep.mubr.bf16.mxu1 %v5114_v13 }
 0x243   :  { %855 = vmatpush1.bf16.msra.mxu0 %v3320_v24  ;;  %896 = vmatpush1.bf16.msra.mxu1 %v3339_v55 }
 0x244   :  { %856 = vmatprep.subr.bf16.mxu0 %v3323_v25  ;;  %897 = vmatprep.subr.bf16.mxu1 %v3347_v62 }
 0x247   :  { %857 = vmatpush1.bf16.msra.mxu0 %v3330_v50  ;;  %898 = vmatpush1.bf16.msra.mxu1 %v3351_v63 }
 0x248   :  { %858 = vmatprep.subr.bf16.mxu0 %v3334_v51  ;;  %899 = vmatprep.subr.bf16.mxu1 %v3354_v3 }
 0x24b   :  { %859 = vmatpush1.bf16.msra.mxu0 %v3343_v58  ;;  %900 = vmatpush1.bf16.msra.mxu1 %v3363_v8 }
 0x24c   :  { %860 = vmatprep.subr.bf16.mxu0 %v3345_v59  ;;  %901 = vmatprep.subr.bf16.mxu1 %v3366_v11 }
 0x24f   :  { %861 = vmatpush1.bf16.msra.mxu0 %v3357_v4  ;;  %902 = vmatpush1.bf16.msra.mxu1 %v3375_v16 }
 0x250   :  { %862 = vmatprep.subr.bf16.mxu0 %v3360_v7  ;;  %903 = vmatprep.subr.bf16.mxu1 %v3378_v27 }
 0x253   :  { %863 = vmatpush1.bf16.msra.mxu0 %v3369_v12  ;;  %904 = vmatpush1.bf16.msra.mxu1 %v3387_v38 }
 0x254   :  { %864 = vmatprep.subr.bf16.mxu0 %v3371_v15  ;;  %905 = vmatprep.subr.bf16.mxu1 %v3390_v1 }
 0x257   :  { %865 = vmatpush1.bf16.msra.mxu0 %v3381_v30  ;;  %906 = vmatpush1.bf16.msra.mxu1 %v3397_v34 }
 0x258   :  { %866 = vmatprep.subr.bf16.mxu0 %v3384_v35  ;;  %907 = vmatprep.subr.bf16.mxu1 %v3400_v39 }
 0x25b   :  { %867 = vmatpush1.bf16.msra.mxu0 %v3393_v42  ;;  %908 = vmatpush1.bf16.msra.mxu1 %v3406_v26 }
 0x25c   :  { %964 = vmatprep.subr.bf16.mxu0 %v3402_v31  ;;  %1005 = vmatprep.subr.bf16.mxu1 %v3415_v10 }
 0x25e   :  { %885 = vmatmul.mubr.bf16.vlgmr.msra.gmra.mrb[24].mxu0 %v676_v49  ;;  %926 = vmatmul.mubr.bf16.vlgmr.msra.gmra.mrb[24].mxu1 %v676_v49  ;;  %v5187_v49 = vld [vmem:[#allocation67_spill] sm:$0xff] }
 0x25f   :  { %965 = vmatpush1.bf16.msra.mxu0 %v3409_v14  ;;  %1006 = vmatpush1.bf16.msra.mxu1 %v3423_v9 }
 0x260   :  { %966 = vmatprep.subr.bf16.mxu0 %v3412_v21  ;;  %1007 = vmatprep.subr.bf16.mxu1 %v3427_v2 }
 0x263   :  { %967 = vmatpush1.bf16.msra.mxu0 %v3420_v6  ;;  %1008 = vmatpush1.bf16.msra.mxu1 %v3436_v0 }
 0x264   :  { %968 = vmatprep.subr.bf16.mxu0 %v3425_v5  ;;  %1009 = vmatprep.subr.bf16.mxu1 %v3440_v57 }
 0x267   :  { %969 = vmatpush1.bf16.msra.mxu0 %v3433_v61  ;;  %1010 = vmatpush1.bf16.msra.mxu1 %v3448_v56 }
 0x268   :  { %970 = vmatprep.subr.bf16.mxu0 %v3438_v60  ;;  %1011 = vmatprep.subr.bf16.mxu1 %v5169_v52 }
 0x26b   :  { %971 = vmatpush1.bf16.msra.mxu0 %v5170_v53  ;;  %1012 = vmatpush1.bf16.msra.mxu1 %v5171_v22  ;;  %v5225_v53 = vld [vmem:[#allocation15_spill] sm:$0xff] }
 0x26c   :  { %972 = vmatprep.subr.bf16.mxu0 %v5172_v46  ;;  %1013 = vmatprep.subr.bf16.mxu1 %v5173_v44 }
 0x26f   :  { %973 = vmatpush1.bf16.msra.mxu0 %v5174_v28  ;;  %1014 = vmatpush1.bf16.msra.mxu1 %v5175_v41  ;;  %v5223_v28 = vld [vmem:[#allocation14_spill] sm:$0xff] }
 0x270   :  { %974 = vmatprep.subr.bf16.mxu0 %v5176_v19  ;;  %1015 = vmatprep.subr.bf16.mxu1 %v5177_v17  ;;  %v5188_v17 = vld [vmem:[#allocation68_spill] sm:$0xff] }
 0x271   :  { %v5222_v19 = vld [vmem:[#allocation12_spill] sm:$0xff] }
 0x273   :  { %975 = vmatpush1.bf16.msra.mxu0 %v5178_v18  ;;  %1016 = vmatpush1.bf16.msra.mxu1 %v5179_v20  ;;  %v5189_v18 = vld [vmem:[#allocation69_spill] sm:$0xff]  ;;  %v5190_v20 = vld [vmem:[#allocation70_spill] sm:$0xff] }
 0x274   :  { %976 = vmatprep.subr.bf16.mxu0 %v5180_v32  ;;  %1017 = vmatprep.subr.bf16.mxu1 %v5181_v36  ;;  %v5191_v32 = vld [vmem:[#allocation71_spill] sm:$0xff]  ;;  %v5192_v36 = vld [vmem:[#allocation72_spill] sm:$0xff] }
 0x277   :  { %977 = vmatpush1.bf16.msra.mxu0 %v5182_v37  ;;  %1018 = vmatpush1.bf16.msra.mxu1 %v5183_v29  ;;  %v5193_v37 = vld [vmem:[#allocation73_spill] sm:$0xff]  ;;  %v5194_v29 = vld [vmem:[#allocation74_spill] sm:$0xff] }
 0x278   :  { %978 = vmatprep.subr.bf16.mxu0 %v5184_v33  ;;  %1019 = vmatprep.subr.bf16.mxu1 %v5185_v40  ;;  %v5195_v33 = vld [vmem:[#allocation75_spill] sm:$0xff]  ;;  %v5196_v40 = vld [vmem:[#allocation76_spill] sm:$0xff] }
 0x27b   :  { %979 = vmatpush1.bf16.msra.mxu0 %v5186_v48  ;;  %1020 = vmatpush1.bf16.msra.mxu1 %v5187_v49  ;;  %v5197_v48 = vld [vmem:[#allocation77_spill] sm:$0xff]  ;;  %v5198_v49 = vld [vmem:[#allocation78_spill] sm:$0xff] }
 0x27c   :  { %980 = vmatprep.subr.bf16.mxu0 %v5188_v17  ;;  %1021 = vmatprep.subr.bf16.mxu1 %v5189_v18  ;;  %v5199_v17 = vld [vmem:[#allocation79_spill] sm:$0xff]  ;;  %v5200_v18 = vld [vmem:[#allocation80_spill] sm:$0xff] }
 0x27f   :  { %981 = vmatpush1.bf16.msra.mxu0 %v5190_v20  ;;  %1022 = vmatpush1.bf16.msra.mxu1 %v5191_v32  ;;  %v5201_v20 = vld [vmem:[#allocation81_spill] sm:$0xff]  ;;  %v5202_v32 = vld [vmem:[#allocation82_spill] sm:$0xff] }
 0x280   :  { %982 = vmatprep.subr.bf16.mxu0 %v5192_v36  ;;  %1023 = vmatprep.subr.bf16.mxu1 %v5193_v37  ;;  %v5203_v36 = vld [vmem:[#allocation83_spill] sm:$0xff]  ;;  %v5204_v37 = vld [vmem:[#allocation84_spill] sm:$0xff] }
 0x283   :  { %983 = vmatpush1.bf16.msra.mxu0 %v5194_v29  ;;  %1024 = vmatpush1.bf16.msra.mxu1 %v5195_v33  ;;  %v5205_v29 = vld [vmem:[#allocation85_spill] sm:$0xff]  ;;  %v5206_v33 = vld [vmem:[#allocation86_spill] sm:$0xff] }
 0x284   :  { %984 = vmatprep.subr.bf16.mxu0 %v5196_v40  ;;  %1025 = vmatprep.subr.bf16.mxu1 %v5197_v48  ;;  %v5207_v40 = vld [vmem:[#allocation87_spill] sm:$0xff]  ;;  %v5208_v48 = vld [vmem:[#allocation88_spill] sm:$0xff] }
 0x287   :  { %985 = vmatpush1.bf16.msra.mxu0 %v5198_v49  ;;  %1026 = vmatpush1.bf16.msra.mxu1 %v5199_v17  ;;  %v5209_v49 = vld [vmem:[#allocation89_spill] sm:$0xff]  ;;  %v5210_v17 = vld [vmem:[#allocation90_spill] sm:$0xff] }
 0x288   :  { %986 = vmatprep.subr.bf16.mxu0 %v5200_v18  ;;  %1027 = vmatprep.subr.bf16.mxu1 %v5201_v20  ;;  %v5211_v18 = vld [vmem:[#allocation91_spill] sm:$0xff]  ;;  %v5212_v20 = vld [vmem:[#allocation92_spill] sm:$0xff] }
 0x28b   :  { %987 = vmatpush1.bf16.msra.mxu0 %v5202_v32  ;;  %1028 = vmatpush1.bf16.msra.mxu1 %v5203_v36  ;;  %v5213_v32 = vld [vmem:[#allocation93_spill] sm:$0xff]  ;;  %v5214_v36 = vld [vmem:[#allocation94_spill] sm:$0xff] }
 0x28c   :  { %988 = vmatprep.subr.bf16.mxu0 %v5204_v37  ;;  %1029 = vmatprep.subr.bf16.mxu1 %v5205_v29  ;;  %v5215_v37 = vld [vmem:[#allocation95_spill] sm:$0xff]  ;;  %v5216_v29 = vld [vmem:[#allocation96_spill] sm:$0xff] }
 0x28f   :  { %989 = vmatpush1.bf16.msra.mxu0 %v5206_v33  ;;  %1030 = vmatpush1.bf16.msra.mxu1 %v5207_v40  ;;  %v5217_v33 = vld [vmem:[#allocation97_spill] sm:$0xff]  ;;  %v5218_v40 = vld [vmem:[#allocation98_spill] sm:$0xff] }
 0x290   :  { %990 = vmatprep.subr.bf16.mxu0 %v5208_v48  ;;  %1031 = vmatprep.subr.bf16.mxu1 %v5209_v49  ;;  %v5219_v48 = vld [vmem:[#allocation99_spill] sm:$0xff]  ;;  %v5220_v49 = vld [vmem:[#allocation44_spill] sm:$0xff] }
 0x293   :  { %991 = vmatpush1.bf16.msra.mxu0 %v5210_v17  ;;  %1032 = vmatpush1.bf16.msra.mxu1 %v5211_v18  ;;  %v5221_v17 = vld [vmem:[#allocation45_spill] sm:$0xff] }
 0x294   :  { %992 = vmatprep.subr.bf16.mxu0 %v5212_v20  ;;  %1033 = vmatprep.subr.bf16.mxu1 %v5213_v32 }
 0x297   :  { %993 = vmatpush1.bf16.msra.mxu0 %v5214_v36  ;;  %1034 = vmatpush1.bf16.msra.mxu1 %v5215_v37 }
 0x298   :  { %994 = vmatprep.subr.bf16.mxu0 %v5216_v29  ;;  %1035 = vmatprep.subr.bf16.mxu1 %v5217_v33 }
 0x29b   :  { %995 = vmatpush1.bf16.msra.mxu0 %v5218_v40  ;;  %1036 = vmatpush1.bf16.msra.mxu1 %v5219_v48  ;;  %v5224_v48 = vld [vmem:[#allocation13_spill] sm:$0xff] }
 0x29c   :  { %1074 = vmatprep.subr.bf16.mxu0 %v5220_v49  ;;  %1115 = vmatprep.subr.bf16.mxu1 %v5221_v17 }
 0x311   :  { %v776_v18 = vpop.f32.mrb[20].mxu0  ;;  %v817_v20 = vpop.f32.mrb[20].mxu1 }
 0x312   :  { %v777_v32 = vadd.f32 %v776_v18, %v5222_v19  ;;  %v778_v41 = vpop.f32.mrb[21].mxu0  ;;  %v819_v36 = vpop.f32.mrb[21].mxu1  ;;  %v818_v49 = vadd.f32 %v817_v20, %v5224_v48 }
 0x313   :  { %v779_v37 = vadd.f32 %v778_v41, %v5223_v28  ;;  %v780_v44 = vpop.f32.mrb[22].mxu0  ;;  %v821_v29 = vpop.f32.mrb[22].mxu1  ;;  %v820_v17 = vadd.f32 %v819_v36, %v5225_v53  ;;  %v5226_v36 = vld [vmem:[#allocation16_spill] sm:$0xff] }
 0x314   :  { %v2496_v46 = vmul.f32 -1.442695, %v777_v32  ;;  %v781_v33 = vpop.f32.mrb[23].mxu0  ;;  %v822_v22 = vpop.f32.mrb[23].mxu1  ;;  %v2498_v52 = vmul.f32 -1.442695, %v818_v49 }
 0x315   :  { %v2497_v40 = vmul.f32 -1.442695, %v779_v37 }
 0x316   :  { %2633 = vpow2.f32 %v2496_v46 }
 0x317   :  { %2635 = vpow2.f32 %v2497_v40 }
 0x318   :  { %2637 = vtanh.f32 %v820_v17 }
 0x319   :  { %2639 = vpow2.f32 %v2498_v52  ;;  %v5227_v52 = vld [vmem:[#allocation18_spill] sm:$0xff] }
 0x320   :  { %v2634_v60 = vpop.eup %2633 }
 0x321   :  { %v833_v56 = vadd.f32 1.0, %v2634_v60  ;;  %v2636_v18 = vpop.eup %2635 }
 0x322   :  { %v834_v41 = vadd.f32 1.0, %v2636_v18  ;;  %v2638_v44 = vpop.eup %2637 }
 0x323   :  { %2641 = vrcp.f32 %v833_v56  ;;  %v2640_v32 = vpop.eup %2639 }
 0x324   :  { %2643 = vrcp.f32 %v834_v41  ;;  %v835_v46 = vadd.f32 1.0, %v2640_v32  ;;  %v5228_v32 = vld [vmem:[#allocation17_spill] sm:$0xff] }
 0x326   :  { %2645 = vrcp.f32 %v835_v46 }
 0x32d   :  { %v2642_v29 = vpop.eup %2641 }
 0x32e   :  { %v844_v22 = vmul.f32 %v2642_v29, %v2638_v44  ;;  %v2644_v37 = vpop.eup %2643 }
 0x32f   :  { %v843_v33 = vmul.f32 0.0, %v2644_v37  ;;  %v5229_v37 = vld [vmem:[#allocation19_spill] sm:$0xff] }
 0x331   :  { %v886_v40 = vpop.f32.mrb[24].mxu0  ;;  %v927_v20 = vpop.f32.mrb[24].mxu1  ;;  %v3713_v48 = vadd.f32 %v844_v22, %v843_v33 }
 0x332   :  { %v934_v49 = vadd.f32 %v886_v40, %v5226_v36  ;;  %v888_v60 = vpop.f32.mrb[25].mxu0  ;;  %v929_v17 = vpop.f32.mrb[25].mxu1  ;;  %v936_v29 = vadd.f32 %v927_v20, %v5228_v32 }
 0x333   :  { %v935_v56 = vadd.f32 %v888_v60, %v5227_v52  ;;  %v890_v18 = vpop.f32.mrb[26].mxu0  ;;  %v931_v41 = vpop.f32.mrb[26].mxu1  ;;  %2647 = vtanh.f32 %v3713_v48  ;;  %v937_v33 = vadd.f32 %v929_v17, %v5229_v37  ;;  %v5271_v37 = vld [vmem:[#allocation87_spill] sm:$0xff] }
 0x334   :  { %v2499_v53 = vmul.f32 -1.442695, %v934_v49  ;;  %v891_v28 = vpop.f32.mrb[27].mxu0  ;;  %v932_v19 = vpop.f32.mrb[27].mxu1  ;;  %v2501_v36 = vmul.f32 -1.442695, %v936_v29 }
 0x335   :  { %v2500_v44 = vmul.f32 -1.442695, %v935_v56  ;;  %v2646_v22 = vpop.eup %2645 }
 0x336   :  { %2649 = vpow2.f32 %v2499_v53 }
 0x337   :  { %2651 = vpow2.f32 %v2500_v44 }
 0x338   :  { %2653 = vtanh.f32 %v937_v33  ;;  %v5272_v33 = vld [vmem:[#allocation88_spill] sm:$0xff] }
 0x339   :  { %2655 = vpow2.f32 %v2501_v36  ;;  %v5274_v36 = vld [vmem:[#allocation90_spill] sm:$0xff] }
 0x33d   :  { %v2648_v40 = vpop.eup %2647 }
 0x33e   :  { %v847_v46 = vmul.f32 %v2648_v40, %v2646_v22  ;;  %v5273_v40 = vld [vmem:[#allocation89_spill] sm:$0xff] }
 0x340   :  { %v2650_v61 = vpop.eup %2649  ;;  %v963_v52 = vpack.c.bf16 %v847_v46, %v847_v46  ;;  %v5275_v46 = vld [vmem:[#allocation91_spill] sm:$0xff] }
 0x341   :  { %v947_v60 = vadd.f32 1.0, %v2650_v61  ;;  %v2652_v49 = vpop.eup %2651 }
 0x342   :  { %v948_v28 = vadd.f32 1.0, %v2652_v49  ;;  %996 = vmatprep.mubr.bf16.mxu0 %v963_v52  ;;  %1037 = vmatprep.mubr.bf16.mxu1 %v963_v52  ;;  %v2654_v53 = vpop.eup %2653  ;;  %v5277_v52 = vld [vmem:[#allocation93_spill] sm:$0xff]  ;;  %v5278_v49 = vld [vmem:[#allocation94_spill] sm:$0xff] }
 0x343   :  { %2657 = vrcp.f32 %v947_v60  ;;  %v2656_v19 = vpop.eup %2655  ;;  %v5276_v60 = vld [vmem:[#allocation92_spill] sm:$0xff] }
 0x344   :  { %2659 = vrcp.f32 %v948_v28  ;;  %v949_v17 = vadd.f32 1.0, %v2656_v19  ;;  %v5279_v28 = vld [vmem:[#allocation95_spill] sm:$0xff]  ;;  %v5281_v19 = vld [vmem:[#allocation97_spill] sm:$0xff] }
 0x346   :  { %2661 = vrcp.f32 %v949_v17  ;;  %v3823_v17 = vld [vmem:[#allocation6 + $0xc] ss:$16 sps:$4 sm:$0xff]  }
 0x347   :  { %5285 = vst [vmem:[#allocation45_spill] sm:$0xff] %v3823_v17 }
 0x34d   :  { %v2658_v20 = vpop.eup %2657 }
 0x34e   :  { %v958_v56 = vmul.f32 %v2658_v20, %v2654_v53  ;;  %v2660_v18 = vpop.eup %2659  ;;  %v5280_v53 = vld [vmem:[#allocation96_spill] sm:$0xff]  ;;  %v5282_v20 = vld [vmem:[#allocation98_spill] sm:$0xff] }
 0x34f   :  { %v957_v41 = vmul.f32 %v2660_v18, %v3608_v45  ;;  %v5270_v45 = vld [vmem:[#allocation86_spill] sm:$0xff] }
 0x350   :  { %v2662_v61 = vpop.eup %2661  ;;  %v3820_v18 = vld [vmem:[#allocation6 + $0x4] ss:$16 sps:$4 sm:$0xff]  }
 0x351   :  { %v3721_v44 = vadd.f32 %v958_v56, %v957_v41  ;;  %v5283_v56 = vld [vmem:[#allocation99_spill] sm:$0xff]  ;;  %5284 = vst [vmem:[#allocation44_spill] sm:$0xff] %v3820_v18 }
 0x353   :  { %2663 = vtanh.f32 %v3721_v44 }
 0x35d   :  { %v2664_v32 = vpop.eup %2663 }
 0x35e   :  { %v961_v29 = vmul.f32 %v2664_v32, %v2662_v61  ;;  %v5286_v32 = vld [vmem:[#allocation12_spill] sm:$0xff] }
 0x360   :  { %v962_v22 = vpack.c.bf16 %v961_v29, %v961_v29 }
 0x362   :  { %997 = vmatmul.mubr.bf16.vlgmr.msra.gmra.mrb[28].mxu0 %v962_v22  ;;  %1038 = vmatmul.mubr.bf16.vlgmr.msra.gmra.mrb[28].mxu1 %v962_v22 }
 0x363   :  { %1075 = vmatpush1.bf16.msra.mxu0 %v3314_v23  ;;  %1116 = vmatpush1.bf16.msra.mxu1 %v3327_v47  ;;  %v5245_v23 = vld [vmem:[#allocation61_spill] sm:$0xff] }
 0x364   :  { %1076 = vmatprep.subr.bf16.mxu0 %v3317_v43  ;;  %1117 = vmatprep.subr.bf16.mxu1 %v3337_v54  ;;  %v5246_v43 = vld [vmem:[#allocation62_spill] sm:$0xff]  ;;  %v5249_v47 = vld [vmem:[#allocation65_spill] sm:$0xff]  ;;  %v5252_v54 = vld [vmem:[#allocation68_spill] sm:$0xff] }
 0x365   :  { %1106 = vmatprep.mubr.bf16.mxu0 %v5114_v13  ;;  %1147 = vmatprep.mubr.bf16.mxu1 %v5114_v13 }
 0x367   :  { %1077 = vmatpush1.bf16.msra.mxu0 %v3320_v24  ;;  %1118 = vmatpush1.bf16.msra.mxu1 %v3339_v55  ;;  %v5247_v24 = vld [vmem:[#allocation63_spill] sm:$0xff]  ;;  %v5253_v55 = vld [vmem:[#allocation69_spill] sm:$0xff] }
 0x368   :  { %1078 = vmatprep.subr.bf16.mxu0 %v3323_v25  ;;  %1119 = vmatprep.subr.bf16.mxu1 %v3347_v62  ;;  %v5248_v25 = vld [vmem:[#allocation64_spill] sm:$0xff] }
 0x369   :  { %v5256_v62 = vld [vmem:[#allocation72_spill] sm:$0xff] }
 0x36b   :  { %1079 = vmatpush1.bf16.msra.mxu0 %v3330_v50  ;;  %1120 = vmatpush1.bf16.msra.mxu1 %v3351_v63  ;;  %v5250_v50 = vld [vmem:[#allocation66_spill] sm:$0xff]  ;;  %v5257_v63 = vld [vmem:[#allocation73_spill] sm:$0xff] }
 0x36c   :  { %1080 = vmatprep.subr.bf16.mxu0 %v3334_v51  ;;  %1121 = vmatprep.subr.bf16.mxu1 %v3354_v3  ;;  %v5251_v51 = vld [vmem:[#allocation67_spill] sm:$0xff]  ;;  %v5258_v3 = vld [vmem:[#allocation74_spill] sm:$0xff] }
 0x36f   :  { %1081 = vmatpush1.bf16.msra.mxu0 %v3343_v58  ;;  %1122 = vmatpush1.bf16.msra.mxu1 %v3363_v8  ;;  %v5254_v58 = vld [vmem:[#allocation70_spill] sm:$0xff]  ;;  %v5261_v8 = vld [vmem:[#allocation77_spill] sm:$0xff] }
 0x370   :  { %1082 = vmatprep.subr.bf16.mxu0 %v3345_v59  ;;  %1123 = vmatprep.subr.bf16.mxu1 %v3366_v11  ;;  %v5255_v59 = vld [vmem:[#allocation71_spill] sm:$0xff]  ;;  %v5262_v11 = vld [vmem:[#allocation78_spill] sm:$0xff] }
 0x373   :  { %1083 = vmatpush1.bf16.msra.mxu0 %v3357_v4  ;;  %1124 = vmatpush1.bf16.msra.mxu1 %v3375_v16  ;;  %v5259_v4 = vld [vmem:[#allocation75_spill] sm:$0xff]  ;;  %v5265_v16 = vld [vmem:[#allocation81_spill] sm:$0xff] }
 0x374   :  { %1084 = vmatprep.subr.bf16.mxu0 %v3360_v7  ;;  %1125 = vmatprep.subr.bf16.mxu1 %v3378_v27  ;;  %v5260_v7 = vld [vmem:[#allocation76_spill] sm:$0xff]  ;;  %v5266_v27 = vld [vmem:[#allocation82_spill] sm:$0xff] }
 0x377   :  { %1085 = vmatpush1.bf16.msra.mxu0 %v3369_v12  ;;  %1126 = vmatpush1.bf16.msra.mxu1 %v3387_v38  ;;  %v5263_v12 = vld [vmem:[#allocation79_spill] sm:$0xff]  ;;  %v5269_v38 = vld [vmem:[#allocation85_spill] sm:$0xff] }
 0x378   :  { %1086 = vmatprep.subr.bf16.mxu0 %v3371_v15  ;;  %1127 = vmatprep.subr.bf16.mxu1 %v3390_v1  ;;  %v5230_v1 = vld [vmem:[#allocation46_spill] sm:$0xff]  ;;  %v5264_v15 = vld [vmem:[#allocation80_spill] sm:$0xff] }
 0x37b   :  { %1087 = vmatpush1.bf16.msra.mxu0 %v3381_v30  ;;  %1128 = vmatpush1.bf16.msra.mxu1 %v3397_v34  ;;  %v5242_v34 = vld [vmem:[#allocation58_spill] sm:$0xff]  ;;  %v5267_v30 = vld [vmem:[#allocation83_spill] sm:$0xff] }
 0x37c   :  { %1088 = vmatprep.subr.bf16.mxu0 %v3384_v35  ;;  %1129 = vmatprep.subr.bf16.mxu1 %v3400_v39  ;;  %v5243_v39 = vld [vmem:[#allocation59_spill] sm:$0xff]  ;;  %v5268_v35 = vld [vmem:[#allocation84_spill] sm:$0xff] }
 0x37f   :  { %1089 = vmatpush1.bf16.msra.mxu0 %v3393_v42  ;;  %1130 = vmatpush1.bf16.msra.mxu1 %v3406_v26  ;;  %v5232_v26 = vld [vmem:[#allocation47_spill] sm:$0xff]  ;;  %v5244_v42 = vld [vmem:[#allocation60_spill] sm:$0xff] }
 0x380   :  { %1186 = vmatprep.subr.bf16.mxu0 %v3402_v31  ;;  %1227 = vmatprep.subr.bf16.mxu1 %v3415_v10  ;;  %v5231_v10 = vld [vmem:[#allocation49_spill] sm:$0xff] }
 0x381   :  { %v5241_v31 = vld [vmem:[#allocation57_spill] sm:$0xff] }
 0x382   :  { %1107 = vmatmul.mubr.bf16.vlgmr.msra.gmra.mrb[32].mxu0 %v962_v22  ;;  %1148 = vmatmul.mubr.bf16.vlgmr.msra.gmra.mrb[32].mxu1 %v962_v22 }
 0x383   :  { %1187 = vmatpush1.bf16.msra.mxu0 %v3409_v14  ;;  %1228 = vmatpush1.bf16.msra.mxu1 %v3423_v9  ;;  %v5233_v14 = vld [vmem:[#allocation50_spill] sm:$0xff]  ;;  %v5234_v9 = vld [vmem:[#allocation48_spill] sm:$0xff] }
 0x384   :  { %1188 = vmatprep.subr.bf16.mxu0 %v3412_v21  ;;  %1229 = vmatprep.subr.bf16.mxu1 %v3427_v2  ;;  %v5235_v21 = vld [vmem:[#allocation51_spill] sm:$0xff]  ;;  %v5236_v2 = vld [vmem:[#allocation52_spill] sm:$0xff] }
 0x387   :  { %1189 = vmatpush1.bf16.msra.mxu0 %v3420_v6  ;;  %1230 = vmatpush1.bf16.msra.mxu1 %v3436_v0  ;;  %v5237_v6 = vld [vmem:[#allocation53_spill] sm:$0xff]  ;;  %v5238_v0 = vld [vmem:[#allocation54_spill] sm:$0xff] }
 0x388   :  { %1190 = vmatprep.subr.bf16.mxu0 %v3425_v5  ;;  %1231 = vmatprep.subr.bf16.mxu1 %v3440_v57  ;;  %v5239_v5 = vld [vmem:[#allocation55_spill] sm:$0xff]  ;;  %v5240_v57 = vld [vmem:[#allocation56_spill] sm:$0xff] }
 0x38b   :  { %1191 = vmatpush1.bf16.msra.mxu0 %v5230_v1  ;;  %1232 = vmatpush1.bf16.msra.mxu1 %v5231_v10  ;;  %v5287_v10 = vld [vmem:[#allocation14_spill] sm:$0xff] }
 0x38c   :  { %1192 = vmatprep.subr.bf16.mxu0 %v5232_v26  ;;  %1233 = vmatprep.subr.bf16.mxu1 %v5233_v14 }
 0x38f   :  { %1193 = vmatpush1.bf16.msra.mxu0 %v5234_v9  ;;  %1234 = vmatpush1.bf16.msra.mxu1 %v5235_v21 }
 0x390   :  { %1194 = vmatprep.subr.bf16.mxu0 %v5236_v2  ;;  %1235 = vmatprep.subr.bf16.mxu1 %v5237_v6 }
 0x393   :  { %1195 = vmatpush1.bf16.msra.mxu0 %v5238_v0  ;;  %1236 = vmatpush1.bf16.msra.mxu1 %v5239_v5  ;;  %v5288_v5 = vld [vmem:[#allocation13_spill] sm:$0xff] }
 0x394   :  { %1196 = vmatprep.subr.bf16.mxu0 %v5240_v57  ;;  %1237 = vmatprep.subr.bf16.mxu1 %v5241_v31  ;;  %v5289_v31 = vld [vmem:[#allocation15_spill] sm:$0xff] }
 0x397   :  { %1197 = vmatpush1.bf16.msra.mxu0 %v5242_v34  ;;  %1238 = vmatpush1.bf16.msra.mxu1 %v5243_v39 }
 0x398   :  { %1198 = vmatprep.subr.bf16.mxu0 %v5244_v42  ;;  %1239 = vmatprep.subr.bf16.mxu1 %v5245_v23 }
 0x39b   :  { %1199 = vmatpush1.bf16.msra.mxu0 %v5246_v43  ;;  %1240 = vmatpush1.bf16.msra.mxu1 %v5247_v24 }
 0x39c   :  { %1200 = vmatprep.subr.bf16.mxu0 %v5248_v25  ;;  %1241 = vmatprep.subr.bf16.mxu1 %v5249_v47 }
 0x39f   :  { %1201 = vmatpush1.bf16.msra.mxu0 %v5250_v50  ;;  %1242 = vmatpush1.bf16.msra.mxu1 %v5251_v51 }
 0x3a0   :  { %1202 = vmatprep.subr.bf16.mxu0 %v5252_v54  ;;  %1243 = vmatprep.subr.bf16.mxu1 %v5253_v55 }
 0x3a3   :  { %1203 = vmatpush1.bf16.msra.mxu0 %v5254_v58  ;;  %1244 = vmatpush1.bf16.msra.mxu1 %v5255_v59 }
 0x3a4   :  { %1204 = vmatprep.subr.bf16.mxu0 %v5256_v62  ;;  %1245 = vmatprep.subr.bf16.mxu1 %v5257_v63 }
 0x3a7   :  { %1205 = vmatpush1.bf16.msra.mxu0 %v5258_v3  ;;  %1246 = vmatpush1.bf16.msra.mxu1 %v5259_v4  ;;  %v5290_v3 = vld [vmem:[#allocation20_spill] sm:$0xff] }
 0x3a8   :  { %1206 = vmatprep.subr.bf16.mxu0 %v5260_v7  ;;  %1247 = vmatprep.subr.bf16.mxu1 %v5261_v8 }
 0x3ab   :  { %1207 = vmatpush1.bf16.msra.mxu0 %v5262_v11  ;;  %1248 = vmatpush1.bf16.msra.mxu1 %v5263_v12  ;;  %v5291_v11 = vld [vmem:[#allocation22_spill] sm:$0xff] }
 0x3ac   :  { %1208 = vmatprep.subr.bf16.mxu0 %v5264_v15  ;;  %1249 = vmatprep.subr.bf16.mxu1 %v5265_v16 }
 0x3af   :  { %1209 = vmatpush1.bf16.msra.mxu0 %v5266_v27  ;;  %1250 = vmatpush1.bf16.msra.mxu1 %v5267_v30 }
 0x3b0   :  { %1210 = vmatprep.subr.bf16.mxu0 %v5268_v35  ;;  %1251 = vmatprep.subr.bf16.mxu1 %v5269_v38 }
 0x3b3   :  { %1211 = vmatpush1.bf16.msra.mxu0 %v5270_v45  ;;  %1252 = vmatpush1.bf16.msra.mxu1 %v5271_v37 }
 0x3b4   :  { %1212 = vmatprep.subr.bf16.mxu0 %v5272_v33  ;;  %1253 = vmatprep.subr.bf16.mxu1 %v5273_v40  ;;  %v5293_v33 = vld [vmem:[#allocation23_spill] sm:$0xff] }
 0x3b7   :  { %1213 = vmatpush1.bf16.msra.mxu0 %v5274_v36  ;;  %1254 = vmatpush1.bf16.msra.mxu1 %v5275_v46 }
 0x3b8   :  { %1214 = vmatprep.subr.bf16.mxu0 %v5276_v60  ;;  %1255 = vmatprep.subr.bf16.mxu1 %v5277_v52 }
 0x3bb   :  { %1215 = vmatpush1.bf16.msra.mxu0 %v5278_v49  ;;  %1256 = vmatpush1.bf16.msra.mxu1 %v5279_v28 }
 0x3bc   :  { %1216 = vmatprep.subr.bf16.mxu0 %v5280_v53  ;;  %1257 = vmatprep.subr.bf16.mxu1 %v5281_v19 }
 0x3bf   :  { %1217 = vmatpush1.bf16.msra.mxu0 %v5282_v20  ;;  %1258 = vmatpush1.bf16.msra.mxu1 %v5283_v56 }
 0x3c0   :  { %1296 = vmatprep.subr.bf16.mxu0 %v3820_v18  ;;  %1337 = vmatprep.subr.bf16.mxu1 %v3823_v17 }
 0x435   :  { %v998_v41 = vpop.f32.mrb[28].mxu0  ;;  %v1039_v61 = vpop.f32.mrb[28].mxu1 }
 0x436   :  { %v999_v29 = vadd.f32 %v998_v41, %v5286_v32  ;;  %v1000_v22 = vpop.f32.mrb[29].mxu0  ;;  %v1041_v1 = vpop.f32.mrb[29].mxu1  ;;  %v1040_v57 = vadd.f32 %v1039_v61, %v5288_v5 }
 0x437   :  { %v1001_v26 = vadd.f32 %v1000_v22, %v5287_v10  ;;  %v1002_v14 = vpop.f32.mrb[30].mxu0  ;;  %v1043_v9 = vpop.f32.mrb[30].mxu1  ;;  %v1042_v34 = vadd.f32 %v1041_v1, %v5289_v31 }
 0x438   :  { %v2502_v21 = vmul.f32 -1.442695, %v999_v29  ;;  %v1003_v2 = vpop.f32.mrb[31].mxu0  ;;  %v1044_v6 = vpop.f32.mrb[31].mxu1  ;;  %v2504_v39 = vmul.f32 -1.442695, %v1040_v57 }
 0x439   :  { %v2503_v0 = vmul.f32 -1.442695, %v1001_v26 }
 0x43a   :  { %2665 = vpow2.f32 %v2502_v21 }
 0x43b   :  { %2667 = vpow2.f32 %v2503_v0 }
 0x43c   :  { %2669 = vtanh.f32 %v1042_v34 }
 0x43d   :  { %2671 = vpow2.f32 %v2504_v39 }
 0x444   :  { %v2666_v42 = vpop.eup %2665 }
 0x445   :  { %v1055_v23 = vadd.f32 1.0, %v2666_v42  ;;  %v2668_v43 = vpop.eup %2667 }
 0x446   :  { %v1056_v24 = vadd.f32 1.0, %v2668_v43  ;;  %v2670_v25 = vpop.eup %2669  ;;  %v3849_v43 = vld [vmem:[#allocation6 + $0x8] ss:$16 sps:$4 sm:$0xff]  }
 0x447   :  { %2673 = vrcp.f32 %v1055_v23  ;;  %v2672_v47 = vpop.eup %2671  ;;  %v3846_v23 = vld [vmem:[#allocation6] ss:$16 sps:$4 sm:$0xff]  }
 0x448   :  { %2675 = vrcp.f32 %v1056_v24  ;;  %v1057_v55 = vadd.f32 1.0, %v2672_v47  ;;  %v3855_v24 = vld [vmem:[#allocation6 + $0x2c] ss:$16 sps:$4 sm:$0xff]   ;;  %v3863_v47 = vld [vmem:[#allocation6 + $0x28] ss:$16 sps:$4 sm:$0xff]  }
 0x44a   :  { %2677 = vrcp.f32 %v1057_v55  ;;  %v3875_v55 = vld [vmem:[#allocation6 + $0x48] ss:$16 sps:$4 sm:$0xff]  }
 0x451   :  { %v2674_v50 = vpop.eup %2673 }
 0x452   :  { %v1066_v51 = vmul.f32 %v2674_v50, %v2670_v25  ;;  %v2676_v54 = vpop.eup %2675  ;;  %v3860_v25 = vld [vmem:[#allocation6 + $0x20] ss:$16 sps:$4 sm:$0xff]   ;;  %v3866_v50 = vld [vmem:[#allocation6 + $0x44] ss:$16 sps:$4 sm:$0xff]  }
 0x453   :  { %v1065_v58 = vmul.f32 %v2676_v54, %v3713_v48  ;;  %v5292_v48 = vld [vmem:[#allocation21_spill] sm:$0xff]  ;;  %v3872_v54 = vld [vmem:[#allocation6 + $0x40] ss:$16 sps:$4 sm:$0xff]  }
 0x454   :  { %v2678_v37 = vpop.eup %2677 }
 0x455   :  { %v1108_v59 = vpop.f32.mrb[32].mxu0  ;;  %v1149_v62 = vpop.f32.mrb[32].mxu1  ;;  %v3831_v63 = vadd.f32 %v1066_v51, %v1065_v58  ;;  %v3869_v51 = vld [vmem:[#allocation6 + $0x4c] ss:$16 sps:$4 sm:$0xff]   ;;  %v3878_v58 = vld [vmem:[#allocation6 + $0x64] ss:$16 sps:$4 sm:$0xff]  }
 0x456   :  { %v1156_v4 = vadd.f32 %v1108_v59, %v5290_v3  ;;  %v1110_v7 = vpop.f32.mrb[33].mxu0  ;;  %v1151_v8 = vpop.f32.mrb[33].mxu1  ;;  %v1158_v45 = vadd.f32 %v1149_v62, %v5292_v48  ;;  %v3881_v59 = vld [vmem:[#allocation6 + $0x6c] ss:$16 sps:$4 sm:$0xff]   ;;  %v3884_v62 = vld [vmem:[#allocation6 + $0x60] ss:$16 sps:$4 sm:$0xff]  }
 0x457   :  { %v1157_v12 = vadd.f32 %v1110_v7, %v5291_v11  ;;  %v1112_v15 = vpop.f32.mrb[34].mxu0  ;;  %v1153_v16 = vpop.f32.mrb[34].mxu1  ;;  %2679 = vtanh.f32 %v3831_v63  ;;  %v1159_v40 = vadd.f32 %v1151_v8, %v5293_v33  ;;  %v3887_v3 = vld [vmem:[#allocation6 + $0x68] ss:$16 sps:$4 sm:$0xff]   ;;  %v3893_v7 = vld [vmem:[#allocation6 + $0x8c] ss:$16 sps:$4 sm:$0xff]  }
 0x458   :  { %v2505_v27 = vmul.f32 -1.442695, %v1156_v4  ;;  %v1113_v30 = vpop.f32.mrb[35].mxu0  ;;  %v1154_v35 = vpop.f32.mrb[35].mxu1  ;;  %v2507_v46 = vmul.f32 -1.442695, %v1158_v45 }
 0x459   :  { %v2506_v38 = vmul.f32 -1.442695, %v1157_v12  ;;  %v3890_v4 = vld [vmem:[#allocation6 + $0x84] ss:$16 sps:$4 sm:$0xff]   ;;  %v3896_v8 = vld [vmem:[#allocation6 + $0x80] ss:$16 sps:$4 sm:$0xff]  }
 0x45a   :  { %2681 = vpow2.f32 %v2505_v27  ;;  %v3899_v11 = vld [vmem:[#allocation6 + $0x88] ss:$16 sps:$4 sm:$0xff]   ;;  %v3902_v12 = vld [vmem:[#allocation6 + $0xa4] ss:$16 sps:$4 sm:$0xff]   ;;  %v3905_v15 = vld [vmem:[#allocation6 + $0xac] ss:$16 sps:$4 sm:$0xff]  }
 0x45b   :  { %2683 = vpow2.f32 %v2506_v38  ;;  %v3908_v16 = vld [vmem:[#allocation6 + $0xa0] ss:$16 sps:$4 sm:$0xff]   ;;  %v3911_v27 = vld [vmem:[#allocation6 + $0xa8] ss:$16 sps:$4 sm:$0xff]   ;;  %v3914_v30 = vld [vmem:[#allocation6 + $0xc4] ss:$16 sps:$4 sm:$0xff]  }
 0x45c   :  { %2685 = vtanh.f32 %v1159_v40  ;;  %v3917_v35 = vld [vmem:[#allocation6 + $0xcc] ss:$16 sps:$4 sm:$0xff]   ;;  %v3920_v38 = vld [vmem:[#allocation6 + $0xc0] ss:$16 sps:$4 sm:$0xff]   ;;  %v3923_v48 = vld [vmem:[#allocation6 + $0xc8] ss:$16 sps:$4 sm:$0xff]  }
 0x45d   :  { %2687 = vpow2.f32 %v2507_v46  ;;  %v3926_v45 = vld [vmem:[#allocation6 + $0xe4] ss:$16 sps:$4 sm:$0xff]   ;;  %v3932_v33 = vld [vmem:[#allocation6 + $0xe0] ss:$16 sps:$4 sm:$0xff]   ;;  %v3935_v40 = vld [vmem:[#allocation6 + $0xe8] ss:$16 sps:$4 sm:$0xff]  }
 0x45e   :  { %v3941_v46 = vld [vmem:[#allocation3 + $0x18] sm:$0xff] }
 0x461   :  { %v2680_v36 = vpop.eup %2679 }
 0x462   :  { %v1069_v60 = vmul.f32 %v2680_v36, %v2678_v37  ;;  %v3929_v37 = vld [vmem:[#allocation6 + $0xec] ss:$16 sps:$4 sm:$0xff]  }
 0x463   :  { %v3938_v36 = vld [vmem:[#allocation3 + $0x8] sm:$0xff] }
 0x464   :  { %v2682_v52 = vpop.eup %2681  ;;  %v1185_v61 = vpack.c.bf16 %v1069_v60, %v1069_v60  ;;  %v3946_v60 = vld [vmem:[#allocation3] sm:$0xff] }
 0x465   :  { %v1169_v41 = vadd.f32 1.0, %v2682_v52  ;;  %v2684_v29 = vpop.eup %2683  ;;  %v3949_v52 = vld [vmem:[#allocation3 + $0x10] sm:$0xff] }
 0x466   :  { %v1170_v22 = vadd.f32 1.0, %v2684_v29  ;;  %1218 = vmatprep.mubr.bf16.mxu0 %v1185_v61  ;;  %1259 = vmatprep.mubr.bf16.mxu1 %v1185_v61  ;;  %v2686_v1 = vpop.eup %2685  ;;  %v3955_v61 = vld [vmem:[#allocation3 + $0x38] sm:$0xff]  ;;  %v3958_v29 = vld [vmem:[#allocation3 + $0x20] sm:$0xff] }
 0x467   :  { %2689 = vrcp.f32 %v1169_v41  ;;  %v2688_v26 = vpop.eup %2687  ;;  %v3952_v41 = vld [vmem:[#allocation3 + $0x28] sm:$0xff] }
 0x468   :  { %2691 = vrcp.f32 %v1170_v22  ;;  %v1171_v2 = vadd.f32 1.0, %v2688_v26  ;;  %v3961_v22 = vld [vmem:[#allocation3 + $0x30] sm:$0xff]  ;;  %v3967_v26 = vld [vmem:[#allocation3 + $0x58] sm:$0xff] }
 0x46a   :  { %2693 = vrcp.f32 %v1171_v2  ;;  %v3979_v2 = vld [vmem:[#allocation3 + $0x78] sm:$0xff] }
 0x46b   :  { %5297 = vst [vmem:[#allocation19_spill] sm:$0xff] %v3979_v2 }
 0x471   :  { %v2690_v14 = vpop.eup %2689 }
 0x472   :  { %v1180_v9 = vmul.f32 %v2690_v14, %v2686_v1  ;;  %v2692_v21 = vpop.eup %2691  ;;  %v3964_v1 = vld [vmem:[#allocation3 + $0x48] sm:$0xff]  ;;  %v3970_v14 = vld [vmem:[#allocation3 + $0x40] sm:$0xff] }
 0x473   :  { %v1179_v6 = vmul.f32 %v2692_v21, %v3721_v44  ;;  %v3852_v44 = vld [vmem:[#allocation6 + $0x24] ss:$16 sps:$4 sm:$0xff]   ;;  %5294 = vst [vmem:[#allocation16_spill] sm:$0xff] %v3970_v14 }
 0x474   :  { %v2694_v57 = vpop.eup %2693  ;;  %v3976_v21 = vld [vmem:[#allocation3 + $0x68] sm:$0xff] }
 0x475   :  { %v3839_v0 = vadd.f32 %v1180_v9, %v1179_v6  ;;  %v3973_v9 = vld [vmem:[#allocation3 + $0x50] sm:$0xff]  ;;  %5296 = vst [vmem:[#allocation17_spill] sm:$0xff] %v3976_v21  ;;  %v3982_v6 = vld [vmem:[#allocation3 + $0x60] sm:$0xff] }
 0x476   :  { %5295 = vst [vmem:[#allocation18_spill] sm:$0xff] %v3973_v9  ;;  %5298 = vst [vmem:[#allocation46_spill] sm:$0xff] %v3982_v6 }
 0x477   :  { %2695 = vtanh.f32 %v3839_v0 }
 0x481   :  { %v2696_v34 = vpop.eup %2695 }
 0x482   :  { %v1183_v39 = vmul.f32 %v2696_v34, %v2694_v57  ;;  %v3985_v57 = vld [vmem:[#allocation3 + $0x70] sm:$0xff]  ;;  %v3988_v34 = vld [vmem:[#allocation3 + $0x88] sm:$0xff] }
 0x483   :  { %5299 = vst [vmem:[#allocation49_spill] sm:$0xff] %v3985_v57  ;;  %5300 = vst [vmem:[#allocation47_spill] sm:$0xff] %v3988_v34 }
 0x484   :  { %v3842_v42 = vpack.c.bf16 %v1183_v39, %v1183_v39  ;;  %v3991_v39 = vld [vmem:[#allocation3 + $0x98] sm:$0xff] }
 0x485   :  { %5301 = vst [vmem:[#allocation50_spill] sm:$0xff] %v3991_v39 }
 0x486   :  { %1219 = vmatmul.mubr.bf16.vlgmr.msra.gmra.mrb[36].mxu0 %v3842_v42  ;;  %1260 = vmatmul.mubr.bf16.vlgmr.msra.gmra.mrb[36].mxu1 %v3842_v42 }
 0x487   :  { %1297 = vmatpush1.bf16.msra.mxu0 %v3846_v23  ;;  %1338 = vmatpush1.bf16.msra.mxu1 %v3849_v43 }
 0x488   :  { %1298 = vmatprep.subr.bf16.mxu0 %v3852_v44  ;;  %1339 = vmatprep.subr.bf16.mxu1 %v3855_v24 }
 0x489   :  { %1328 = vmatprep.mubr.bf16.mxu0 %v5114_v13  ;;  %1369 = vmatprep.mubr.bf16.mxu1 %v5114_v13 }
 0x48b   :  { %1299 = vmatpush1.bf16.msra.mxu0 %v3860_v25  ;;  %1340 = vmatpush1.bf16.msra.mxu1 %v3863_v47 }
 0x48c   :  { %1300 = vmatprep.subr.bf16.mxu0 %v3866_v50  ;;  %1341 = vmatprep.subr.bf16.mxu1 %v3869_v51 }
 0x48f   :  { %1301 = vmatpush1.bf16.msra.mxu0 %v3872_v54  ;;  %1342 = vmatpush1.bf16.msra.mxu1 %v3875_v55 }
 0x490   :  { %1302 = vmatprep.subr.bf16.mxu0 %v3878_v58  ;;  %1343 = vmatprep.subr.bf16.mxu1 %v3881_v59 }
 0x493   :  { %1303 = vmatpush1.bf16.msra.mxu0 %v3884_v62  ;;  %1344 = vmatpush1.bf16.msra.mxu1 %v3887_v3 }
 0x494   :  { %1304 = vmatprep.subr.bf16.mxu0 %v3890_v4  ;;  %1345 = vmatprep.subr.bf16.mxu1 %v3893_v7 }
 0x497   :  { %1305 = vmatpush1.bf16.msra.mxu0 %v3896_v8  ;;  %1346 = vmatpush1.bf16.msra.mxu1 %v3899_v11 }
 0x498   :  { %1306 = vmatprep.subr.bf16.mxu0 %v3902_v12  ;;  %1347 = vmatprep.subr.bf16.mxu1 %v3905_v15 }
 0x49b   :  { %1307 = vmatpush1.bf16.msra.mxu0 %v3908_v16  ;;  %1348 = vmatpush1.bf16.msra.mxu1 %v3911_v27 }
 0x49c   :  { %1308 = vmatprep.subr.bf16.mxu0 %v3914_v30  ;;  %1349 = vmatprep.subr.bf16.mxu1 %v3917_v35 }
 0x49f   :  { %1309 = vmatpush1.bf16.msra.mxu0 %v3920_v38  ;;  %1350 = vmatpush1.bf16.msra.mxu1 %v3923_v48 }
 0x4a0   :  { %1310 = vmatprep.subr.bf16.mxu0 %v3926_v45  ;;  %1351 = vmatprep.subr.bf16.mxu1 %v3929_v37 }
 0x4a3   :  { %1311 = vmatpush1.bf16.msra.mxu0 %v3932_v33  ;;  %1352 = vmatpush1.bf16.msra.mxu1 %v3935_v40 }
 0x4a4   :  { %1408 = vmatprep.subr.bf16.mxu0 %v3938_v36  ;;  %1449 = vmatprep.subr.bf16.mxu1 %v3941_v46 }
 0x4a6   :  { %1329 = vmatmul.mubr.bf16.vlgmr.msra.gmra.mrb[40].mxu0 %v3842_v42  ;;  %1370 = vmatmul.mubr.bf16.vlgmr.msra.gmra.mrb[40].mxu1 %v3842_v42  ;;  %v3994_v42 = vld [vmem:[#allocation3 + $0x80] sm:$0xff] }
 0x4a7   :  { %1409 = vmatpush1.bf16.msra.mxu0 %v3946_v60  ;;  %1450 = vmatpush1.bf16.msra.mxu1 %v3949_v52  ;;  %5302 = vst [vmem:[#allocation48_spill] sm:$0xff] %v3994_v42 }
 0x4a8   :  { %1410 = vmatprep.subr.bf16.mxu0 %v3952_v41  ;;  %1451 = vmatprep.subr.bf16.mxu1 %v3955_v61 }
 0x4ab   :  { %1411 = vmatpush1.bf16.msra.mxu0 %v3958_v29  ;;  %1452 = vmatpush1.bf16.msra.mxu1 %v3961_v22 }
 0x4ac   :  { %1412 = vmatprep.subr.bf16.mxu0 %v3964_v1  ;;  %1453 = vmatprep.subr.bf16.mxu1 %v3967_v26 }
 0x4af   :  { %1413 = vmatpush1.bf16.msra.mxu0 %v3970_v14  ;;  %1454 = vmatpush1.bf16.msra.mxu1 %v3973_v9 }
 0x4b0   :  { %1414 = vmatprep.subr.bf16.mxu0 %v3976_v21  ;;  %1455 = vmatprep.subr.bf16.mxu1 %v3979_v2  ;;  %v3997_v2 = vld [vmem:[#allocation3 + $0x90] sm:$0xff] }
 0x4b1   :  { %5303 = vst [vmem:[#allocation51_spill] sm:$0xff] %v3997_v2 }
 0x4b3   :  { %1415 = vmatpush1.bf16.msra.mxu0 %v3982_v6  ;;  %1456 = vmatpush1.bf16.msra.mxu1 %v3985_v57  ;;  %v4000_v6 = vld [vmem:[#allocation3 + $0xa8] sm:$0xff]  ;;  %v4003_v57 = vld [vmem:[#allocation3 + $0xb8] sm:$0xff] }
 0x4b4   :  { %1416 = vmatprep.subr.bf16.mxu0 %v3988_v34  ;;  %1457 = vmatprep.subr.bf16.mxu1 %v3991_v39  ;;  %5304 = vst [vmem:[#allocation52_spill] sm:$0xff] %v4000_v6  ;;  %5305 = vst [vmem:[#allocation53_spill] sm:$0xff] %v4003_v57  ;;  %v4006_v34 = vld [vmem:[#allocation3 + $0xa0] sm:$0xff]  ;;  %v4009_v39 = vld [vmem:[#allocation3 + $0xb0] sm:$0xff] }
 0x4b5   :  { %5306 = vst [vmem:[#allocation54_spill] sm:$0xff] %v4006_v34  ;;  %5307 = vst [vmem:[#allocation55_spill] sm:$0xff] %v4009_v39 }
 0x4b7   :  { %1417 = vmatpush1.bf16.msra.mxu0 %v3994_v42  ;;  %1458 = vmatpush1.bf16.msra.mxu1 %v3997_v2  ;;  %v4012_v42 = vld [vmem:[#allocation3 + $0xc8] sm:$0xff]  ;;  %v4015_v2 = vld [vmem:[#allocation3 + $0xd8] sm:$0xff] }
 0x4b8   :  { %1418 = vmatprep.subr.bf16.mxu0 %v4000_v6  ;;  %1459 = vmatprep.subr.bf16.mxu1 %v4003_v57  ;;  %5308 = vst [vmem:[#allocation56_spill] sm:$0xff] %v4012_v42  ;;  %5309 = vst [vmem:[#allocation57_spill] sm:$0xff] %v4015_v2  ;;  %v4018_v6 = vld [vmem:[#allocation3 + $0xc0] sm:$0xff]  ;;  %v4021_v57 = vld [vmem:[#allocation3 + $0xd0] sm:$0xff] }
 0x4b9   :  { %5310 = vst [vmem:[#allocation58_spill] sm:$0xff] %v4018_v6  ;;  %5311 = vst [vmem:[#allocation59_spill] sm:$0xff] %v4021_v57 }
 0x4bb   :  { %1419 = vmatpush1.bf16.msra.mxu0 %v4006_v34  ;;  %1460 = vmatpush1.bf16.msra.mxu1 %v4009_v39  ;;  %v4024_v34 = vld [vmem:[#allocation3 + $0xe8] sm:$0xff]  ;;  %v4027_v39 = vld [vmem:[#allocation3 + $0xf8] sm:$0xff] }
 0x4bc   :  { %1420 = vmatprep.subr.bf16.mxu0 %v4012_v42  ;;  %1461 = vmatprep.subr.bf16.mxu1 %v4015_v2  ;;  %5312 = vst [vmem:[#allocation60_spill] sm:$0xff] %v4024_v34  ;;  %5313 = vst [vmem:[#allocation61_spill] sm:$0xff] %v4027_v39  ;;  %v4030_v42 = vld [vmem:[#allocation3 + $0xe0] sm:$0xff]  ;;  %v4033_v2 = vld [vmem:[#allocation3 + $0xf0] sm:$0xff] }
 0x4bd   :  { %5314 = vst [vmem:[#allocation62_spill] sm:$0xff] %v4030_v42  ;;  %5315 = vst [vmem:[#allocation63_spill] sm:$0xff] %v4033_v2 }
 0x4bf   :  { %1421 = vmatpush1.bf16.msra.mxu0 %v4018_v6  ;;  %1462 = vmatpush1.bf16.msra.mxu1 %v4021_v57  ;;  %v4036_v6 = vld [vmem:[#allocation3 + $0x108] sm:$0xff]  ;;  %v4039_v57 = vld [vmem:[#allocation3 + $0x118] sm:$0xff] }
 0x4c0   :  { %1422 = vmatprep.subr.bf16.mxu0 %v4024_v34  ;;  %1463 = vmatprep.subr.bf16.mxu1 %v4027_v39  ;;  %5316 = vst [vmem:[#allocation64_spill] sm:$0xff] %v4036_v6  ;;  %5317 = vst [vmem:[#allocation65_spill] sm:$0xff] %v4039_v57  ;;  %v4042_v34 = vld [vmem:[#allocation3 + $0x100] sm:$0xff]  ;;  %v4045_v39 = vld [vmem:[#allocation3 + $0x110] sm:$0xff] }
 0x4c1   :  { %5318 = vst [vmem:[#allocation66_spill] sm:$0xff] %v4042_v34  ;;  %5319 = vst [vmem:[#allocation67_spill] sm:$0xff] %v4045_v39 }
 0x4c3   :  { %1423 = vmatpush1.bf16.msra.mxu0 %v4030_v42  ;;  %1464 = vmatpush1.bf16.msra.mxu1 %v4033_v2  ;;  %v4048_v42 = vld [vmem:[#allocation3 + $0x128] sm:$0xff]  ;;  %v4051_v2 = vld [vmem:[#allocation3 + $0x138] sm:$0xff] }
 0x4c4   :  { %1424 = vmatprep.subr.bf16.mxu0 %v4036_v6  ;;  %1465 = vmatprep.subr.bf16.mxu1 %v4039_v57  ;;  %5320 = vst [vmem:[#allocation68_spill] sm:$0xff] %v4048_v42  ;;  %5321 = vst [vmem:[#allocation69_spill] sm:$0xff] %v4051_v2  ;;  %v4054_v6 = vld [vmem:[#allocation3 + $0x120] sm:$0xff]  ;;  %v4057_v57 = vld [vmem:[#allocation3 + $0x130] sm:$0xff] }
 0x4c5   :  { %5322 = vst [vmem:[#allocation70_spill] sm:$0xff] %v4054_v6  ;;  %5323 = vst [vmem:[#allocation71_spill] sm:$0xff] %v4057_v57 }
 0x4c7   :  { %1425 = vmatpush1.bf16.msra.mxu0 %v4042_v34  ;;  %1466 = vmatpush1.bf16.msra.mxu1 %v4045_v39  ;;  %v4060_v34 = vld [vmem:[#allocation3 + $0x148] sm:$0xff]  ;;  %v4063_v39 = vld [vmem:[#allocation3 + $0x158] sm:$0xff] }
 0x4c8   :  { %1426 = vmatprep.subr.bf16.mxu0 %v4048_v42  ;;  %1467 = vmatprep.subr.bf16.mxu1 %v4051_v2  ;;  %5324 = vst [vmem:[#allocation72_spill] sm:$0xff] %v4060_v34  ;;  %5325 = vst [vmem:[#allocation73_spill] sm:$0xff] %v4063_v39  ;;  %v4066_v42 = vld [vmem:[#allocation3 + $0x140] sm:$0xff]  ;;  %v4069_v2 = vld [vmem:[#allocation3 + $0x150] sm:$0xff] }
 0x4c9   :  { %5326 = vst [vmem:[#allocation74_spill] sm:$0xff] %v4066_v42  ;;  %5327 = vst [vmem:[#allocation75_spill] sm:$0xff] %v4069_v2 }
 0x4cb   :  { %1427 = vmatpush1.bf16.msra.mxu0 %v4054_v6  ;;  %1468 = vmatpush1.bf16.msra.mxu1 %v4057_v57  ;;  %v4072_v6 = vld [vmem:[#allocation3 + $0x168] sm:$0xff]  ;;  %v4075_v57 = vld [vmem:[#allocation3 + $0x178] sm:$0xff] }
 0x4cc   :  { %1428 = vmatprep.subr.bf16.mxu0 %v4060_v34  ;;  %1469 = vmatprep.subr.bf16.mxu1 %v4063_v39  ;;  %5328 = vst [vmem:[#allocation76_spill] sm:$0xff] %v4072_v6  ;;  %5329 = vst [vmem:[#allocation77_spill] sm:$0xff] %v4075_v57  ;;  %v4078_v34 = vld [vmem:[#allocation3 + $0x160] sm:$0xff]  ;;  %v4081_v39 = vld [vmem:[#allocation3 + $0x170] sm:$0xff] }
 0x4cd   :  { %5330 = vst [vmem:[#allocation78_spill] sm:$0xff] %v4078_v34  ;;  %5331 = vst [vmem:[#allocation79_spill] sm:$0xff] %v4081_v39 }
 0x4cf   :  { %1429 = vmatpush1.bf16.msra.mxu0 %v4066_v42  ;;  %1470 = vmatpush1.bf16.msra.mxu1 %v4069_v2  ;;  %v4084_v42 = vld [vmem:[#allocation3 + $0x188] sm:$0xff]  ;;  %v4087_v2 = vld [vmem:[#allocation3 + $0x198] sm:$0xff] }
 0x4d0   :  { %1430 = vmatprep.subr.bf16.mxu0 %v4072_v6  ;;  %1471 = vmatprep.subr.bf16.mxu1 %v4075_v57  ;;  %5332 = vst [vmem:[#allocation80_spill] sm:$0xff] %v4084_v42  ;;  %5333 = vst [vmem:[#allocation81_spill] sm:$0xff] %v4087_v2  ;;  %v4090_v6 = vld [vmem:[#allocation3 + $0x180] sm:$0xff]  ;;  %v4093_v57 = vld [vmem:[#allocation3 + $0x190] sm:$0xff] }
 0x4d1   :  { %5334 = vst [vmem:[#allocation82_spill] sm:$0xff] %v4090_v6  ;;  %5335 = vst [vmem:[#allocation83_spill] sm:$0xff] %v4093_v57 }
 0x4d3   :  { %1431 = vmatpush1.bf16.msra.mxu0 %v4078_v34  ;;  %1472 = vmatpush1.bf16.msra.mxu1 %v4081_v39  ;;  %v4096_v34 = vld [vmem:[#allocation3 + $0x1a8] sm:$0xff]  ;;  %v4099_v39 = vld [vmem:[#allocation3 + $0x1b8] sm:$0xff] }
 0x4d4   :  { %1432 = vmatprep.subr.bf16.mxu0 %v4084_v42  ;;  %1473 = vmatprep.subr.bf16.mxu1 %v4087_v2  ;;  %5336 = vst [vmem:[#allocation84_spill] sm:$0xff] %v4096_v34  ;;  %5337 = vst [vmem:[#allocation85_spill] sm:$0xff] %v4099_v39  ;;  %v4102_v42 = vld [vmem:[#allocation3 + $0x1a0] sm:$0xff]  ;;  %v4105_v2 = vld [vmem:[#allocation3 + $0x1b0] sm:$0xff] }
 0x4d5   :  { %5338 = vst [vmem:[#allocation86_spill] sm:$0xff] %v4102_v42  ;;  %5339 = vst [vmem:[#allocation87_spill] sm:$0xff] %v4105_v2 }
 0x4d7   :  { %1433 = vmatpush1.bf16.msra.mxu0 %v4090_v6  ;;  %1474 = vmatpush1.bf16.msra.mxu1 %v4093_v57  ;;  %v4108_v6 = vld [vmem:[#allocation3 + $0x1c8] sm:$0xff]  ;;  %v4111_v57 = vld [vmem:[#allocation3 + $0x1d8] sm:$0xff] }
 0x4d8   :  { %1434 = vmatprep.subr.bf16.mxu0 %v4096_v34  ;;  %1475 = vmatprep.subr.bf16.mxu1 %v4099_v39  ;;  %5340 = vst [vmem:[#allocation88_spill] sm:$0xff] %v4108_v6  ;;  %5341 = vst [vmem:[#allocation89_spill] sm:$0xff] %v4111_v57 }
 0x4db   :  { %1435 = vmatpush1.bf16.msra.mxu0 %v4102_v42  ;;  %1476 = vmatpush1.bf16.msra.mxu1 %v4105_v2 }
 0x4dc   :  { %1436 = vmatprep.subr.bf16.mxu0 %v4108_v6  ;;  %1477 = vmatprep.subr.bf16.mxu1 %v4111_v57 }
 0x4df   :  { %1437 = vmatpush1.bf16.msra.mxu0 %v5278_v49  ;;  %1478 = vmatpush1.bf16.msra.mxu1 %v5279_v28 }
 0x4e0   :  { %1438 = vmatprep.subr.bf16.mxu0 %v5280_v53  ;;  %1479 = vmatprep.subr.bf16.mxu1 %v5281_v19 }
 0x4e3   :  { %1439 = vmatpush1.bf16.msra.mxu0 %v5282_v20  ;;  %1480 = vmatpush1.bf16.msra.mxu1 %v5283_v56 }
 0x4e4   :  { %1518 = vmatprep.subr.bf16.mxu0 %v3820_v18  ;;  %1559 = vmatprep.subr.bf16.mxu1 %v3823_v17 }
 0x559   :  { %v1220_v6 = vpop.f32.mrb[36].mxu0  ;;  %v1261_v2 = vpop.f32.mrb[36].mxu1 }
 0x55a   :  { %v1221_v57 = vadd.f32 %v1220_v6, %v5286_v32  ;;  %v1222_v42 = vpop.f32.mrb[37].mxu0  ;;  %v1263_v49 = vpop.f32.mrb[37].mxu1  ;;  %v1262_v56 = vadd.f32 %v1261_v2, %v5288_v5 }
 0x55b   :  { %v1223_v28 = vadd.f32 %v1222_v42, %v5287_v10  ;;  %v1224_v39 = vpop.f32.mrb[38].mxu0  ;;  %v1265_v53 = vpop.f32.mrb[38].mxu1  ;;  %v1264_v17 = vadd.f32 %v1263_v49, %v5289_v31 }
 0x55c   :  { %v2508_v34 = vmul.f32 -1.442695, %v1221_v57  ;;  %v1225_v19 = vpop.f32.mrb[39].mxu0  ;;  %v1266_v21 = vpop.f32.mrb[39].mxu1  ;;  %v2510_v18 = vmul.f32 -1.442695, %v1262_v56 }
 0x55d   :  { %v2509_v20 = vmul.f32 -1.442695, %v1223_v28  ;;  %v5342_v56 = vld [vmem:[#allocation24_spill] sm:$0xff] }
 0x55e   :  { %2697 = vpow2.f32 %v2508_v34 }
 0x55f   :  { %2699 = vpow2.f32 %v2509_v20 }
 0x560   :  { %2701 = vtanh.f32 %v1264_v17 }
 0x561   :  { %2703 = vpow2.f32 %v2510_v18  ;;  %v5343_v18 = vld [vmem:[#allocation26_spill] sm:$0xff] }
 0x568   :  { %v2698_v9 = vpop.eup %2697 }
 0x569   :  { %v1277_v14 = vadd.f32 1.0, %v2698_v9  ;;  %v2700_v6 = vpop.eup %2699 }
 0x56a   :  { %v1278_v42 = vadd.f32 1.0, %v2700_v6  ;;  %v2702_v39 = vpop.eup %2701 }
 0x56b   :  { %2705 = vrcp.f32 %v1277_v14  ;;  %v2704_v57 = vpop.eup %2703 }
 0x56c   :  { %2707 = vrcp.f32 %v1278_v42  ;;  %v1279_v34 = vadd.f32 1.0, %v2704_v57 }
 0x56e   :  { %2709 = vrcp.f32 %v1279_v34 }
 0x575   :  { %v2706_v53 = vpop.eup %2705 }
 0x576   :  { %v1288_v21 = vmul.f32 %v2706_v53, %v2702_v39  ;;  %v2708_v28 = vpop.eup %2707 }
 0x577   :  { %v1287_v19 = vmul.f32 %v2708_v28, %v3831_v63  ;;  %v5344_v63 = vld [vmem:[#allocation25_spill] sm:$0xff]  ;;  %v5345_v28 = vld [vmem:[#allocation27_spill] sm:$0xff] }
 0x579   :  { %v1330_v2 = vpop.f32.mrb[40].mxu0  ;;  %v1371_v20 = vpop.f32.mrb[40].mxu1  ;;  %v4127_v49 = vadd.f32 %v1288_v21, %v1287_v19 }
 0x57a   :  { %v1378_v9 = vadd.f32 %v1330_v2, %v5342_v56  ;;  %v1332_v17 = vpop.f32.mrb[41].mxu0  ;;  %v1373_v31 = vpop.f32.mrb[41].mxu1  ;;  %v1380_v53 = vadd.f32 %v1371_v20, %v5344_v63 }
 0x57b   :  { %v1379_v14 = vadd.f32 %v1332_v17, %v5343_v18  ;;  %v1334_v6 = vpop.f32.mrb[42].mxu0  ;;  %v1375_v42 = vpop.f32.mrb[42].mxu1  ;;  %2711 = vtanh.f32 %v4127_v49  ;;  %v1381_v19 = vadd.f32 %v1373_v31, %v5345_v28  ;;  %v5347_v28 = vld [vmem:[#allocation18_spill] sm:$0xff] }
 0x57c   :  { %v2511_v5 = vmul.f32 -1.442695, %v1378_v9  ;;  %v1335_v10 = vpop.f32.mrb[43].mxu0  ;;  %v1376_v39 = vpop.f32.mrb[43].mxu1  ;;  %v2513_v56 = vmul.f32 -1.442695, %v1380_v53 }
 0x57d   :  { %v2512_v57 = vmul.f32 -1.442695, %v1379_v14  ;;  %v2710_v21 = vpop.eup %2709 }
 0x57e   :  { %2713 = vpow2.f32 %v2511_v5 }
 0x57f   :  { %2715 = vpow2.f32 %v2512_v57 }
 0x580   :  { %2717 = vtanh.f32 %v1381_v19  ;;  %v5348_v19 = vld [vmem:[#allocation17_spill] sm:$0xff] }
 0x581   :  { %2719 = vpow2.f32 %v2513_v56  ;;  %v5350_v56 = vld [vmem:[#allocation46_spill] sm:$0xff] }
 0x585   :  { %v2712_v2 = vpop.eup %2711 }
 0x586   :  { %v1291_v34 = vmul.f32 %v2712_v2, %v2710_v21  ;;  %v5349_v2 = vld [vmem:[#allocation19_spill] sm:$0xff] }
 0x588   :  { %v2714_v32 = vpop.eup %2713  ;;  %v1407_v18 = vpack.c.bf16 %v1291_v34, %v1291_v34  ;;  %v5351_v34 = vld [vmem:[#allocation49_spill] sm:$0xff] }
 0x589   :  { %v1391_v17 = vadd.f32 1.0, %v2714_v32  ;;  %v2716_v9 = vpop.eup %2715 }
 0x58a   :  { %v1392_v10 = vadd.f32 1.0, %v2716_v9  ;;  %1440 = vmatprep.mubr.bf16.mxu0 %v1407_v18  ;;  %1481 = vmatprep.mubr.bf16.mxu1 %v1407_v18  ;;  %v2718_v5 = vpop.eup %2717  ;;  %v5353_v18 = vld [vmem:[#allocation50_spill] sm:$0xff]  ;;  %v5354_v9 = vld [vmem:[#allocation48_spill] sm:$0xff] }
 0x58b   :  { %2721 = vrcp.f32 %v1391_v17  ;;  %v2720_v14 = vpop.eup %2719  ;;  %v5352_v17 = vld [vmem:[#allocation47_spill] sm:$0xff] }
 0x58c   :  { %2723 = vrcp.f32 %v1392_v10  ;;  %v1393_v31 = vadd.f32 1.0, %v2720_v14  ;;  %v5355_v10 = vld [vmem:[#allocation51_spill] sm:$0xff]  ;;  %v5357_v14 = vld [vmem:[#allocation53_spill] sm:$0xff] }
 0x58e   :  { %2725 = vrcp.f32 %v1393_v31  ;;  %v5361_v31 = vld [vmem:[#allocation57_spill] sm:$0xff] }
 0x595   :  { %v2722_v20 = vpop.eup %2721 }
 0x596   :  { %v1402_v6 = vmul.f32 %v2722_v20, %v2718_v5  ;;  %v2724_v42 = vpop.eup %2723  ;;  %v5356_v5 = vld [vmem:[#allocation52_spill] sm:$0xff]  ;;  %v5358_v20 = vld [vmem:[#allocation54_spill] sm:$0xff] }
 0x597   :  { %v1401_v39 = vmul.f32 %v2724_v42, %v3839_v0  ;;  %v5346_v0 = vld [vmem:[#allocation16_spill] sm:$0xff] }
 0x598   :  { %v2726_v32 = vpop.eup %2725  ;;  %v5360_v42 = vld [vmem:[#allocation56_spill] sm:$0xff] }
 0x599   :  { %v4135_v57 = vadd.f32 %v1402_v6, %v1401_v39  ;;  %v5359_v6 = vld [vmem:[#allocation55_spill] sm:$0xff]  ;;  %v5362_v39 = vld [vmem:[#allocation58_spill] sm:$0xff] }
 0x59b   :  { %2727 = vtanh.f32 %v4135_v57 }
 0x5a5   :  { %v2728_v63 = vpop.eup %2727 }
 0x5a6   :  { %v1405_v53 = vmul.f32 %v2728_v63, %v2726_v32  ;;  %v5363_v32 = vld [vmem:[#allocation59_spill] sm:$0xff]  ;;  %v5364_v63 = vld [vmem:[#allocation60_spill] sm:$0xff] }
 0x5a8   :  { %v1406_v21 = vpack.c.bf16 %v1405_v53, %v1405_v53  ;;  %v5365_v53 = vld [vmem:[#allocation61_spill] sm:$0xff] }
 0x5aa   :  { %1441 = vmatmul.mubr.bf16.vlgmr.msra.gmra.mrb[44].mxu0 %v1406_v21  ;;  %1482 = vmatmul.mubr.bf16.vlgmr.msra.gmra.mrb[44].mxu1 %v1406_v21 }
 0x5ab   :  { %1519 = vmatpush1.bf16.msra.mxu0 %v3846_v23  ;;  %1560 = vmatpush1.bf16.msra.mxu1 %v3849_v43 }
 0x5ac   :  { %1520 = vmatprep.subr.bf16.mxu0 %v3852_v44  ;;  %1561 = vmatprep.subr.bf16.mxu1 %v3855_v24 }
 0x5ad   :  { %1550 = vmatprep.mubr.bf16.mxu0 %v5114_v13  ;;  %1591 = vmatprep.mubr.bf16.mxu1 %v5114_v13 }
 0x5af   :  { %1521 = vmatpush1.bf16.msra.mxu0 %v3860_v25  ;;  %1562 = vmatpush1.bf16.msra.mxu1 %v3863_v47 }
 0x5b0   :  { %1522 = vmatprep.subr.bf16.mxu0 %v3866_v50  ;;  %1563 = vmatprep.subr.bf16.mxu1 %v3869_v51 }
 0x5b3   :  { %1523 = vmatpush1.bf16.msra.mxu0 %v3872_v54  ;;  %1564 = vmatpush1.bf16.msra.mxu1 %v3875_v55 }
 0x5b4   :  { %1524 = vmatprep.subr.bf16.mxu0 %v3878_v58  ;;  %1565 = vmatprep.subr.bf16.mxu1 %v3881_v59 }
 0x5b7   :  { %1525 = vmatpush1.bf16.msra.mxu0 %v3884_v62  ;;  %1566 = vmatpush1.bf16.msra.mxu1 %v3887_v3 }
 0x5b8   :  { %1526 = vmatprep.subr.bf16.mxu0 %v3890_v4  ;;  %1567 = vmatprep.subr.bf16.mxu1 %v3893_v7 }
 0x5bb   :  { %1527 = vmatpush1.bf16.msra.mxu0 %v3896_v8  ;;  %1568 = vmatpush1.bf16.msra.mxu1 %v3899_v11 }
 0x5bc   :  { %1528 = vmatprep.subr.bf16.mxu0 %v3902_v12  ;;  %1569 = vmatprep.subr.bf16.mxu1 %v3905_v15 }
 0x5bf   :  { %1529 = vmatpush1.bf16.msra.mxu0 %v3908_v16  ;;  %1570 = vmatpush1.bf16.msra.mxu1 %v3911_v27 }
 0x5c0   :  { %1530 = vmatprep.subr.bf16.mxu0 %v3914_v30  ;;  %1571 = vmatprep.subr.bf16.mxu1 %v3917_v35 }
 0x5c3   :  { %1531 = vmatpush1.bf16.msra.mxu0 %v3920_v38  ;;  %1572 = vmatpush1.bf16.msra.mxu1 %v3923_v48 }
 0x5c4   :  { %1532 = vmatprep.subr.bf16.mxu0 %v3926_v45  ;;  %1573 = vmatprep.subr.bf16.mxu1 %v3929_v37 }
 0x5c7   :  { %1533 = vmatpush1.bf16.msra.mxu0 %v3932_v33  ;;  %1574 = vmatpush1.bf16.msra.mxu1 %v3935_v40 }
 0x5c8   :  { %1630 = vmatprep.subr.bf16.mxu0 %v3938_v36  ;;  %1671 = vmatprep.subr.bf16.mxu1 %v3941_v46 }
 0x5ca   :  { %1551 = vmatmul.mubr.bf16.vlgmr.msra.gmra.mrb[48].mxu0 %v1406_v21  ;;  %1592 = vmatmul.mubr.bf16.vlgmr.msra.gmra.mrb[48].mxu1 %v1406_v21  ;;  %v5366_v21 = vld [vmem:[#allocation62_spill] sm:$0xff] }
 0x5cb   :  { %1631 = vmatpush1.bf16.msra.mxu0 %v3946_v60  ;;  %1672 = vmatpush1.bf16.msra.mxu1 %v3949_v52 }
 0x5cc   :  { %1632 = vmatprep.subr.bf16.mxu0 %v3952_v41  ;;  %1673 = vmatprep.subr.bf16.mxu1 %v3955_v61 }
 0x5cf   :  { %1633 = vmatpush1.bf16.msra.mxu0 %v3958_v29  ;;  %1674 = vmatpush1.bf16.msra.mxu1 %v3961_v22 }
 0x5d0   :  { %1634 = vmatprep.subr.bf16.mxu0 %v3964_v1  ;;  %1675 = vmatprep.subr.bf16.mxu1 %v3967_v26 }
 0x5d3   :  { %1635 = vmatpush1.bf16.msra.mxu0 %v5346_v0  ;;  %1676 = vmatpush1.bf16.msra.mxu1 %v5347_v28 }
 0x5d4   :  { %1636 = vmatprep.subr.bf16.mxu0 %v5348_v19  ;;  %1677 = vmatprep.subr.bf16.mxu1 %v5349_v2  ;;  %v5405_v2 = vld [vmem:[#allocation15_spill] sm:$0xff] }
 0x5d7   :  { %1637 = vmatpush1.bf16.msra.mxu0 %v5350_v56  ;;  %1678 = vmatpush1.bf16.msra.mxu1 %v5351_v34 }
 0x5d8   :  { %1638 = vmatprep.subr.bf16.mxu0 %v5352_v17  ;;  %1679 = vmatprep.subr.bf16.mxu1 %v5353_v18 }
 0x5db   :  { %1639 = vmatpush1.bf16.msra.mxu0 %v5354_v9  ;;  %1680 = vmatpush1.bf16.msra.mxu1 %v5355_v10  ;;  %v5403_v10 = vld [vmem:[#allocation14_spill] sm:$0xff] }
 0x5dc   :  { %1640 = vmatprep.subr.bf16.mxu0 %v5356_v5  ;;  %1681 = vmatprep.subr.bf16.mxu1 %v5357_v14  ;;  %v5367_v5 = vld [vmem:[#allocation63_spill] sm:$0xff]  ;;  %v5368_v14 = vld [vmem:[#allocation64_spill] sm:$0xff] }
 0x5df   :  { %1641 = vmatpush1.bf16.msra.mxu0 %v5358_v20  ;;  %1682 = vmatpush1.bf16.msra.mxu1 %v5359_v6  ;;  %v5369_v20 = vld [vmem:[#allocation65_spill] sm:$0xff]  ;;  %v5370_v6 = vld [vmem:[#allocation66_spill] sm:$0xff] }
 0x5e0   :  { %1642 = vmatprep.subr.bf16.mxu0 %v5360_v42  ;;  %1683 = vmatprep.subr.bf16.mxu1 %v5361_v31  ;;  %v5371_v42 = vld [vmem:[#allocation67_spill] sm:$0xff]  ;;  %v5372_v31 = vld [vmem:[#allocation68_spill] sm:$0xff] }
 0x5e3   :  { %1643 = vmatpush1.bf16.msra.mxu0 %v5362_v39  ;;  %1684 = vmatpush1.bf16.msra.mxu1 %v5363_v32  ;;  %v5373_v39 = vld [vmem:[#allocation69_spill] sm:$0xff]  ;;  %v5374_v32 = vld [vmem:[#allocation70_spill] sm:$0xff] }
 0x5e4   :  { %1644 = vmatprep.subr.bf16.mxu0 %v5364_v63  ;;  %1685 = vmatprep.subr.bf16.mxu1 %v5365_v53  ;;  %v5375_v63 = vld [vmem:[#allocation71_spill] sm:$0xff]  ;;  %v5376_v53 = vld [vmem:[#allocation72_spill] sm:$0xff] }
 0x5e7   :  { %1645 = vmatpush1.bf16.msra.mxu0 %v5366_v21  ;;  %1686 = vmatpush1.bf16.msra.mxu1 %v5367_v5  ;;  %v5377_v21 = vld [vmem:[#allocation73_spill] sm:$0xff]  ;;  %v5378_v5 = vld [vmem:[#allocation74_spill] sm:$0xff] }
 0x5e8   :  { %1646 = vmatprep.subr.bf16.mxu0 %v5368_v14  ;;  %1687 = vmatprep.subr.bf16.mxu1 %v5369_v20  ;;  %v5379_v14 = vld [vmem:[#allocation75_spill] sm:$0xff]  ;;  %v5380_v20 = vld [vmem:[#allocation76_spill] sm:$0xff] }
 0x5eb   :  { %1647 = vmatpush1.bf16.msra.mxu0 %v5370_v6  ;;  %1688 = vmatpush1.bf16.msra.mxu1 %v5371_v42  ;;  %v5381_v6 = vld [vmem:[#allocation77_spill] sm:$0xff]  ;;  %v5382_v42 = vld [vmem:[#allocation78_spill] sm:$0xff] }
 0x5ec   :  { %1648 = vmatprep.subr.bf16.mxu0 %v5372_v31  ;;  %1689 = vmatprep.subr.bf16.mxu1 %v5373_v39  ;;  %v5383_v31 = vld [vmem:[#allocation79_spill] sm:$0xff]  ;;  %v5384_v39 = vld [vmem:[#allocation80_spill] sm:$0xff] }
 0x5ef   :  { %1649 = vmatpush1.bf16.msra.mxu0 %v5374_v32  ;;  %1690 = vmatpush1.bf16.msra.mxu1 %v5375_v63  ;;  %v5385_v32 = vld [vmem:[#allocation81_spill] sm:$0xff]  ;;  %v5386_v63 = vld [vmem:[#allocation82_spill] sm:$0xff] }
 0x5f0   :  { %1650 = vmatprep.subr.bf16.mxu0 %v5376_v53  ;;  %1691 = vmatprep.subr.bf16.mxu1 %v5377_v21  ;;  %v5387_v53 = vld [vmem:[#allocation83_spill] sm:$0xff]  ;;  %v5388_v21 = vld [vmem:[#allocation84_spill] sm:$0xff] }
 0x5f3   :  { %1651 = vmatpush1.bf16.msra.mxu0 %v5378_v5  ;;  %1692 = vmatpush1.bf16.msra.mxu1 %v5379_v14  ;;  %v5389_v5 = vld [vmem:[#allocation85_spill] sm:$0xff]  ;;  %v5390_v14 = vld [vmem:[#allocation86_spill] sm:$0xff] }
 0x5f4   :  { %1652 = vmatprep.subr.bf16.mxu0 %v5380_v20  ;;  %1693 = vmatprep.subr.bf16.mxu1 %v5381_v6  ;;  %v5391_v20 = vld [vmem:[#allocation87_spill] sm:$0xff]  ;;  %v5392_v6 = vld [vmem:[#allocation88_spill] sm:$0xff] }
 0x5f7   :  { %1653 = vmatpush1.bf16.msra.mxu0 %v5382_v42  ;;  %1694 = vmatpush1.bf16.msra.mxu1 %v5383_v31  ;;  %v5393_v42 = vld [vmem:[#allocation89_spill] sm:$0xff]  ;;  %v4228_v31 = vld [vmem:[#allocation3 + $0x1c0] sm:$0xff] }
 0x5f8   :  { %1654 = vmatprep.subr.bf16.mxu0 %v5384_v39  ;;  %1695 = vmatprep.subr.bf16.mxu1 %v5385_v32  ;;  %5394 = vst [vmem:[#allocation90_spill] sm:$0xff] %v4228_v31  ;;  %v4231_v32 = vld [vmem:[#allocation3 + $0x1d0] sm:$0xff] }
 0x5f9   :  { %5395 = vst [vmem:[#allocation91_spill] sm:$0xff] %v4231_v32 }
 0x5fb   :  { %1655 = vmatpush1.bf16.msra.mxu0 %v5386_v63  ;;  %1696 = vmatpush1.bf16.msra.mxu1 %v5387_v53  ;;  %v4234_v53 = vld [vmem:[#allocation3 + $0x1e8] sm:$0xff] }
 0x5fc   :  { %1656 = vmatprep.subr.bf16.mxu0 %v5388_v21  ;;  %1697 = vmatprep.subr.bf16.mxu1 %v5389_v5  ;;  %5396 = vst [vmem:[#allocation92_spill] sm:$0xff] %v4234_v53  ;;  %v4237_v5 = vld [vmem:[#allocation3 + $0x1f8] sm:$0xff]  ;;  %v5402_v21 = vld [vmem:[#allocation12_spill] sm:$0xff] }
 0x5fd   :  { %5397 = vst [vmem:[#allocation93_spill] sm:$0xff] %v4237_v5 }
 0x5ff   :  { %1657 = vmatpush1.bf16.msra.mxu0 %v5390_v14  ;;  %1698 = vmatpush1.bf16.msra.mxu1 %v5391_v20  ;;  %v4240_v20 = vld [vmem:[#allocation3 + $0x1e0] sm:$0xff] }
 0x600   :  { %1658 = vmatprep.subr.bf16.mxu0 %v5392_v6  ;;  %1699 = vmatprep.subr.bf16.mxu1 %v5393_v42  ;;  %5398 = vst [vmem:[#allocation94_spill] sm:$0xff] %v4240_v20  ;;  %v4243_v42 = vld [vmem:[#allocation3 + $0x1f0] sm:$0xff] }
 0x601   :  { %5399 = vst [vmem:[#allocation95_spill] sm:$0xff] %v4243_v42  ;;  %v5401_v6 = vld [vmem:[#allocation45_spill] sm:$0xff] }
 0x603   :  { %1659 = vmatpush1.bf16.msra.mxu0 %v4228_v31  ;;  %1700 = vmatpush1.bf16.msra.mxu1 %v4231_v32  ;;  %v5400_v31 = vld [vmem:[#allocation44_spill] sm:$0xff] }
 0x604   :  { %1660 = vmatprep.subr.bf16.mxu0 %v4234_v53  ;;  %1701 = vmatprep.subr.bf16.mxu1 %v4237_v5 }
 0x607   :  { %1661 = vmatpush1.bf16.msra.mxu0 %v4240_v20  ;;  %1702 = vmatpush1.bf16.msra.mxu1 %v4243_v42  ;;  %v5404_v42 = vld [vmem:[#allocation13_spill] sm:$0xff] }
 0x608   :  { %1740 = vmatprep.subr.bf16.mxu0 %v5400_v31  ;;  %1781 = vmatprep.subr.bf16.mxu1 %v5401_v6 }
 0x67d   :  { %v1442_v32 = vpop.f32.mrb[44].mxu0  ;;  %v1483_v14 = vpop.f32.mrb[44].mxu1 }
 0x67e   :  { %v1443_v53 = vadd.f32 %v1442_v32, %v5402_v21  ;;  %v1444_v63 = vpop.f32.mrb[45].mxu0  ;;  %v1485_v39 = vpop.f32.mrb[45].mxu1  ;;  %v1484_v31 = vadd.f32 %v1483_v14, %v5404_v42 }
 0x67f   :  { %v1445_v5 = vadd.f32 %v1444_v63, %v5403_v10  ;;  %v1446_v9 = vpop.f32.mrb[46].mxu0  ;;  %v1487_v18 = vpop.f32.mrb[46].mxu1  ;;  %v1486_v6 = vadd.f32 %v1485_v39, %v5405_v2 }
 0x680   :  { %v2514_v17 = vmul.f32 -1.442695, %v1443_v53  ;;  %v1447_v20 = vpop.f32.mrb[47].mxu0  ;;  %v1488_v34 = vpop.f32.mrb[47].mxu1  ;;  %v2516_v19 = vmul.f32 -1.442695, %v1484_v31 }
 0x681   :  { %v2515_v56 = vmul.f32 -1.442695, %v1445_v5  ;;  %v5406_v31 = vld [vmem:[#allocation28_spill] sm:$0xff] }
 0x682   :  { %2729 = vpow2.f32 %v2514_v17 }
 0x683   :  { %2731 = vpow2.f32 %v2515_v56 }
 0x684   :  { %2733 = vtanh.f32 %v1486_v6 }
 0x685   :  { %2735 = vpow2.f32 %v2516_v19 }
 0x68c   :  { %v2730_v28 = vpop.eup %2729 }
 0x68d   :  { %v1499_v0 = vadd.f32 1.0, %v2730_v28  ;;  %v2732_v32 = vpop.eup %2731 }
 0x68e   :  { %v1500_v63 = vadd.f32 1.0, %v2732_v32  ;;  %v2734_v18 = vpop.eup %2733 }
 0x68f   :  { %2737 = vrcp.f32 %v1499_v0  ;;  %v2736_v9 = vpop.eup %2735  ;;  %v5407_v0 = vld [vmem:[#allocation30_spill] sm:$0xff] }
 0x690   :  { %2739 = vrcp.f32 %v1500_v63  ;;  %v1501_v17 = vadd.f32 1.0, %v2736_v9 }
 0x692   :  { %2741 = vrcp.f32 %v1501_v17 }
 0x699   :  { %v2738_v20 = vpop.eup %2737 }
 0x69a   :  { %v1510_v34 = vmul.f32 %v2738_v20, %v2734_v18  ;;  %v2740_v5 = vpop.eup %2739 }
 0x69b   :  { %v1509_v56 = vmul.f32 %v2740_v5, %v4127_v49  ;;  %v5408_v49 = vld [vmem:[#allocation29_spill] sm:$0xff]  ;;  %v5409_v5 = vld [vmem:[#allocation31_spill] sm:$0xff] }
 0x69d   :  { %v1552_v14 = vpop.f32.mrb[48].mxu0  ;;  %v1593_v53 = vpop.f32.mrb[48].mxu1  ;;  %v4253_v39 = vadd.f32 %v1510_v34, %v1509_v56 }
 0x69e   :  { %v1600_v28 = vadd.f32 %v1552_v14, %v5406_v31  ;;  %v1554_v6 = vpop.f32.mrb[49].mxu0  ;;  %v1595_v2 = vpop.f32.mrb[49].mxu1  ;;  %v1602_v20 = vadd.f32 %v1593_v53, %v5408_v49 }
 0x69f   :  { %v1601_v19 = vadd.f32 %v1554_v6, %v5407_v0  ;;  %v1556_v32 = vpop.f32.mrb[50].mxu0  ;;  %v1597_v63 = vpop.f32.mrb[50].mxu1  ;;  %2743 = vtanh.f32 %v4253_v39  ;;  %v1603_v56 = vadd.f32 %v1595_v2, %v5409_v5  ;;  %v5451_v5 = vld [vmem:[#allocation83_spill] sm:$0xff] }
 0x6a0   :  { %v2517_v42 = vmul.f32 -1.442695, %v1600_v28  ;;  %v1557_v10 = vpop.f32.mrb[51].mxu0  ;;  %v1598_v18 = vpop.f32.mrb[51].mxu1  ;;  %v2519_v31 = vmul.f32 -1.442695, %v1602_v20 }
 0x6a1   :  { %v2518_v9 = vmul.f32 -1.442695, %v1601_v19  ;;  %v2742_v34 = vpop.eup %2741 }
 0x6a2   :  { %2745 = vpow2.f32 %v2517_v42 }
 0x6a3   :  { %2747 = vpow2.f32 %v2518_v9 }
 0x6a4   :  { %2749 = vtanh.f32 %v1603_v56  ;;  %v5452_v56 = vld [vmem:[#allocation84_spill] sm:$0xff] }
 0x6a5   :  { %2751 = vpow2.f32 %v2519_v31  ;;  %v5454_v31 = vld [vmem:[#allocation86_spill] sm:$0xff] }
 0x6a9   :  { %v2744_v14 = vpop.eup %2743 }
 0x6aa   :  { %v1513_v17 = vmul.f32 %v2744_v14, %v2742_v34  ;;  %v5453_v14 = vld [vmem:[#allocation85_spill] sm:$0xff] }
 0x6ac   :  { %v2746_v21 = vpop.eup %2745  ;;  %v1629_v0 = vpack.c.bf16 %v1513_v17, %v1513_v17  ;;  %v5455_v17 = vld [vmem:[#allocation87_spill] sm:$0xff] }
 0x6ad   :  { %v1613_v6 = vadd.f32 1.0, %v2746_v21  ;;  %v2748_v28 = vpop.eup %2747 }
 0x6ae   :  { %v1614_v10 = vadd.f32 1.0, %v2748_v28  ;;  %1662 = vmatprep.mubr.bf16.mxu0 %v1629_v0  ;;  %1703 = vmatprep.mubr.bf16.mxu1 %v1629_v0  ;;  %v2750_v42 = vpop.eup %2749  ;;  %v5457_v0 = vld [vmem:[#allocation89_spill] sm:$0xff]  ;;  %v5458_v28 = vld [vmem:[#allocation90_spill] sm:$0xff] }
 0x6af   :  { %2753 = vrcp.f32 %v1613_v6  ;;  %v2752_v19 = vpop.eup %2751  ;;  %v5456_v6 = vld [vmem:[#allocation88_spill] sm:$0xff] }
 0x6b0   :  { %2755 = vrcp.f32 %v1614_v10  ;;  %v1615_v2 = vadd.f32 1.0, %v2752_v19  ;;  %v5459_v10 = vld [vmem:[#allocation91_spill] sm:$0xff]  ;;  %v5461_v19 = vld [vmem:[#allocation93_spill] sm:$0xff] }
 0x6b2   :  { %2757 = vrcp.f32 %v1615_v2  ;;  %v4363_v2 = vld [vmem:[#allocation6 + $0xc] ss:$16 sps:$4 sm:$0xff]  }
 0x6b9   :  { %v2754_v53 = vpop.eup %2753 }
 0x6ba   :  { %v1624_v32 = vmul.f32 %v2754_v53, %v2750_v42  ;;  %v2756_v63 = vpop.eup %2755  ;;  %v5460_v42 = vld [vmem:[#allocation92_spill] sm:$0xff]  ;;  %v5462_v53 = vld [vmem:[#allocation94_spill] sm:$0xff] }
 0x6bb   :  { %v1623_v18 = vmul.f32 %v2756_v63, %v4135_v57  ;;  %v5450_v57 = vld [vmem:[#allocation82_spill] sm:$0xff] }
 0x6bc   :  { %v2758_v21 = vpop.eup %2757  ;;  %v4360_v63 = vld [vmem:[#allocation6 + $0x4] ss:$16 sps:$4 sm:$0xff]  }
 0x6bd   :  { %v4261_v9 = vadd.f32 %v1624_v32, %v1623_v18  ;;  %v5463_v32 = vld [vmem:[#allocation95_spill] sm:$0xff] }
 0x6bf   :  { %2759 = vtanh.f32 %v4261_v9 }
 0x6c9   :  { %v2760_v49 = vpop.eup %2759 }
 0x6ca   :  { %v1627_v20 = vmul.f32 %v2760_v49, %v2758_v21  ;;  %v5464_v49 = vld [vmem:[#allocation12_spill] sm:$0xff] }
 0x6cc   :  { %v1628_v34 = vpack.c.bf16 %v1627_v20, %v1627_v20 }
 0x6ce   :  { %1663 = vmatmul.mubr.bf16.vlgmr.msra.gmra.mrb[52].mxu0 %v1628_v34  ;;  %1704 = vmatmul.mubr.bf16.vlgmr.msra.gmra.mrb[52].mxu1 %v1628_v34 }
 0x6cf   :  { %1741 = vmatpush1.bf16.msra.mxu0 %v3846_v23  ;;  %1782 = vmatpush1.bf16.msra.mxu1 %v3849_v43  ;;  %v5410_v23 = vld [vmem:[#allocation16_spill] sm:$0xff]  ;;  %v5411_v43 = vld [vmem:[#allocation18_spill] sm:$0xff] }
 0x6d0   :  { %1742 = vmatprep.subr.bf16.mxu0 %v3852_v44  ;;  %1783 = vmatprep.subr.bf16.mxu1 %v3855_v24  ;;  %v5412_v44 = vld [vmem:[#allocation17_spill] sm:$0xff]  ;;  %v5413_v24 = vld [vmem:[#allocation19_spill] sm:$0xff] }
 0x6d1   :  { %1772 = vmatprep.mubr.bf16.mxu0 %v5114_v13  ;;  %1813 = vmatprep.mubr.bf16.mxu1 %v5114_v13 }
 0x6d3   :  { %1743 = vmatpush1.bf16.msra.mxu0 %v3860_v25  ;;  %1784 = vmatpush1.bf16.msra.mxu1 %v3863_v47  ;;  %v5414_v25 = vld [vmem:[#allocation46_spill] sm:$0xff]  ;;  %v5415_v47 = vld [vmem:[#allocation49_spill] sm:$0xff] }
 0x6d4   :  { %1744 = vmatprep.subr.bf16.mxu0 %v3866_v50  ;;  %1785 = vmatprep.subr.bf16.mxu1 %v3869_v51  ;;  %v5416_v50 = vld [vmem:[#allocation47_spill] sm:$0xff]  ;;  %v5417_v51 = vld [vmem:[#allocation50_spill] sm:$0xff] }
 0x6d7   :  { %1745 = vmatpush1.bf16.msra.mxu0 %v3872_v54  ;;  %1786 = vmatpush1.bf16.msra.mxu1 %v3875_v55  ;;  %v5418_v54 = vld [vmem:[#allocation48_spill] sm:$0xff]  ;;  %v5419_v55 = vld [vmem:[#allocation51_spill] sm:$0xff] }
 0x6d8   :  { %1746 = vmatprep.subr.bf16.mxu0 %v3878_v58  ;;  %1787 = vmatprep.subr.bf16.mxu1 %v3881_v59  ;;  %v5420_v58 = vld [vmem:[#allocation52_spill] sm:$0xff]  ;;  %v5421_v59 = vld [vmem:[#allocation53_spill] sm:$0xff] }
 0x6db   :  { %1747 = vmatpush1.bf16.msra.mxu0 %v3884_v62  ;;  %1788 = vmatpush1.bf16.msra.mxu1 %v3887_v3  ;;  %v5422_v62 = vld [vmem:[#allocation54_spill] sm:$0xff]  ;;  %v5423_v3 = vld [vmem:[#allocation55_spill] sm:$0xff] }
 0x6dc   :  { %1748 = vmatprep.subr.bf16.mxu0 %v3890_v4  ;;  %1789 = vmatprep.subr.bf16.mxu1 %v3893_v7  ;;  %v5424_v4 = vld [vmem:[#allocation56_spill] sm:$0xff]  ;;  %v5425_v7 = vld [vmem:[#allocation57_spill] sm:$0xff] }
 0x6df   :  { %1749 = vmatpush1.bf16.msra.mxu0 %v3896_v8  ;;  %1790 = vmatpush1.bf16.msra.mxu1 %v3899_v11  ;;  %v5426_v8 = vld [vmem:[#allocation58_spill] sm:$0xff]  ;;  %v5427_v11 = vld [vmem:[#allocation59_spill] sm:$0xff] }
 0x6e0   :  { %1750 = vmatprep.subr.bf16.mxu0 %v3902_v12  ;;  %1791 = vmatprep.subr.bf16.mxu1 %v3905_v15  ;;  %v5428_v12 = vld [vmem:[#allocation60_spill] sm:$0xff]  ;;  %v5429_v15 = vld [vmem:[#allocation61_spill] sm:$0xff] }
 0x6e3   :  { %1751 = vmatpush1.bf16.msra.mxu0 %v3908_v16  ;;  %1792 = vmatpush1.bf16.msra.mxu1 %v3911_v27  ;;  %v5430_v16 = vld [vmem:[#allocation62_spill] sm:$0xff]  ;;  %v5431_v27 = vld [vmem:[#allocation63_spill] sm:$0xff] }
 0x6e4   :  { %1752 = vmatprep.subr.bf16.mxu0 %v3914_v30  ;;  %1793 = vmatprep.subr.bf16.mxu1 %v3917_v35  ;;  %v5432_v30 = vld [vmem:[#allocation64_spill] sm:$0xff]  ;;  %v5433_v35 = vld [vmem:[#allocation65_spill] sm:$0xff] }
 0x6e7   :  { %1753 = vmatpush1.bf16.msra.mxu0 %v3920_v38  ;;  %1794 = vmatpush1.bf16.msra.mxu1 %v3923_v48  ;;  %v5434_v38 = vld [vmem:[#allocation66_spill] sm:$0xff]  ;;  %v5435_v48 = vld [vmem:[#allocation67_spill] sm:$0xff] }
 0x6e8   :  { %1754 = vmatprep.subr.bf16.mxu0 %v3926_v45  ;;  %1795 = vmatprep.subr.bf16.mxu1 %v3929_v37  ;;  %v5436_v45 = vld [vmem:[#allocation68_spill] sm:$0xff]  ;;  %v5437_v37 = vld [vmem:[#allocation69_spill] sm:$0xff] }
 0x6eb   :  { %1755 = vmatpush1.bf16.msra.mxu0 %v3932_v33  ;;  %1796 = vmatpush1.bf16.msra.mxu1 %v3935_v40  ;;  %v5438_v33 = vld [vmem:[#allocation70_spill] sm:$0xff]  ;;  %v5439_v40 = vld [vmem:[#allocation71_spill] sm:$0xff] }
 0x6ec   :  { %1852 = vmatprep.subr.bf16.mxu0 %v3938_v36  ;;  %1893 = vmatprep.subr.bf16.mxu1 %v3941_v46  ;;  %v5440_v36 = vld [vmem:[#allocation72_spill] sm:$0xff]  ;;  %v5441_v46 = vld [vmem:[#allocation73_spill] sm:$0xff] }
 0x6ee   :  { %1773 = vmatmul.mubr.bf16.vlgmr.msra.gmra.mrb[56].mxu0 %v1628_v34  ;;  %1814 = vmatmul.mubr.bf16.vlgmr.msra.gmra.mrb[56].mxu1 %v1628_v34 }
 0x6ef   :  { %1853 = vmatpush1.bf16.msra.mxu0 %v3946_v60  ;;  %1894 = vmatpush1.bf16.msra.mxu1 %v3949_v52  ;;  %v5442_v60 = vld [vmem:[#allocation74_spill] sm:$0xff]  ;;  %v5443_v52 = vld [vmem:[#allocation75_spill] sm:$0xff] }
 0x6f0   :  { %1854 = vmatprep.subr.bf16.mxu0 %v3952_v41  ;;  %1895 = vmatprep.subr.bf16.mxu1 %v3955_v61  ;;  %v5444_v41 = vld [vmem:[#allocation76_spill] sm:$0xff]  ;;  %v5445_v61 = vld [vmem:[#allocation77_spill] sm:$0xff] }
 0x6f3   :  { %1855 = vmatpush1.bf16.msra.mxu0 %v3958_v29  ;;  %1896 = vmatpush1.bf16.msra.mxu1 %v3961_v22  ;;  %v5446_v29 = vld [vmem:[#allocation78_spill] sm:$0xff]  ;;  %v5447_v22 = vld [vmem:[#allocation79_spill] sm:$0xff] }
 0x6f4   :  { %1856 = vmatprep.subr.bf16.mxu0 %v3964_v1  ;;  %1897 = vmatprep.subr.bf16.mxu1 %v3967_v26  ;;  %v5448_v1 = vld [vmem:[#allocation80_spill] sm:$0xff]  ;;  %v5449_v26 = vld [vmem:[#allocation81_spill] sm:$0xff] }
 0x6f7   :  { %1857 = vmatpush1.bf16.msra.mxu0 %v5410_v23  ;;  %1898 = vmatpush1.bf16.msra.mxu1 %v5411_v43  ;;  %v5465_v43 = vld [vmem:[#allocation14_spill] sm:$0xff] }
 0x6f8   :  { %1858 = vmatprep.subr.bf16.mxu0 %v5412_v44  ;;  %1899 = vmatprep.subr.bf16.mxu1 %v5413_v24 }
 0x6fb   :  { %1859 = vmatpush1.bf16.msra.mxu0 %v5414_v25  ;;  %1900 = vmatpush1.bf16.msra.mxu1 %v5415_v47 }
 0x6fc   :  { %1860 = vmatprep.subr.bf16.mxu0 %v5416_v50  ;;  %1901 = vmatprep.subr.bf16.mxu1 %v5417_v51 }
 0x6ff   :  { %1861 = vmatpush1.bf16.msra.mxu0 %v5418_v54  ;;  %1902 = vmatpush1.bf16.msra.mxu1 %v5419_v55  ;;  %v5466_v55 = vld [vmem:[#allocation13_spill] sm:$0xff] }
 0x700   :  { %1862 = vmatprep.subr.bf16.mxu0 %v5420_v58  ;;  %1903 = vmatprep.subr.bf16.mxu1 %v5421_v59  ;;  %v5467_v59 = vld [vmem:[#allocation15_spill] sm:$0xff] }
 0x703   :  { %1863 = vmatpush1.bf16.msra.mxu0 %v5422_v62  ;;  %1904 = vmatpush1.bf16.msra.mxu1 %v5423_v3 }
 0x704   :  { %1864 = vmatprep.subr.bf16.mxu0 %v5424_v4  ;;  %1905 = vmatprep.subr.bf16.mxu1 %v5425_v7 }
 0x707   :  { %1865 = vmatpush1.bf16.msra.mxu0 %v5426_v8  ;;  %1906 = vmatpush1.bf16.msra.mxu1 %v5427_v11 }
 0x708   :  { %1866 = vmatprep.subr.bf16.mxu0 %v5428_v12  ;;  %1907 = vmatprep.subr.bf16.mxu1 %v5429_v15 }
 0x70b   :  { %1867 = vmatpush1.bf16.msra.mxu0 %v5430_v16  ;;  %1908 = vmatpush1.bf16.msra.mxu1 %v5431_v27 }
 0x70c   :  { %1868 = vmatprep.subr.bf16.mxu0 %v5432_v30  ;;  %1909 = vmatprep.subr.bf16.mxu1 %v5433_v35 }
 0x70f   :  { %1869 = vmatpush1.bf16.msra.mxu0 %v5434_v38  ;;  %1910 = vmatpush1.bf16.msra.mxu1 %v5435_v48 }
 0x710   :  { %1870 = vmatprep.subr.bf16.mxu0 %v5436_v45  ;;  %1911 = vmatprep.subr.bf16.mxu1 %v5437_v37 }
 0x713   :  { %1871 = vmatpush1.bf16.msra.mxu0 %v5438_v33  ;;  %1912 = vmatpush1.bf16.msra.mxu1 %v5439_v40  ;;  %v5468_v33 = vld [vmem:[#allocation32_spill] sm:$0xff] }
 0x714   :  { %1872 = vmatprep.subr.bf16.mxu0 %v5440_v36  ;;  %1913 = vmatprep.subr.bf16.mxu1 %v5441_v46 }
 0x717   :  { %1873 = vmatpush1.bf16.msra.mxu0 %v5442_v60  ;;  %1914 = vmatpush1.bf16.msra.mxu1 %v5443_v52  ;;  %v5469_v60 = vld [vmem:[#allocation34_spill] sm:$0xff] }
 0x718   :  { %1874 = vmatprep.subr.bf16.mxu0 %v5444_v41  ;;  %1915 = vmatprep.subr.bf16.mxu1 %v5445_v61 }
 0x71b   :  { %1875 = vmatpush1.bf16.msra.mxu0 %v5446_v29  ;;  %1916 = vmatpush1.bf16.msra.mxu1 %v5447_v22 }
 0x71c   :  { %1876 = vmatprep.subr.bf16.mxu0 %v5448_v1  ;;  %1917 = vmatprep.subr.bf16.mxu1 %v5449_v26 }
 0x71f   :  { %1877 = vmatpush1.bf16.msra.mxu0 %v5450_v57  ;;  %1918 = vmatpush1.bf16.msra.mxu1 %v5451_v5 }
 0x720   :  { %1878 = vmatprep.subr.bf16.mxu0 %v5452_v56  ;;  %1919 = vmatprep.subr.bf16.mxu1 %v5453_v14  ;;  %v5471_v56 = vld [vmem:[#allocation35_spill] sm:$0xff] }
 0x723   :  { %1879 = vmatpush1.bf16.msra.mxu0 %v5454_v31  ;;  %1920 = vmatpush1.bf16.msra.mxu1 %v5455_v17 }
 0x724   :  { %1880 = vmatprep.subr.bf16.mxu0 %v5456_v6  ;;  %1921 = vmatprep.subr.bf16.mxu1 %v5457_v0 }
 0x727   :  { %1881 = vmatpush1.bf16.msra.mxu0 %v5458_v28  ;;  %1922 = vmatpush1.bf16.msra.mxu1 %v5459_v10 }
 0x728   :  { %1882 = vmatprep.subr.bf16.mxu0 %v5460_v42  ;;  %1923 = vmatprep.subr.bf16.mxu1 %v5461_v19 }
 0x72b   :  { %1883 = vmatpush1.bf16.msra.mxu0 %v5462_v53  ;;  %1924 = vmatpush1.bf16.msra.mxu1 %v5463_v32 }
 0x72c   :  { %1962 = vmatprep.subr.bf16.mxu0 %v4360_v63  ;;  %2003 = vmatprep.subr.bf16.mxu1 %v4363_v2 }
 0x7a1   :  { %v1664_v18 = vpop.f32.mrb[52].mxu0  ;;  %v1705_v21 = vpop.f32.mrb[52].mxu1 }
 0x7a2   :  { %v1665_v20 = vadd.f32 %v1664_v18, %v5464_v49  ;;  %v1666_v34 = vpop.f32.mrb[53].mxu0  ;;  %v1707_v23 = vpop.f32.mrb[53].mxu1  ;;  %v1706_v58 = vadd.f32 %v1705_v21, %v5466_v55 }
 0x7a3   :  { %v1667_v44 = vadd.f32 %v1666_v34, %v5465_v43  ;;  %v1668_v24 = vpop.f32.mrb[54].mxu0  ;;  %v1709_v25 = vpop.f32.mrb[54].mxu1  ;;  %v1708_v62 = vadd.f32 %v1707_v23, %v5467_v59 }
 0x7a4   :  { %v2520_v47 = vmul.f32 -1.442695, %v1665_v20  ;;  %v1669_v50 = vpop.f32.mrb[55].mxu0  ;;  %v1710_v51 = vpop.f32.mrb[55].mxu1  ;;  %v2522_v3 = vmul.f32 -1.442695, %v1706_v58 }
 0x7a5   :  { %v2521_v54 = vmul.f32 -1.442695, %v1667_v44 }
 0x7a6   :  { %2761 = vpow2.f32 %v2520_v47 }
 0x7a7   :  { %2763 = vpow2.f32 %v2521_v54 }
 0x7a8   :  { %2765 = vtanh.f32 %v1708_v62 }
 0x7a9   :  { %2767 = vpow2.f32 %v2522_v3 }
 0x7b0   :  { %v2762_v4 = vpop.eup %2761 }
 0x7b1   :  { %v1721_v7 = vadd.f32 1.0, %v2762_v4  ;;  %v2764_v8 = vpop.eup %2763 }
 0x7b2   :  { %v1722_v11 = vadd.f32 1.0, %v2764_v8  ;;  %v2766_v12 = vpop.eup %2765  ;;  %v4389_v8 = vld [vmem:[#allocation6 + $0x8] ss:$16 sps:$4 sm:$0xff]  }
 0x7b3   :  { %2769 = vrcp.f32 %v1721_v7  ;;  %v2768_v15 = vpop.eup %2767  ;;  %v4386_v7 = vld [vmem:[#allocation6] ss:$16 sps:$4 sm:$0xff]  }
 0x7b4   :  { %2771 = vrcp.f32 %v1722_v11  ;;  %v1723_v35 = vadd.f32 1.0, %v2768_v15  ;;  %v4395_v11 = vld [vmem:[#allocation6 + $0x2c] ss:$16 sps:$4 sm:$0xff]   ;;  %v4403_v15 = vld [vmem:[#allocation6 + $0x28] ss:$16 sps:$4 sm:$0xff]  }
 0x7b6   :  { %2773 = vrcp.f32 %v1723_v35  ;;  %v4415_v35 = vld [vmem:[#allocation6 + $0x48] ss:$16 sps:$4 sm:$0xff]  }
 0x7bd   :  { %v2770_v16 = vpop.eup %2769 }
 0x7be   :  { %v1732_v27 = vmul.f32 %v2770_v16, %v2766_v12  ;;  %v2772_v30 = vpop.eup %2771  ;;  %v4400_v12 = vld [vmem:[#allocation6 + $0x20] ss:$16 sps:$4 sm:$0xff]   ;;  %v4406_v16 = vld [vmem:[#allocation6 + $0x44] ss:$16 sps:$4 sm:$0xff]  }
 0x7bf   :  { %v1731_v38 = vmul.f32 %v2772_v30, %v4253_v39  ;;  %v5470_v39 = vld [vmem:[#allocation33_spill] sm:$0xff]  ;;  %v4412_v30 = vld [vmem:[#allocation6 + $0x40] ss:$16 sps:$4 sm:$0xff]  }
 0x7c0   :  { %v2774_v5 = vpop.eup %2773 }
 0x7c1   :  { %v1774_v48 = vpop.f32.mrb[56].mxu0  ;;  %v1815_v45 = vpop.f32.mrb[56].mxu1  ;;  %v4371_v37 = vadd.f32 %v1732_v27, %v1731_v38  ;;  %v4409_v27 = vld [vmem:[#allocation6 + $0x4c] ss:$16 sps:$4 sm:$0xff]   ;;  %v4418_v38 = vld [vmem:[#allocation6 + $0x64] ss:$16 sps:$4 sm:$0xff]  }
 0x7c2   :  { %v1822_v40 = vadd.f32 %v1774_v48, %v5468_v33  ;;  %v1776_v36 = vpop.f32.mrb[57].mxu0  ;;  %v1817_v46 = vpop.f32.mrb[57].mxu1  ;;  %v1824_v57 = vadd.f32 %v1815_v45, %v5470_v39  ;;  %v4421_v48 = vld [vmem:[#allocation6 + $0x6c] ss:$16 sps:$4 sm:$0xff]   ;;  %v4424_v45 = vld [vmem:[#allocation6 + $0x60] ss:$16 sps:$4 sm:$0xff]  }
 0x7c3   :  { %v1823_v52 = vadd.f32 %v1776_v36, %v5469_v60  ;;  %v1778_v41 = vpop.f32.mrb[58].mxu0  ;;  %v1819_v61 = vpop.f32.mrb[58].mxu1  ;;  %2775 = vtanh.f32 %v4371_v37  ;;  %v1825_v14 = vadd.f32 %v1817_v46, %v5471_v56  ;;  %v4427_v33 = vld [vmem:[#allocation6 + $0x68] ss:$16 sps:$4 sm:$0xff]   ;;  %v4433_v36 = vld [vmem:[#allocation6 + $0x8c] ss:$16 sps:$4 sm:$0xff]  }
 0x7c4   :  { %v2523_v29 = vmul.f32 -1.442695, %v1822_v40  ;;  %v1779_v22 = vpop.f32.mrb[59].mxu0  ;;  %v1820_v1 = vpop.f32.mrb[59].mxu1  ;;  %v2525_v17 = vmul.f32 -1.442695, %v1824_v57 }
 0x7c5   :  { %v2524_v26 = vmul.f32 -1.442695, %v1823_v52  ;;  %v4430_v40 = vld [vmem:[#allocation6 + $0x84] ss:$16 sps:$4 sm:$0xff]   ;;  %v4436_v46 = vld [vmem:[#allocation6 + $0x80] ss:$16 sps:$4 sm:$0xff]  }
 0x7c6   :  { %2777 = vpow2.f32 %v2523_v29  ;;  %v4439_v60 = vld [vmem:[#allocation6 + $0x88] ss:$16 sps:$4 sm:$0xff]   ;;  %v4442_v52 = vld [vmem:[#allocation6 + $0xa4] ss:$16 sps:$4 sm:$0xff]   ;;  %v4445_v41 = vld [vmem:[#allocation6 + $0xac] ss:$16 sps:$4 sm:$0xff]  }
 0x7c7   :  { %2779 = vpow2.f32 %v2524_v26  ;;  %v4448_v61 = vld [vmem:[#allocation6 + $0xa0] ss:$16 sps:$4 sm:$0xff]   ;;  %v4451_v29 = vld [vmem:[#allocation6 + $0xa8] ss:$16 sps:$4 sm:$0xff]   ;;  %v4454_v22 = vld [vmem:[#allocation6 + $0xc4] ss:$16 sps:$4 sm:$0xff]  }
 0x7c8   :  { %2781 = vtanh.f32 %v1825_v14  ;;  %v4457_v1 = vld [vmem:[#allocation6 + $0xcc] ss:$16 sps:$4 sm:$0xff]   ;;  %v4460_v26 = vld [vmem:[#allocation6 + $0xc0] ss:$16 sps:$4 sm:$0xff]   ;;  %v4463_v39 = vld [vmem:[#allocation6 + $0xc8] ss:$16 sps:$4 sm:$0xff]  }
 0x7c9   :  { %2783 = vpow2.f32 %v2525_v17  ;;  %v4466_v57 = vld [vmem:[#allocation6 + $0xe4] ss:$16 sps:$4 sm:$0xff]   ;;  %v4472_v56 = vld [vmem:[#allocation6 + $0xe0] ss:$16 sps:$4 sm:$0xff]   ;;  %v4475_v14 = vld [vmem:[#allocation6 + $0xe8] ss:$16 sps:$4 sm:$0xff]  }
 0x7ca   :  { %v4481_v17 = vld [vmem:[#allocation3 + $0x18] sm:$0xff] }
 0x7cd   :  { %v2776_v31 = vpop.eup %2775 }
 0x7ce   :  { %v1735_v6 = vmul.f32 %v2776_v31, %v2774_v5  ;;  %v4469_v5 = vld [vmem:[#allocation6 + $0xec] ss:$16 sps:$4 sm:$0xff]  }
 0x7cf   :  { %v4478_v31 = vld [vmem:[#allocation3 + $0x8] sm:$0xff] }
 0x7d0   :  { %v2778_v0 = vpop.eup %2777  ;;  %v1851_v21 = vpack.c.bf16 %v1735_v6, %v1735_v6  ;;  %v4486_v6 = vld [vmem:[#allocation3] sm:$0xff] }
 0x7d1   :  { %v1835_v18 = vadd.f32 1.0, %v2778_v0  ;;  %v2780_v20 = vpop.eup %2779  ;;  %v4489_v0 = vld [vmem:[#allocation3 + $0x10] sm:$0xff] }
 0x7d2   :  { %v1836_v34 = vadd.f32 1.0, %v2780_v20  ;;  %1884 = vmatprep.mubr.bf16.mxu0 %v1851_v21  ;;  %1925 = vmatprep.mubr.bf16.mxu1 %v1851_v21  ;;  %v2782_v23 = vpop.eup %2781  ;;  %v4495_v21 = vld [vmem:[#allocation3 + $0x38] sm:$0xff]  ;;  %v4498_v20 = vld [vmem:[#allocation3 + $0x20] sm:$0xff] }
 0x7d3   :  { %2785 = vrcp.f32 %v1835_v18  ;;  %v2784_v44 = vpop.eup %2783  ;;  %v4492_v18 = vld [vmem:[#allocation3 + $0x28] sm:$0xff] }
 0x7d4   :  { %2787 = vrcp.f32 %v1836_v34  ;;  %v1837_v50 = vadd.f32 1.0, %v2784_v44  ;;  %v4501_v34 = vld [vmem:[#allocation3 + $0x30] sm:$0xff]  ;;  %v4507_v44 = vld [vmem:[#allocation3 + $0x58] sm:$0xff] }
 0x7d6   :  { %2789 = vrcp.f32 %v1837_v50  ;;  %v4519_v50 = vld [vmem:[#allocation3 + $0x78] sm:$0xff] }
 0x7d7   :  { %5475 = vst [vmem:[#allocation99_spill] sm:$0xff] %v4519_v50 }
 0x7dd   :  { %v2786_v24 = vpop.eup %2785 }
 0x7de   :  { %v1846_v25 = vmul.f32 %v2786_v24, %v2782_v23  ;;  %v2788_v47 = vpop.eup %2787  ;;  %v4504_v23 = vld [vmem:[#allocation3 + $0x48] sm:$0xff]  ;;  %v4510_v24 = vld [vmem:[#allocation3 + $0x40] sm:$0xff] }
 0x7df   :  { %v1845_v51 = vmul.f32 %v2788_v47, %v4261_v9  ;;  %v4392_v9 = vld [vmem:[#allocation6 + $0x24] ss:$16 sps:$4 sm:$0xff]   ;;  %5472 = vst [vmem:[#allocation96_spill] sm:$0xff] %v4510_v24 }
 0x7e0   :  { %v2790_v58 = vpop.eup %2789  ;;  %v4516_v47 = vld [vmem:[#allocation3 + $0x68] sm:$0xff] }
 0x7e1   :  { %v4379_v54 = vadd.f32 %v1846_v25, %v1845_v51  ;;  %v4513_v25 = vld [vmem:[#allocation3 + $0x50] sm:$0xff]  ;;  %5474 = vst [vmem:[#allocation98_spill] sm:$0xff] %v4516_v47  ;;  %v4522_v51 = vld [vmem:[#allocation3 + $0x60] sm:$0xff] }
 0x7e2   :  { %5473 = vst [vmem:[#allocation97_spill] sm:$0xff] %v4513_v25  ;;  %5476 = vst [vmem:[#allocation20_spill] sm:$0xff] %v4522_v51 }
 0x7e3   :  { %2791 = vtanh.f32 %v4379_v54 }
 0x7ed   :  { %v2792_v62 = vpop.eup %2791 }
 0x7ee   :  { %v1849_v3 = vmul.f32 %v2792_v62, %v2790_v58  ;;  %v4525_v58 = vld [vmem:[#allocation3 + $0x70] sm:$0xff]  ;;  %v4528_v62 = vld [vmem:[#allocation3 + $0x88] sm:$0xff] }
 0x7ef   :  { %5477 = vst [vmem:[#allocation22_spill] sm:$0xff] %v4525_v58  ;;  %5478 = vst [vmem:[#allocation21_spill] sm:$0xff] %v4528_v62 }
 0x7f0   :  { %v4382_v4 = vpack.c.bf16 %v1849_v3, %v1849_v3  ;;  %v4531_v3 = vld [vmem:[#allocation3 + $0x98] sm:$0xff] }
 0x7f1   :  { %5479 = vst [vmem:[#allocation23_spill] sm:$0xff] %v4531_v3 }
 0x7f2   :  { %1885 = vmatmul.mubr.bf16.vlgmr.msra.gmra.mrb[60].mxu0 %v4382_v4  ;;  %1926 = vmatmul.mubr.bf16.vlgmr.msra.gmra.mrb[60].mxu1 %v4382_v4 }
 0x7f3   :  { %1963 = vmatpush1.bf16.msra.mxu0 %v4386_v7  ;;  %2004 = vmatpush1.bf16.msra.mxu1 %v4389_v8 }
 0x7f4   :  { %1964 = vmatprep.subr.bf16.mxu0 %v4392_v9  ;;  %2005 = vmatprep.subr.bf16.mxu1 %v4395_v11 }
 0x7f5   :  { %1994 = vmatprep.mubr.bf16.mxu0 %v5114_v13  ;;  %2035 = vmatprep.mubr.bf16.mxu1 %v5114_v13 }
 0x7f7   :  { %1965 = vmatpush1.bf16.msra.mxu0 %v4400_v12  ;;  %2006 = vmatpush1.bf16.msra.mxu1 %v4403_v15 }
 0x7f8   :  { %1966 = vmatprep.subr.bf16.mxu0 %v4406_v16  ;;  %2007 = vmatprep.subr.bf16.mxu1 %v4409_v27 }
 0x7fb   :  { %1967 = vmatpush1.bf16.msra.mxu0 %v4412_v30  ;;  %2008 = vmatpush1.bf16.msra.mxu1 %v4415_v35 }
 0x7fc   :  { %1968 = vmatprep.subr.bf16.mxu0 %v4418_v38  ;;  %2009 = vmatprep.subr.bf16.mxu1 %v4421_v48 }
 0x7ff   :  { %1969 = vmatpush1.bf16.msra.mxu0 %v4424_v45  ;;  %2010 = vmatpush1.bf16.msra.mxu1 %v4427_v33 }
 0x800   :  { %1970 = vmatprep.subr.bf16.mxu0 %v4430_v40  ;;  %2011 = vmatprep.subr.bf16.mxu1 %v4433_v36 }
 0x803   :  { %1971 = vmatpush1.bf16.msra.mxu0 %v4436_v46  ;;  %2012 = vmatpush1.bf16.msra.mxu1 %v4439_v60 }
 0x804   :  { %1972 = vmatprep.subr.bf16.mxu0 %v4442_v52  ;;  %2013 = vmatprep.subr.bf16.mxu1 %v4445_v41 }
 0x807   :  { %1973 = vmatpush1.bf16.msra.mxu0 %v4448_v61  ;;  %2014 = vmatpush1.bf16.msra.mxu1 %v4451_v29 }
 0x808   :  { %1974 = vmatprep.subr.bf16.mxu0 %v4454_v22  ;;  %2015 = vmatprep.subr.bf16.mxu1 %v4457_v1 }
 0x80b   :  { %1975 = vmatpush1.bf16.msra.mxu0 %v4460_v26  ;;  %2016 = vmatpush1.bf16.msra.mxu1 %v4463_v39 }
 0x80c   :  { %1976 = vmatprep.subr.bf16.mxu0 %v4466_v57  ;;  %2017 = vmatprep.subr.bf16.mxu1 %v4469_v5 }
 0x80f   :  { %1977 = vmatpush1.bf16.msra.mxu0 %v4472_v56  ;;  %2018 = vmatpush1.bf16.msra.mxu1 %v4475_v14 }
 0x810   :  { %2074 = vmatprep.subr.bf16.mxu0 %v4478_v31  ;;  %2115 = vmatprep.subr.bf16.mxu1 %v4481_v17 }
 0x812   :  { %1995 = vmatmul.mubr.bf16.vlgmr.msra.gmra.mrb[64].mxu0 %v4382_v4  ;;  %2036 = vmatmul.mubr.bf16.vlgmr.msra.gmra.mrb[64].mxu1 %v4382_v4  ;;  %v4534_v4 = vld [vmem:[#allocation3 + $0x80] sm:$0xff] }
 0x813   :  { %2075 = vmatpush1.bf16.msra.mxu0 %v4486_v6  ;;  %2116 = vmatpush1.bf16.msra.mxu1 %v4489_v0  ;;  %5480 = vst [vmem:[#allocation24_spill] sm:$0xff] %v4534_v4 }
 0x814   :  { %2076 = vmatprep.subr.bf16.mxu0 %v4492_v18  ;;  %2117 = vmatprep.subr.bf16.mxu1 %v4495_v21 }
 0x817   :  { %2077 = vmatpush1.bf16.msra.mxu0 %v4498_v20  ;;  %2118 = vmatpush1.bf16.msra.mxu1 %v4501_v34 }
 0x818   :  { %2078 = vmatprep.subr.bf16.mxu0 %v4504_v23  ;;  %2119 = vmatprep.subr.bf16.mxu1 %v4507_v44 }
 0x81b   :  { %2079 = vmatpush1.bf16.msra.mxu0 %v4510_v24  ;;  %2120 = vmatpush1.bf16.msra.mxu1 %v4513_v25 }
 0x81c   :  { %2080 = vmatprep.subr.bf16.mxu0 %v4516_v47  ;;  %2121 = vmatprep.subr.bf16.mxu1 %v4519_v50  ;;  %v4537_v50 = vld [vmem:[#allocation3 + $0x90] sm:$0xff] }
 0x81d   :  { %5481 = vst [vmem:[#allocation26_spill] sm:$0xff] %v4537_v50 }
 0x81f   :  { %2081 = vmatpush1.bf16.msra.mxu0 %v4522_v51  ;;  %2122 = vmatpush1.bf16.msra.mxu1 %v4525_v58  ;;  %v4540_v51 = vld [vmem:[#allocation3 + $0xa8] sm:$0xff]  ;;  %v4543_v58 = vld [vmem:[#allocation3 + $0xb8] sm:$0xff] }
 0x820   :  { %2082 = vmatprep.subr.bf16.mxu0 %v4528_v62  ;;  %2123 = vmatprep.subr.bf16.mxu1 %v4531_v3  ;;  %5482 = vst [vmem:[#allocation25_spill] sm:$0xff] %v4540_v51  ;;  %5483 = vst [vmem:[#allocation27_spill] sm:$0xff] %v4543_v58  ;;  %v4546_v62 = vld [vmem:[#allocation3 + $0xa0] sm:$0xff]  ;;  %v4549_v3 = vld [vmem:[#allocation3 + $0xb0] sm:$0xff] }
 0x821   :  { %5484 = vst [vmem:[#allocation44_spill] sm:$0xff] %v4546_v62  ;;  %5485 = vst [vmem:[#allocation45_spill] sm:$0xff] %v4549_v3 }
 0x823   :  { %2083 = vmatpush1.bf16.msra.mxu0 %v4534_v4  ;;  %2124 = vmatpush1.bf16.msra.mxu1 %v4537_v50  ;;  %v4552_v4 = vld [vmem:[#allocation3 + $0xc8] sm:$0xff]  ;;  %v4555_v50 = vld [vmem:[#allocation3 + $0xd8] sm:$0xff] }
 0x824   :  { %2084 = vmatprep.subr.bf16.mxu0 %v4540_v51  ;;  %2125 = vmatprep.subr.bf16.mxu1 %v4543_v58  ;;  %5486 = vst [vmem:[#allocation28_spill] sm:$0xff] %v4552_v4  ;;  %5487 = vst [vmem:[#allocation30_spill] sm:$0xff] %v4555_v50  ;;  %v4558_v51 = vld [vmem:[#allocation3 + $0xc0] sm:$0xff]  ;;  %v4561_v58 = vld [vmem:[#allocation3 + $0xd0] sm:$0xff] }
 0x825   :  { %5488 = vst [vmem:[#allocation29_spill] sm:$0xff] %v4558_v51  ;;  %5489 = vst [vmem:[#allocation31_spill] sm:$0xff] %v4561_v58 }
 0x827   :  { %2085 = vmatpush1.bf16.msra.mxu0 %v4546_v62  ;;  %2126 = vmatpush1.bf16.msra.mxu1 %v4549_v3  ;;  %v4564_v62 = vld [vmem:[#allocation3 + $0xe8] sm:$0xff]  ;;  %v4567_v3 = vld [vmem:[#allocation3 + $0xf8] sm:$0xff] }
 0x828   :  { %2086 = vmatprep.subr.bf16.mxu0 %v4552_v4  ;;  %2127 = vmatprep.subr.bf16.mxu1 %v4555_v50  ;;  %5490 = vst [vmem:[#allocation16_spill] sm:$0xff] %v4564_v62  ;;  %5491 = vst [vmem:[#allocation18_spill] sm:$0xff] %v4567_v3  ;;  %v4570_v4 = vld [vmem:[#allocation3 + $0xe0] sm:$0xff]  ;;  %v4573_v50 = vld [vmem:[#allocation3 + $0xf0] sm:$0xff] }
 0x829   :  { %5492 = vst [vmem:[#allocation17_spill] sm:$0xff] %v4570_v4  ;;  %5493 = vst [vmem:[#allocation19_spill] sm:$0xff] %v4573_v50 }
 0x82b   :  { %2087 = vmatpush1.bf16.msra.mxu0 %v4558_v51  ;;  %2128 = vmatpush1.bf16.msra.mxu1 %v4561_v58  ;;  %v4576_v51 = vld [vmem:[#allocation3 + $0x108] sm:$0xff]  ;;  %v4579_v58 = vld [vmem:[#allocation3 + $0x118] sm:$0xff] }
 0x82c   :  { %2088 = vmatprep.subr.bf16.mxu0 %v4564_v62  ;;  %2129 = vmatprep.subr.bf16.mxu1 %v4567_v3  ;;  %5494 = vst [vmem:[#allocation46_spill] sm:$0xff] %v4576_v51  ;;  %5495 = vst [vmem:[#allocation49_spill] sm:$0xff] %v4579_v58  ;;  %v4582_v62 = vld [vmem:[#allocation3 + $0x100] sm:$0xff]  ;;  %v4585_v3 = vld [vmem:[#allocation3 + $0x110] sm:$0xff] }
 0x82d   :  { %5496 = vst [vmem:[#allocation47_spill] sm:$0xff] %v4582_v62  ;;  %5497 = vst [vmem:[#allocation50_spill] sm:$0xff] %v4585_v3 }
 0x82f   :  { %2089 = vmatpush1.bf16.msra.mxu0 %v4570_v4  ;;  %2130 = vmatpush1.bf16.msra.mxu1 %v4573_v50  ;;  %v4588_v4 = vld [vmem:[#allocation3 + $0x128] sm:$0xff]  ;;  %v4591_v50 = vld [vmem:[#allocation3 + $0x138] sm:$0xff] }
 0x830   :  { %2090 = vmatprep.subr.bf16.mxu0 %v4576_v51  ;;  %2131 = vmatprep.subr.bf16.mxu1 %v4579_v58  ;;  %5498 = vst [vmem:[#allocation48_spill] sm:$0xff] %v4588_v4  ;;  %5499 = vst [vmem:[#allocation51_spill] sm:$0xff] %v4591_v50  ;;  %v4594_v51 = vld [vmem:[#allocation3 + $0x120] sm:$0xff]  ;;  %v4597_v58 = vld [vmem:[#allocation3 + $0x130] sm:$0xff] }
 0x831   :  { %5500 = vst [vmem:[#allocation52_spill] sm:$0xff] %v4594_v51  ;;  %5501 = vst [vmem:[#allocation53_spill] sm:$0xff] %v4597_v58 }
 0x833   :  { %2091 = vmatpush1.bf16.msra.mxu0 %v4582_v62  ;;  %2132 = vmatpush1.bf16.msra.mxu1 %v4585_v3  ;;  %v4600_v62 = vld [vmem:[#allocation3 + $0x148] sm:$0xff]  ;;  %v4603_v3 = vld [vmem:[#allocation3 + $0x158] sm:$0xff] }
 0x834   :  { %2092 = vmatprep.subr.bf16.mxu0 %v4588_v4  ;;  %2133 = vmatprep.subr.bf16.mxu1 %v4591_v50  ;;  %5502 = vst [vmem:[#allocation54_spill] sm:$0xff] %v4600_v62  ;;  %5503 = vst [vmem:[#allocation55_spill] sm:$0xff] %v4603_v3  ;;  %v4606_v4 = vld [vmem:[#allocation3 + $0x140] sm:$0xff]  ;;  %v4609_v50 = vld [vmem:[#allocation3 + $0x150] sm:$0xff] }
 0x835   :  { %5504 = vst [vmem:[#allocation56_spill] sm:$0xff] %v4606_v4  ;;  %5505 = vst [vmem:[#allocation57_spill] sm:$0xff] %v4609_v50 }
 0x837   :  { %2093 = vmatpush1.bf16.msra.mxu0 %v4594_v51  ;;  %2134 = vmatpush1.bf16.msra.mxu1 %v4597_v58  ;;  %v4612_v51 = vld [vmem:[#allocation3 + $0x168] sm:$0xff]  ;;  %v4615_v58 = vld [vmem:[#allocation3 + $0x178] sm:$0xff] }
 0x838   :  { %2094 = vmatprep.subr.bf16.mxu0 %v4600_v62  ;;  %2135 = vmatprep.subr.bf16.mxu1 %v4603_v3  ;;  %5506 = vst [vmem:[#allocation58_spill] sm:$0xff] %v4612_v51  ;;  %5507 = vst [vmem:[#allocation59_spill] sm:$0xff] %v4615_v58  ;;  %v4618_v62 = vld [vmem:[#allocation3 + $0x160] sm:$0xff]  ;;  %v4621_v3 = vld [vmem:[#allocation3 + $0x170] sm:$0xff] }
 0x839   :  { %5508 = vst [vmem:[#allocation60_spill] sm:$0xff] %v4618_v62  ;;  %5509 = vst [vmem:[#allocation61_spill] sm:$0xff] %v4621_v3 }
 0x83b   :  { %2095 = vmatpush1.bf16.msra.mxu0 %v4606_v4  ;;  %2136 = vmatpush1.bf16.msra.mxu1 %v4609_v50  ;;  %v4624_v4 = vld [vmem:[#allocation3 + $0x188] sm:$0xff]  ;;  %v4627_v50 = vld [vmem:[#allocation3 + $0x198] sm:$0xff] }
 0x83c   :  { %2096 = vmatprep.subr.bf16.mxu0 %v4612_v51  ;;  %2137 = vmatprep.subr.bf16.mxu1 %v4615_v58  ;;  %5510 = vst [vmem:[#allocation62_spill] sm:$0xff] %v4624_v4  ;;  %5511 = vst [vmem:[#allocation63_spill] sm:$0xff] %v4627_v50  ;;  %v4630_v51 = vld [vmem:[#allocation3 + $0x180] sm:$0xff]  ;;  %v4633_v58 = vld [vmem:[#allocation3 + $0x190] sm:$0xff] }
 0x83d   :  { %5512 = vst [vmem:[#allocation64_spill] sm:$0xff] %v4630_v51  ;;  %5513 = vst [vmem:[#allocation65_spill] sm:$0xff] %v4633_v58 }
 0x83f   :  { %2097 = vmatpush1.bf16.msra.mxu0 %v4618_v62  ;;  %2138 = vmatpush1.bf16.msra.mxu1 %v4621_v3  ;;  %v4636_v62 = vld [vmem:[#allocation3 + $0x1a8] sm:$0xff]  ;;  %v4639_v3 = vld [vmem:[#allocation3 + $0x1b8] sm:$0xff] }
 0x840   :  { %2098 = vmatprep.subr.bf16.mxu0 %v4624_v4  ;;  %2139 = vmatprep.subr.bf16.mxu1 %v4627_v50  ;;  %5514 = vst [vmem:[#allocation66_spill] sm:$0xff] %v4636_v62  ;;  %5515 = vst [vmem:[#allocation67_spill] sm:$0xff] %v4639_v3  ;;  %v4642_v4 = vld [vmem:[#allocation3 + $0x1a0] sm:$0xff]  ;;  %v4645_v50 = vld [vmem:[#allocation3 + $0x1b0] sm:$0xff] }
 0x841   :  { %5516 = vst [vmem:[#allocation68_spill] sm:$0xff] %v4642_v4  ;;  %5517 = vst [vmem:[#allocation69_spill] sm:$0xff] %v4645_v50 }
 0x843   :  { %2099 = vmatpush1.bf16.msra.mxu0 %v4630_v51  ;;  %2140 = vmatpush1.bf16.msra.mxu1 %v4633_v58  ;;  %v4648_v51 = vld [vmem:[#allocation3 + $0x1c8] sm:$0xff]  ;;  %v4651_v58 = vld [vmem:[#allocation3 + $0x1d8] sm:$0xff] }
 0x844   :  { %2100 = vmatprep.subr.bf16.mxu0 %v4636_v62  ;;  %2141 = vmatprep.subr.bf16.mxu1 %v4639_v3  ;;  %5518 = vst [vmem:[#allocation70_spill] sm:$0xff] %v4648_v51  ;;  %5519 = vst [vmem:[#allocation71_spill] sm:$0xff] %v4651_v58 }
 0x847   :  { %2101 = vmatpush1.bf16.msra.mxu0 %v4642_v4  ;;  %2142 = vmatpush1.bf16.msra.mxu1 %v4645_v50 }
 0x848   :  { %2102 = vmatprep.subr.bf16.mxu0 %v4648_v51  ;;  %2143 = vmatprep.subr.bf16.mxu1 %v4651_v58 }
 0x84b   :  { %2103 = vmatpush1.bf16.msra.mxu0 %v5458_v28  ;;  %2144 = vmatpush1.bf16.msra.mxu1 %v5459_v10 }
 0x84c   :  { %2104 = vmatprep.subr.bf16.mxu0 %v5460_v42  ;;  %2145 = vmatprep.subr.bf16.mxu1 %v5461_v19 }
 0x84f   :  { %2105 = vmatpush1.bf16.msra.mxu0 %v5462_v53  ;;  %2146 = vmatpush1.bf16.msra.mxu1 %v5463_v32 }
 0x850   :  { %2184 = vmatprep.subr.bf16.mxu0 %v4360_v63  ;;  %2225 = vmatprep.subr.bf16.mxu1 %v4363_v2 }
 0x8c5   :  { %v1886_v51 = vpop.f32.mrb[60].mxu0  ;;  %v1927_v50 = vpop.f32.mrb[60].mxu1 }
 0x8c6   :  { %v1887_v58 = vadd.f32 %v1886_v51, %v5464_v49  ;;  %v1888_v4 = vpop.f32.mrb[61].mxu0  ;;  %v1929_v28 = vpop.f32.mrb[61].mxu1  ;;  %v1928_v32 = vadd.f32 %v1927_v50, %v5466_v55 }
 0x8c7   :  { %v1889_v10 = vadd.f32 %v1888_v4, %v5465_v43  ;;  %v1890_v3 = vpop.f32.mrb[62].mxu0  ;;  %v1931_v42 = vpop.f32.mrb[62].mxu1  ;;  %v1930_v63 = vadd.f32 %v1929_v28, %v5467_v59 }
 0x8c8   :  { %v2526_v62 = vmul.f32 -1.442695, %v1887_v58  ;;  %v1891_v19 = vpop.f32.mrb[63].mxu0  ;;  %v1932_v47 = vpop.f32.mrb[63].mxu1  ;;  %v2528_v2 = vmul.f32 -1.442695, %v1928_v32 }
 0x8c9   :  { %v2527_v53 = vmul.f32 -1.442695, %v1889_v10  ;;  %v5520_v32 = vld [vmem:[#allocation36_spill] sm:$0xff] }
 0x8ca   :  { %2793 = vpow2.f32 %v2526_v62 }
 0x8cb   :  { %2795 = vpow2.f32 %v2527_v53 }
 0x8cc   :  { %2797 = vtanh.f32 %v1930_v63 }
 0x8cd   :  { %2799 = vpow2.f32 %v2528_v2 }
 0x8d4   :  { %v2794_v25 = vpop.eup %2793 }
 0x8d5   :  { %v1943_v24 = vadd.f32 1.0, %v2794_v25  ;;  %v2796_v51 = vpop.eup %2795 }
 0x8d6   :  { %v1944_v4 = vadd.f32 1.0, %v2796_v51  ;;  %v2798_v3 = vpop.eup %2797 }
 0x8d7   :  { %2801 = vrcp.f32 %v1943_v24  ;;  %v2800_v58 = vpop.eup %2799  ;;  %v5521_v24 = vld [vmem:[#allocation38_spill] sm:$0xff] }
 0x8d8   :  { %2803 = vrcp.f32 %v1944_v4  ;;  %v1945_v62 = vadd.f32 1.0, %v2800_v58 }
 0x8da   :  { %2805 = vrcp.f32 %v1945_v62 }
 0x8e1   :  { %v2802_v42 = vpop.eup %2801 }
 0x8e2   :  { %v1954_v47 = vmul.f32 %v2802_v42, %v2798_v3  ;;  %v2804_v10 = vpop.eup %2803 }
 0x8e3   :  { %v1953_v19 = vmul.f32 %v2804_v10, %v4371_v37  ;;  %v5522_v37 = vld [vmem:[#allocation37_spill] sm:$0xff]  ;;  %v5523_v10 = vld [vmem:[#allocation39_spill] sm:$0xff] }
 0x8e5   :  { %v1996_v50 = vpop.f32.mrb[64].mxu0  ;;  %v2037_v53 = vpop.f32.mrb[64].mxu1  ;;  %v4667_v28 = vadd.f32 %v1954_v47, %v1953_v19 }
 0x8e6   :  { %v2044_v25 = vadd.f32 %v1996_v50, %v5520_v32  ;;  %v1998_v63 = vpop.f32.mrb[65].mxu0  ;;  %v2039_v59 = vpop.f32.mrb[65].mxu1  ;;  %v2046_v42 = vadd.f32 %v2037_v53, %v5522_v37 }
 0x8e7   :  { %v2045_v2 = vadd.f32 %v1998_v63, %v5521_v24  ;;  %v2000_v51 = vpop.f32.mrb[66].mxu0  ;;  %v2041_v4 = vpop.f32.mrb[66].mxu1  ;;  %2807 = vtanh.f32 %v4667_v28  ;;  %v2047_v19 = vadd.f32 %v2039_v59, %v5523_v10  ;;  %v5566_v10 = vld [vmem:[#allocation66_spill] sm:$0xff] }
 0x8e8   :  { %v2529_v55 = vmul.f32 -1.442695, %v2044_v25  ;;  %v2001_v43 = vpop.f32.mrb[67].mxu0  ;;  %v2042_v3 = vpop.f32.mrb[67].mxu1  ;;  %v2531_v32 = vmul.f32 -1.442695, %v2046_v42 }
 0x8e9   :  { %v2530_v58 = vmul.f32 -1.442695, %v2045_v2  ;;  %v2806_v47 = vpop.eup %2805 }
 0x8ea   :  { %2809 = vpow2.f32 %v2529_v55 }
 0x8eb   :  { %2811 = vpow2.f32 %v2530_v58 }
 0x8ec   :  { %2813 = vtanh.f32 %v2047_v19  ;;  %v5567_v19 = vld [vmem:[#allocation67_spill] sm:$0xff] }
 0x8ed   :  { %2815 = vpow2.f32 %v2531_v32  ;;  %v5569_v32 = vld [vmem:[#allocation69_spill] sm:$0xff] }
 0x8f1   :  { %v2808_v50 = vpop.eup %2807 }
 0x8f2   :  { %v1957_v62 = vmul.f32 %v2808_v50, %v2806_v47  ;;  %v5568_v50 = vld [vmem:[#allocation68_spill] sm:$0xff] }
 0x8f4   :  { %v2810_v49 = vpop.eup %2809  ;;  %v2073_v24 = vpack.c.bf16 %v1957_v62, %v1957_v62  ;;  %v5570_v62 = vld [vmem:[#allocation70_spill] sm:$0xff] }
 0x8f5   :  { %v2057_v63 = vadd.f32 1.0, %v2810_v49  ;;  %v2812_v25 = vpop.eup %2811 }
 0x8f6   :  { %v2058_v43 = vadd.f32 1.0, %v2812_v25  ;;  %2106 = vmatprep.mubr.bf16.mxu0 %v2073_v24  ;;  %2147 = vmatprep.mubr.bf16.mxu1 %v2073_v24  ;;  %v2814_v55 = vpop.eup %2813  ;;  %v3063_v24 = vld [vmem:[#allocation3 + $0x1c0] sm:$0xff]  ;;  %v3064_v25 = vld [vmem:[#allocation3 + $0x1d0] sm:$0xff] }
 0x8f7   :  { %2817 = vrcp.f32 %v2057_v63  ;;  %v2816_v2 = vpop.eup %2815  ;;  %v5571_v63 = vld [vmem:[#allocation71_spill] sm:$0xff] }
 0x8f8   :  { %2819 = vrcp.f32 %v2058_v43  ;;  %v2059_v59 = vadd.f32 1.0, %v2816_v2  ;;  %v3065_v43 = vld [vmem:[#allocation3 + $0x1e8] sm:$0xff]  ;;  %v3067_v2 = vld [vmem:[#allocation3 + $0x1e0] sm:$0xff] }
 0x8fa   :  { %2821 = vrcp.f32 %v2059_v59  ;;  %v5572_v59 = vld [vmem:[#allocation12_spill] sm:$0xff] }
 0x901   :  { %v2818_v53 = vpop.eup %2817 }
 0x902   :  { %v2068_v51 = vmul.f32 %v2818_v53, %v2814_v55  ;;  %v2820_v4 = vpop.eup %2819  ;;  %v3066_v55 = vld [vmem:[#allocation3 + $0x1f8] sm:$0xff]  ;;  %v3068_v53 = vld [vmem:[#allocation3 + $0x1f0] sm:$0xff] }
 0x903   :  { %v2067_v3 = vmul.f32 %v2820_v4, %v4379_v54  ;;  %v5525_v54 = vld [vmem:[#allocation97_spill] sm:$0xff] }
 0x904   :  { %v2822_v49 = vpop.eup %2821 }
 0x905   :  { %v4675_v58 = vadd.f32 %v2068_v51, %v2067_v3 }
 0x907   :  { %2823 = vtanh.f32 %v4675_v58 }
 0x911   :  { %v2824_v37 = vpop.eup %2823 }
 0x912   :  { %v2071_v42 = vmul.f32 %v2824_v37, %v2822_v49 }
 0x914   :  { %v2072_v47 = vpack.c.bf16 %v2071_v42, %v2071_v42  ;;  %v5573_v42 = vld [vmem:[#allocation14_spill] sm:$0xff] }
 0x916   :  { %2107 = vmatmul.mubr.bf16.vlgmr.msra.gmra.mrb[68].mxu0 %v2072_v47  ;;  %2148 = vmatmul.mubr.bf16.vlgmr.msra.gmra.mrb[68].mxu1 %v2072_v47 }
 0x917   :  { %2185 = vmatpush1.bf16.msra.mxu0 %v4386_v7  ;;  %2226 = vmatpush1.bf16.msra.mxu1 %v4389_v8  ;;  %v5526_v7 = vld [vmem:[#allocation98_spill] sm:$0xff]  ;;  %v5527_v8 = vld [vmem:[#allocation99_spill] sm:$0xff] }
 0x918   :  { %2186 = vmatprep.subr.bf16.mxu0 %v4392_v9  ;;  %2227 = vmatprep.subr.bf16.mxu1 %v4395_v11  ;;  %v5528_v9 = vld [vmem:[#allocation20_spill] sm:$0xff]  ;;  %v5529_v11 = vld [vmem:[#allocation22_spill] sm:$0xff] }
 0x919   :  { %2216 = vmatprep.mubr.bf16.mxu0 %v5114_v13  ;;  %2257 = vmatprep.mubr.bf16.mxu1 %v5114_v13  ;;  %v5524_v13 = vld [vmem:[#allocation96_spill] sm:$0xff] }
 0x91b   :  { %2187 = vmatpush1.bf16.msra.mxu0 %v4400_v12  ;;  %2228 = vmatpush1.bf16.msra.mxu1 %v4403_v15  ;;  %v5530_v12 = vld [vmem:[#allocation21_spill] sm:$0xff]  ;;  %v5531_v15 = vld [vmem:[#allocation23_spill] sm:$0xff] }
 0x91c   :  { %2188 = vmatprep.subr.bf16.mxu0 %v4406_v16  ;;  %2229 = vmatprep.subr.bf16.mxu1 %v4409_v27  ;;  %v5532_v16 = vld [vmem:[#allocation24_spill] sm:$0xff]  ;;  %v5533_v27 = vld [vmem:[#allocation26_spill] sm:$0xff] }
 0x91f   :  { %2189 = vmatpush1.bf16.msra.mxu0 %v4412_v30  ;;  %2230 = vmatpush1.bf16.msra.mxu1 %v4415_v35  ;;  %v5534_v30 = vld [vmem:[#allocation25_spill] sm:$0xff]  ;;  %v5535_v35 = vld [vmem:[#allocation27_spill] sm:$0xff] }
 0x920   :  { %2190 = vmatprep.subr.bf16.mxu0 %v4418_v38  ;;  %2231 = vmatprep.subr.bf16.mxu1 %v4421_v48  ;;  %v5536_v38 = vld [vmem:[#allocation44_spill] sm:$0xff]  ;;  %v5537_v48 = vld [vmem:[#allocation45_spill] sm:$0xff] }
 0x923   :  { %2191 = vmatpush1.bf16.msra.mxu0 %v4424_v45  ;;  %2232 = vmatpush1.bf16.msra.mxu1 %v4427_v33  ;;  %v5538_v45 = vld [vmem:[#allocation28_spill] sm:$0xff]  ;;  %v5539_v33 = vld [vmem:[#allocation30_spill] sm:$0xff] }
 0x924   :  { %2192 = vmatprep.subr.bf16.mxu0 %v4430_v40  ;;  %2233 = vmatprep.subr.bf16.mxu1 %v4433_v36  ;;  %v5540_v40 = vld [vmem:[#allocation29_spill] sm:$0xff]  ;;  %v5541_v36 = vld [vmem:[#allocation31_spill] sm:$0xff] }
 0x927   :  { %2193 = vmatpush1.bf16.msra.mxu0 %v4436_v46  ;;  %2234 = vmatpush1.bf16.msra.mxu1 %v4439_v60  ;;  %v5542_v46 = vld [vmem:[#allocation16_spill] sm:$0xff]  ;;  %v5543_v60 = vld [vmem:[#allocation18_spill] sm:$0xff] }
 0x928   :  { %2194 = vmatprep.subr.bf16.mxu0 %v4442_v52  ;;  %2235 = vmatprep.subr.bf16.mxu1 %v4445_v41  ;;  %v5544_v52 = vld [vmem:[#allocation17_spill] sm:$0xff]  ;;  %v5545_v41 = vld [vmem:[#allocation19_spill] sm:$0xff] }
 0x92b   :  { %2195 = vmatpush1.bf16.msra.mxu0 %v4448_v61  ;;  %2236 = vmatpush1.bf16.msra.mxu1 %v4451_v29  ;;  %v5546_v61 = vld [vmem:[#allocation46_spill] sm:$0xff]  ;;  %v5547_v29 = vld [vmem:[#allocation49_spill] sm:$0xff] }
 0x92c   :  { %2196 = vmatprep.subr.bf16.mxu0 %v4454_v22  ;;  %2237 = vmatprep.subr.bf16.mxu1 %v4457_v1  ;;  %v5548_v22 = vld [vmem:[#allocation47_spill] sm:$0xff]  ;;  %v5549_v1 = vld [vmem:[#allocation50_spill] sm:$0xff] }
 0x92f   :  { %2197 = vmatpush1.bf16.msra.mxu0 %v4460_v26  ;;  %2238 = vmatpush1.bf16.msra.mxu1 %v4463_v39  ;;  %v5550_v26 = vld [vmem:[#allocation48_spill] sm:$0xff]  ;;  %v5551_v39 = vld [vmem:[#allocation51_spill] sm:$0xff] }
 0x930   :  { %2198 = vmatprep.subr.bf16.mxu0 %v4466_v57  ;;  %2239 = vmatprep.subr.bf16.mxu1 %v4469_v5  ;;  %v5552_v57 = vld [vmem:[#allocation52_spill] sm:$0xff]  ;;  %v5553_v5 = vld [vmem:[#allocation53_spill] sm:$0xff] }
 0x933   :  { %2199 = vmatpush1.bf16.msra.mxu0 %v4472_v56  ;;  %2240 = vmatpush1.bf16.msra.mxu1 %v4475_v14  ;;  %v5554_v56 = vld [vmem:[#allocation54_spill] sm:$0xff]  ;;  %v5555_v14 = vld [vmem:[#allocation55_spill] sm:$0xff] }
 0x934   :  { %2296 = vmatprep.subr.bf16.mxu0 %v4478_v31  ;;  %2337 = vmatprep.subr.bf16.mxu1 %v4481_v17  ;;  %v5556_v31 = vld [vmem:[#allocation56_spill] sm:$0xff]  ;;  %v5557_v17 = vld [vmem:[#allocation57_spill] sm:$0xff] }
 0x936   :  { %2217 = vmatmul.mubr.bf16.vlgmr.msra.gmra.mrb[72].mxu0 %v2072_v47  ;;  %2258 = vmatmul.mubr.bf16.vlgmr.msra.gmra.mrb[72].mxu1 %v2072_v47 }
 0x937   :  { %2297 = vmatpush1.bf16.msra.mxu0 %v4486_v6  ;;  %2338 = vmatpush1.bf16.msra.mxu1 %v4489_v0  ;;  %v5558_v6 = vld [vmem:[#allocation58_spill] sm:$0xff]  ;;  %v5559_v0 = vld [vmem:[#allocation59_spill] sm:$0xff] }
 0x938   :  { %2298 = vmatprep.subr.bf16.mxu0 %v4492_v18  ;;  %2339 = vmatprep.subr.bf16.mxu1 %v4495_v21  ;;  %v5560_v18 = vld [vmem:[#allocation60_spill] sm:$0xff]  ;;  %v5561_v21 = vld [vmem:[#allocation61_spill] sm:$0xff] }
 0x93b   :  { %2299 = vmatpush1.bf16.msra.mxu0 %v4498_v20  ;;  %2340 = vmatpush1.bf16.msra.mxu1 %v4501_v34  ;;  %v5562_v20 = vld [vmem:[#allocation62_spill] sm:$0xff]  ;;  %v5563_v34 = vld [vmem:[#allocation63_spill] sm:$0xff] }
 0x93c   :  { %2300 = vmatprep.subr.bf16.mxu0 %v4504_v23  ;;  %2341 = vmatprep.subr.bf16.mxu1 %v4507_v44  ;;  %v5564_v23 = vld [vmem:[#allocation64_spill] sm:$0xff]  ;;  %v5565_v44 = vld [vmem:[#allocation65_spill] sm:$0xff] }
 0x93f   :  { %2301 = vmatpush1.bf16.msra.mxu0 %v5524_v13  ;;  %2342 = vmatpush1.bf16.msra.mxu1 %v5525_v54 }
 0x940   :  { %2302 = vmatprep.subr.bf16.mxu0 %v5526_v7  ;;  %2343 = vmatprep.subr.bf16.mxu1 %v5527_v8 }
 0x943   :  { %2303 = vmatpush1.bf16.msra.mxu0 %v5528_v9  ;;  %2344 = vmatpush1.bf16.msra.mxu1 %v5529_v11 }
 0x944   :  { %2304 = vmatprep.subr.bf16.mxu0 %v5530_v12  ;;  %2345 = vmatprep.subr.bf16.mxu1 %v5531_v15  ;;  %v5574_v12 = vld [vmem:[#allocation13_spill] sm:$0xff] }
 0x947   :  { %2305 = vmatpush1.bf16.msra.mxu0 %v5532_v16  ;;  %2346 = vmatpush1.bf16.msra.mxu1 %v5533_v27  ;;  %v5575_v16 = vld [vmem:[#allocation15_spill] sm:$0xff] }
 0x948   :  { %2306 = vmatprep.subr.bf16.mxu0 %v5534_v30  ;;  %2347 = vmatprep.subr.bf16.mxu1 %v5535_v35 }
 0x94b   :  { %2307 = vmatpush1.bf16.msra.mxu0 %v5536_v38  ;;  %2348 = vmatpush1.bf16.msra.mxu1 %v5537_v48 }
 0x94c   :  { %2308 = vmatprep.subr.bf16.mxu0 %v5538_v45  ;;  %2349 = vmatprep.subr.bf16.mxu1 %v5539_v33 }
 0x94f   :  { %2309 = vmatpush1.bf16.msra.mxu0 %v5540_v40  ;;  %2350 = vmatpush1.bf16.msra.mxu1 %v5541_v36 }
 0x950   :  { %2310 = vmatprep.subr.bf16.mxu0 %v5542_v46  ;;  %2351 = vmatprep.subr.bf16.mxu1 %v5543_v60 }
 0x953   :  { %2311 = vmatpush1.bf16.msra.mxu0 %v5544_v52  ;;  %2352 = vmatpush1.bf16.msra.mxu1 %v5545_v41 }
 0x954   :  { %2312 = vmatprep.subr.bf16.mxu0 %v5546_v61  ;;  %2353 = vmatprep.subr.bf16.mxu1 %v5547_v29 }
 0x957   :  { %2313 = vmatpush1.bf16.msra.mxu0 %v5548_v22  ;;  %2354 = vmatpush1.bf16.msra.mxu1 %v5549_v1  ;;  %v5576_v1 = vld [vmem:[#allocation40_spill] sm:$0xff] }
 0x958   :  { %2314 = vmatprep.subr.bf16.mxu0 %v5550_v26  ;;  %2355 = vmatprep.subr.bf16.mxu1 %v5551_v39 }
 0x95b   :  { %2315 = vmatpush1.bf16.msra.mxu0 %v5552_v57  ;;  %2356 = vmatpush1.bf16.msra.mxu1 %v5553_v5  ;;  %v5577_v5 = vld [vmem:[#allocation42_spill] sm:$0xff] }
 0x95c   :  { %2316 = vmatprep.subr.bf16.mxu0 %v5554_v56  ;;  %2357 = vmatprep.subr.bf16.mxu1 %v5555_v14 }
 0x95f   :  { %2317 = vmatpush1.bf16.msra.mxu0 %v5556_v31  ;;  %2358 = vmatpush1.bf16.msra.mxu1 %v5557_v17 }
 0x960   :  { %2318 = vmatprep.subr.bf16.mxu0 %v5558_v6  ;;  %2359 = vmatprep.subr.bf16.mxu1 %v5559_v0 }
 0x963   :  { %2319 = vmatpush1.bf16.msra.mxu0 %v5560_v18  ;;  %2360 = vmatpush1.bf16.msra.mxu1 %v5561_v21 }
 0x964   :  { %2320 = vmatprep.subr.bf16.mxu0 %v5562_v20  ;;  %2361 = vmatprep.subr.bf16.mxu1 %v5563_v34  ;;  %v5579_v34 = vld [vmem:[#allocation43_spill] sm:$0xff] }
 0x967   :  { %2321 = vmatpush1.bf16.msra.mxu0 %v5564_v23  ;;  %2362 = vmatpush1.bf16.msra.mxu1 %v5565_v44 }
 0x968   :  { %2322 = vmatprep.subr.bf16.mxu0 %v5566_v10  ;;  %2363 = vmatprep.subr.bf16.mxu1 %v5567_v19 }
 0x96b   :  { %2323 = vmatpush1.bf16.msra.mxu0 %v5568_v50  ;;  %2364 = vmatpush1.bf16.msra.mxu1 %v5569_v32 }
 0x96c   :  { %2324 = vmatprep.subr.bf16.mxu0 %v5570_v62  ;;  %2365 = vmatprep.subr.bf16.mxu1 %v5571_v63 }
 0x96f   :  { %2325 = vmatpush1.bf16.msra.mxu0 %v3063_v24  ;;  %2366 = vmatpush1.bf16.msra.mxu1 %v3064_v25 }
 0x970   :  { %2326 = vmatprep.subr.bf16.mxu0 %v3065_v43  ;;  %2367 = vmatprep.subr.bf16.mxu1 %v3066_v55 }
 0x973   :  { %2327 = vmatpush1.bf16.msra.mxu0 %v3067_v2  ;;  %2368 = vmatpush1.bf16.msra.mxu1 %v3068_v53 }
 0x9e9   :  { %v2108_v51 = vpop.f32.mrb[68].mxu0  ;;  %v2149_v4 = vpop.f32.mrb[68].mxu1 }
 0x9ea   :  { %v2109_v3 = vadd.f32 %v2108_v51, %v5572_v59  ;;  %v2110_v49 = vpop.f32.mrb[69].mxu0  ;;  %v2151_v37 = vpop.f32.mrb[69].mxu1  ;;  %v2150_v15 = vadd.f32 %v2149_v4, %v5574_v12 }
 0x9eb   :  { %v2111_v47 = vadd.f32 %v2110_v49, %v5573_v42  ;;  %v2112_v13 = vpop.f32.mrb[70].mxu0  ;;  %v2153_v54 = vpop.f32.mrb[70].mxu1  ;;  %v2152_v27 = vadd.f32 %v2151_v37, %v5575_v16 }
 0x9ec   :  { %v2532_v7 = vmul.f32 -1.442695, %v2109_v3  ;;  %v2113_v8 = vpop.f32.mrb[71].mxu0  ;;  %v2154_v9 = vpop.f32.mrb[71].mxu1  ;;  %v2534_v30 = vmul.f32 -1.442695, %v2150_v15 }
 0x9ed   :  { %v2533_v11 = vmul.f32 -1.442695, %v2111_v47 }
 0x9ee   :  { %2825 = vpow2.f32 %v2532_v7 }
 0x9ef   :  { %2827 = vpow2.f32 %v2533_v11 }
 0x9f0   :  { %2829 = vtanh.f32 %v2152_v27 }
 0x9f1   :  { %2831 = vpow2.f32 %v2534_v30 }
 0x9f8   :  { %v2826_v35 = vpop.eup %2825 }
 0x9f9   :  { %v2165_v38 = vadd.f32 1.0, %v2826_v35  ;;  %v2828_v48 = vpop.eup %2827 }
 0x9fa   :  { %v2166_v45 = vadd.f32 1.0, %v2828_v48  ;;  %v2830_v33 = vpop.eup %2829 }
 0x9fb   :  { %2833 = vrcp.f32 %v2165_v38  ;;  %v2832_v40 = vpop.eup %2831 }
 0x9fc   :  { %2835 = vrcp.f32 %v2166_v45  ;;  %v2167_v52 = vadd.f32 1.0, %v2832_v40 }
 0x9fe   :  { %2837 = vrcp.f32 %v2167_v52 }
 0xa05   :  { %v2834_v36 = vpop.eup %2833 }
 0xa06   :  { %v2176_v46 = vmul.f32 %v2834_v36, %v2830_v33  ;;  %v2836_v60 = vpop.eup %2835 }
 0xa07   :  { %v2175_v41 = vmul.f32 %v2836_v60, %v4667_v28  ;;  %v5578_v28 = vld [vmem:[#allocation41_spill] sm:$0xff] }
 0xa08   :  { %v2838_v20 = vpop.eup %2837 }
 0xa09   :  { %v2218_v61 = vpop.f32.mrb[72].mxu0  ;;  %v2259_v29 = vpop.f32.mrb[72].mxu1  ;;  %v4773_v22 = vadd.f32 %v2176_v46, %v2175_v41 }
 0xa0a   :  { %v2266_v26 = vadd.f32 %v2218_v61, %v5576_v1  ;;  %v2220_v39 = vpop.f32.mrb[73].mxu0  ;;  %v2261_v57 = vpop.f32.mrb[73].mxu1  ;;  %v2268_v21 = vadd.f32 %v2259_v29, %v5578_v28 }
 0xa0b   :  { %v2267_v56 = vadd.f32 %v2220_v39, %v5577_v5  ;;  %v2222_v14 = vpop.f32.mrb[74].mxu0  ;;  %v2263_v31 = vpop.f32.mrb[74].mxu1  ;;  %2839 = vtanh.f32 %v4773_v22  ;;  %v2269_v23 = vadd.f32 %v2261_v57, %v5579_v34  ;;  %v2541_v57 = vld [vmem:[%s4798_s6] ss:$0 sm:$0xff] }
 0xa0c   :  { %v2535_v17 = vmul.f32 -1.442695, %v2266_v26  ;;  %v2223_v6 = vpop.f32.mrb[75].mxu0  ;;  %v2264_v0 = vpop.f32.mrb[75].mxu1  ;;  %v2537_v10 = vmul.f32 -1.442695, %v2268_v21 }
 0xa0d   :  { %v2536_v18 = vmul.f32 -1.442695, %v2267_v56  ;;  %v2542_v14 = vld [vmem:[#allocation5] ss:$0 sm:$0xff] }
 0xa0e   :  { %2841 = vpow2.f32 %v2535_v17 }
 0xa0f   :  { %2843 = vpow2.f32 %v2536_v18 }
 0xa10   :  { %2845 = vtanh.f32 %v2269_v23 }
 0xa11   :  { %2847 = vpow2.f32 %v2537_v10 }
 0xa15   :  { %v2840_v44 = vpop.eup %2839 }
 0xa16   :  { %v2179_v19 = vmul.f32 %v2840_v44, %v2838_v20 }
 0xa18   :  { %v2842_v50 = vpop.eup %2841  ;;  %v2295_v62 = vpack.c.bf16 %v2179_v19, %v2179_v19 }
 0xa19   :  { %v2279_v32 = vadd.f32 1.0, %v2842_v50  ;;  %v2844_v63 = vpop.eup %2843 }
 0xa1a   :  { %v2280_v24 = vadd.f32 1.0, %v2844_v63  ;;  %2328 = vmatprep.mubr.bf16.mxu0 %v2295_v62  ;;  %2369 = vmatprep.mubr.bf16.mxu1 %v2295_v62  ;;  %v2846_v25 = vpop.eup %2845 }
 0xa1b   :  { %2849 = vrcp.f32 %v2279_v32  ;;  %v2848_v43 = vpop.eup %2847 }
 0xa1c   :  { %2851 = vrcp.f32 %v2280_v24  ;;  %v2281_v51 = vadd.f32 1.0, %v2848_v43 }
 0xa1e   :  { %2853 = vrcp.f32 %v2281_v51 }
 0xa25   :  { %v2850_v55 = vpop.eup %2849 }
 0xa26   :  { %v2290_v2 = vmul.f32 %v2850_v55, %v2846_v25  ;;  %v2852_v53 = vpop.eup %2851 }
 0xa27   :  { %v2289_v4 = vmul.f32 %v2852_v53, %v4675_v58 }
 0xa28   :  { %v2854_v49 = vpop.eup %2853 }
 0xa29   :  { %v2291_v3 = vadd.f32 %v2290_v2, %v2289_v4 }
 0xa2b   :  { %2855 = vtanh.f32 %v2291_v3 }
 0xa35   :  { %v2856_v37 = vpop.eup %2855 }
 0xa36   :  { %v2293_v47 = vmul.f32 %v2856_v37, %v2854_v49 }
 0xa38   :  { %v2294_v13 = vpack.c.bf16 %v2293_v47, %v2293_v47 }
 0xa3a   :  { %2329 = vmatmul.mubr.bf16.vlgmr.msra.gmra.mrb[76].mxu0 %v2294_v13  ;;  %2370 = vmatmul.mubr.bf16.vlgmr.msra.gmra.mrb[76].mxu1 %v2294_v13 }
 0xb0d   :  { %v2330_v54 = vpop.f32.mrb[76].mxu0  ;;  %v2371_v7 = vpop.f32.mrb[76].mxu1 }
 0xb0e   :  { %v2331_v8 = vadd.f32 %v2330_v54, %v5572_v59  ;;  %v2332_v9 = vpop.f32.mrb[77].mxu0  ;;  %v2373_v11 = vpop.f32.mrb[77].mxu1  ;;  %v2372_v45 = vadd.f32 %v2371_v7, %v5574_v12 }
 0xb0f   :  { %v2333_v15 = vadd.f32 %v2332_v9, %v5573_v42  ;;  %v2334_v27 = vpop.f32.mrb[78].mxu0  ;;  %v2375_v30 = vpop.f32.mrb[78].mxu1  ;;  %v2374_v33 = vadd.f32 %v2373_v11, %v5575_v16 }
 0xb10   :  { %v2538_v58 = vmul.f32 -1.442695, %v2331_v8  ;;  %v2335_v35 = vpop.f32.mrb[79].mxu0  ;;  %v2376_v38 = vpop.f32.mrb[79].mxu1  ;;  %v2540_v40 = vmul.f32 -1.442695, %v2372_v45 }
 0xb11   :  { %v2539_v48 = vmul.f32 -1.442695, %v2333_v15 }
 0xb12   :  { %2857 = vpow2.f32 %v2538_v58 }
 0xb13   :  { %2859 = vpow2.f32 %v2539_v48 }
 0xb14   :  { %2861 = vtanh.f32 %v2374_v33 }
 0xb15   :  { %2863 = vpow2.f32 %v2540_v40 }
 0xb1c   :  { %v2858_v36 = vpop.eup %2857 }
 0xb1d   :  { %v2387_v46 = vadd.f32 1.0, %v2858_v36  ;;  %v2860_v59 = vpop.eup %2859 }
 0xb1e   :  { %v2388_v42 = vadd.f32 1.0, %v2860_v59  ;;  %v2862_v60 = vpop.eup %2861 }
 0xb1f   :  { %2865 = vrcp.f32 %v2387_v46  ;;  %v2864_v52 = vpop.eup %2863 }
 0xb20   :  { %2867 = vrcp.f32 %v2388_v42  ;;  %v2389_v1 = vadd.f32 1.0, %v2864_v52 }
 0xb22   :  { %2869 = vrcp.f32 %v2389_v1 }
 0xb29   :  { %v2866_v41 = vpop.eup %2865 }
 0xb2a   :  { %v2398_v61 = vmul.f32 %v2866_v41, %v2862_v60  ;;  %v2868_v29 = vpop.eup %2867 }
 0xb2b   :  { %v2397_v26 = vmul.f32 %v2868_v29, %v4773_v22 }
 0xb2c   :  { %v2870_v16 = vpop.eup %2869 }
 0xb2d   :  { %v2399_v12 = vadd.f32 %v2398_v61, %v2397_v26 }
 0xb2f   :  { %2871 = vtanh.f32 %v2399_v12 }
 0xb39   :  { %v2872_v39 = vpop.eup %2871 }
 0xb3a   :  { %v2401_v5 = vmul.f32 %v2872_v39, %v2870_v16 }
 0xb3c   :  { %v2409_v56 = vmul.f32 %v2541_v57, %v2401_v5 }
 0xb3e   :  { %2410 = vadd.xlane.f32.xlu0 %v2409_v56 }
 0xbcb   :  { %v2411_v31 = vpop.xlane.xlu0 %2410 }
 0xbcc   :  { %v2419_v17 = vadd.f32 %v2542_v14, %v2411_v31 }
 0xbce   :  { %v2543_v6 = vmul.f32 -1.442695, %v2419_v17 }
 0xbd0   :  { %2873 = vpow2.f32 %v2543_v6 }
 0xbda   :  { %v2874_v0 = vpop.eup %2873 }
 0xbdb   :  { %v2423_v18 = vadd.f32 1.0, %v2874_v0 }
 0xbdd   :  { %2875 = vrcp.f32 %v2423_v18 }
 0xbe7   :  { %v2876_v22 = vpop.eup %2875 }
 0xbe8   :  { %2428 = vperm.xlu0 %2568, %v2876_v22  }
 0xc67   :  { %v2429_v28 = vpop.permute.xlu0 %2428 }
 0xc68   :  { %2431 = vst [vmem:[%s4800_s8] sm:$0xff] %v2429_v28 }
 0xc69   :  { %2436 = vsyncpa [#allocation7], 1 }
 0xc6a   :  { %2437 = vsyncmov [#allocation4] }
 0xc6d   :  { %s2438_s6 = vpop.sfrf %2437 }
 0xc6e   :  { %p2544_p8 = scmp.ne.s32.totalorder %s2438_s6, 0 }
 0xc70   :  { %2442 = shalt.err (%p2544_p8)  }

</bundles_post_ra>
